<compile_context>
chip_gen: v5e
topology: v5e:2x2
jax: 0.10.0
libtpu: 0.0.40
codegen_flags: <defaults>
</compile_context>

<pallas_src>
import jax
import jax.numpy as jnp
from jax.experimental import pallas as pl
from jax.experimental.pallas import tpu as pltpu


def _round_up(x: int, m: int) -> int:
    return (x + m - 1) // m * m


def _pick_tile(dim: int, max_tile: int, align: int) -> int:
    """Largest layout-legal tile <= max_tile that minimizes padding of `dim`."""
    dim_p = _round_up(max(dim, 1), align)
    max_tile = max((max_tile // align) * align, align)
    if dim_p <= max_tile:
        return dim_p
    best_tile, best_pad = align, None
    for t in range(max_tile, align - 1, -align):
        pad = _round_up(dim_p, t) - dim_p
        if best_pad is None or pad < best_pad:
            best_pad, best_tile = pad, t
            if pad == 0:
                break
    return best_tile


def _vmem_capacity_bytes() -> int:
    try:
        return int(pltpu.get_tpu_info().vmem_capacity_bytes)
    except Exception:
        return 64 * 1024 * 1024  # conservative (v7x-sized) fallback


def _matmul_kernel(x_ref, w_ref, o_ref):
    # Output block is k-invariant -> resident across the K reduction; use it
    # directly as the f32 accumulator (no separate scratch).
    @pl.when(pl.program_id(2) == 0)
    def _():
        o_ref[...] = jnp.zeros_like(o_ref)

    # bf16 x bf16 -> f32 accumulate on the MXU.
    o_ref[...] += jnp.dot(
        x_ref[...], w_ref[...], preferred_element_type=jnp.float32
    )


def matrix_forward(
    x,
    w,
    *,
    w_bf16=None,
    max_tm: int = 512,
    max_tn: int = 1024,
    max_tk: int = 512,
    small_flops_threshold: int = 1 << 24,
):
    """Compute x @ w with a tiled Pallas TPU kernel.

    x: (M, K) float32, w: (K, N) float32 -> (M, N) float32.
    `w_bf16` optionally supplies a pre-cast bf16 copy of w (hoisted cast).
    """
    M, K = x.shape
    K2, N = w.shape
    assert K == K2, "inner dimensions must match"
    out_dtype = x.dtype

    # bf16 operands for the MXU (halves HBM traffic, full MXU rate).
    x_bf = x.astype(jnp.bfloat16)
    w_bf = w.astype(jnp.bfloat16) if w_bf16 is None else w_bf16

    # --- small-problem fast path: overhead of pad/cast/slice + grid steps
    # dominates; plain jnp.dot is strictly faster.
    if 2 * M * N * K <= small_flops_threshold:
        out = jnp.dot(x_bf, w_bf, preferred_element_type=jnp.float32)
        return out if out.dtype == out_dtype else out.astype(out_dtype)

    # --- generation-aware VMEM budget.
    vmem_cap = _vmem_capacity_bytes()
    vmem_limit = min((vmem_cap * 3) // 4, 96 * 1024 * 1024)

    # Adaptive, padding-minimizing tiles.  bf16 LHS block (tm, tk): tm % 16,
    # tk % 128; bf16 RHS block (tk, tn): tn % 128; f32 out block (tm, tn) ok.
    tm = _pick_tile(M, max_tm, 16)
    tn = _pick_tile(N, max_tn, 128)
    tk = _pick_tile(K, max_tk, 128)

    def live_bytes(a, b, c):
        # double-buffered bf16 operand tiles + double-buffered f32 out tile.
        return 2 * (a * c + c * b) * 2 + 2 * a * b * 4

    # Shrink tiles (tk, then tn, then tm) if the budget is exceeded.
    while live_bytes(tm, tn, tk) > vmem_limit and tk > 128:
        tk = max(128, (tk // 2 // 128) * 128)
    while live_bytes(tm, tn, tk) > vmem_limit and tn > 128:
        tn = max(128, (tn // 2 // 128) * 128)
    while live_bytes(tm, tn, tk) > vmem_limit and tm > 16:
        tm = max(16, (tm // 2 // 16) * 16)

    Mp, Np, Kp = _round_up(M, tm), _round_up(N, tn), _round_up(K, tk)
    grid_i, grid_j, grid_k = Mp // tm, Np // tn, Kp // tk

    if grid_i * grid_j * grid_k == 1:
        # Fits in one tile: a single-step pallas_call has no advantage.
        out = jnp.dot(x_bf, w_bf, preferred_element_type=jnp.float32)
        return out if out.dtype == out_dtype else out.astype(out_dtype)

    # Keep >=2 blocks on a parallel axis so both v7x TensorCores get work.
    if grid_i == 1 and grid_j == 1:
        if Mp >= 32:
            tm = _pick_tile(M, tm // 2, 16)
        elif Np >= 256:
            tn = _pick_tile(N, tn // 2, 128)
        Mp, Np = _round_up(M, tm), _round_up(N, tn)
        grid_i, grid_j = Mp // tm, Np // tn

    # Zero-pad the bf16 arrays (half the pad traffic of padding f32 first).
    # The K zero-pad is REQUIRED for correctness of the reduction; the M/N
    # pad is sliced back off below and skipped when not needed.
    if (Mp, Kp) != (M, K):
        x_bf = jnp.pad(x_bf, ((0, Mp - M), (0, Kp - K)))
    if (Kp, Np) != (K, N):
        w_bf = jnp.pad(w_bf, ((0, Kp - K), (0, Np - N)))

    grid = (grid_i, grid_j, grid_k)

    # Advisory cost: reflect tiled re-reads (x read grid_j times, w grid_i).
    cost = pl.CostEstimate(
        flops=2 * Mp * Np * Kp,
        transcendentals=0,
        bytes_accessed=(Mp * Kp * 2) * grid_j + (Kp * Np * 2) * grid_i + Mp * Np * 4,
    )

    out_padded = pl.pallas_call(
        _matmul_kernel,
        out_shape=jax.ShapeDtypeStruct((Mp, Np), jnp.float32),
        grid_spec=pltpu.PrefetchScalarGridSpec(
            num_scalar_prefetch=0,
            grid=grid,
            in_specs=[
                pl.BlockSpec((tm, tk), lambda i, j, k: (i, k)),
                pl.BlockSpec((tk, tn), lambda i, j, k: (k, j)),
            ],
            out_specs=pl.BlockSpec((tm, tn), lambda i, j, k: (i, j)),
        ),
        compiler_params=pltpu.CompilerParams(
            dimension_semantics=("parallel", "parallel", "arbitrary"),
            vmem_limit_bytes=int(vmem_limit),
        ),
        cost_estimate=cost,
    )(x_bf, w_bf)

    out = out_padded if (Mp, Np) == (M, N) else out_padded[:M, :N]
    return out if out.dtype == out_dtype else out.astype(out_dtype)


class MatrixPallas:
    """JAX/Pallas equivalent of the PyTorch `Matrix` module."""

    def __init__(self, in_size, out_size, std=1.0, key=None):
        if key is None:
            key = jax.random.PRNGKey(42)
        # Mirrors torch.randn(in_size, out_size) * std (deterministic here).
        self.matrix = (
            jax.random.normal(key, (in_size, out_size), dtype=jnp.float32) * std
        )
        # Hoist the bf16 cast of the weight out of the per-call path.
        self._matrix_bf16 = self.matrix.astype(jnp.bfloat16)

    def __call__(self, x):
        return matrix_forward(x, self.matrix, w_bf16=self._matrix_bf16)


def _check(out, ref, rel=2e-2):
    # bf16-operand matmul vs f32 reference: scale-aware tolerance.
    err = jnp.max(jnp.abs(out - ref))
    scale = jnp.max(jnp.abs(ref)) + 1e-6
    assert out.shape == ref.shape
    assert float(err) <= rel * float(scale), (
        f"mismatch vs reference: max_err={float(err)} scale={float(scale)}"
    )


if __name__ == "__main__":
    key = jax.random.PRNGKey(0)
    k_x, k_w, k_x2, k_w2 = jax.random.split(key, 4)

    # Small demo shape consistent with the module (takes the jnp.dot fast path).
    batch, in_size, out_size = 8, 32, 128
    x = jax.random.normal(k_x, (batch, in_size), dtype=jnp.float32)
    mod = MatrixPallas(in_size, out_size, std=1.0, key=k_w)

    out = jax.block_until_ready(mod(x))
    _check(out, x @ mod.matrix)

    # Larger, non-tile-aligned shape that exercises the tiled Pallas path
    # (multiple grid steps, parallel-axis split, resident f32 accumulator).
    M2, K2, N2 = 384, 1024, 640
    x2 = jax.random.normal(k_x2, (M2, K2), dtype=jnp.float32)
    w2 = jax.random.normal(k_w2, (K2, N2), dtype=jnp.float32)
    out2 = jax.block_until_ready(matrix_forward(x2, w2))
    _check(out2, x2 @ w2)

    print("KERNEL_OK")
</pallas_src>

<mosaic_0001>
module attributes {stable_mosaic.version = 11 : i64} {
  func.func @_matmul_kernel(%arg0: i32, %arg1: i32, %arg2: i32, %arg3: memref<192x512xbf16, #tpu.memory_space<vmem>>, %arg4: memref<512x640xbf16, #tpu.memory_space<vmem>>, %arg5: memref<192x640xf32, #tpu.memory_space<vmem>>) attributes {dimension_semantics = [#tpu.dimension_semantics<parallel>, #tpu.dimension_semantics<parallel>, #tpu.dimension_semantics<arbitrary>], iteration_bounds = array<i64: 2, 1, 2>, scalar_prefetch = 0 : i64, scratch_operands = 0 : i64, tpu.core_type = #tpu.core_type<tc>, window_params = [{transform_indices = @transform_0, window_bounds = array<i64: 192, 512>}, {transform_indices = @transform_1, window_bounds = array<i64: 512, 640>}, {transform_indices = @transform_2, window_bounds = array<i64: 192, 640>}]} {
    %c0_i32 = arith.constant 0 : i32
    %0 = arith.cmpi eq, %arg2, %c0_i32 : i32
    %1 = arith.extui %0 : i1 to i32
    %c0_i32_0 = arith.constant 0 : i32
    %2 = arith.cmpi ne, %1, %c0_i32_0 : i32
    scf.if %2 {
      %cst_8 = arith.constant 0.000000e+00 : f32
      %9 = vector.broadcast %cst_8 : f32 to vector<192x640xf32>
      %c0_9 = arith.constant 0 : index
      %c0_10 = arith.constant 0 : index
      %10 = vector.load %arg5[%c0_9, %c0_10] : memref<192x640xf32, #tpu.memory_space<vmem>>, vector<192x640xf32>
      tpu.vector_store %arg5[%c0_9, %c0_10], %9 {strides = array<i32>} : memref<192x640xf32, #tpu.memory_space<vmem>>, vector<192x640xf32>,
    } else {
    }
    %c0 = arith.constant 0 : index
    %c0_1 = arith.constant 0 : index
    %3 = vector.load %arg5[%c0, %c0_1] : memref<192x640xf32, #tpu.memory_space<vmem>>, vector<192x640xf32>
    %c0_2 = arith.constant 0 : index
    %c0_3 = arith.constant 0 : index
    %4 = vector.load %arg3[%c0_2, %c0_3] : memref<192x512xbf16, #tpu.memory_space<vmem>>, vector<192x512xbf16>
    %c0_4 = arith.constant 0 : index
    %c0_5 = arith.constant 0 : index
    %5 = vector.load %arg4[%c0_4, %c0_5] : memref<512x640xbf16, #tpu.memory_space<vmem>>, vector<512x640xbf16>
    %cst = arith.constant dense<0.000000e+00> : vector<192x640xf32>
    %6 = tpu.matmul %4, %5, %cst {dimension_numbers = #tpu.dot_dimension_numbers<[1], [0], [0], [1], [0, 0, 1, 1], [], []>} : vector<192x512xbf16>, vector<512x640xbf16>, vector<192x640xf32> -> vector<192x640xf32>
    %7 = arith.addf %3, %6 : vector<192x640xf32>
    %c0_6 = arith.constant 0 : index
    %c0_7 = arith.constant 0 : index
    %8 = vector.load %arg5[%c0_6, %c0_7] : memref<192x640xf32, #tpu.memory_space<vmem>>, vector<192x640xf32>
    tpu.vector_store %arg5[%c0_6, %c0_7], %7 {strides = array<i32>} : memref<192x640xf32, #tpu.memory_space<vmem>>, vector<192x640xf32>,
    return
  }
  func.func @transform_0(%arg0: i32, %arg1: i32, %arg2: i32) -> (i32, i32) {
    %c0_i32 = arith.constant 0 : i32
    return %arg0, %arg2 : i32, i32
  }
  func.func @transform_1(%arg0: i32, %arg1: i32, %arg2: i32) -> (i32, i32) {
    %c0_i32 = arith.constant 0 : i32
    return %arg2, %arg1 : i32, i32
  }
  func.func @transform_2(%arg0: i32, %arg1: i32, %arg2: i32) -> (i32, i32) {
    %c0_i32 = arith.constant 0 : i32
    return %arg0, %arg1 : i32, i32
  }
}

</mosaic_0001>

<bundles_post_ra>
// kernel: tpu_custom_call.1
= control target key start
LH: loop header
LB: loop body
LE: loop exit
PB: predicated region body
PF: predicated region fallthrough
CT: control target
= control target key end

     0   :  { %s6481_s0 = inlined_call_operand.hbm [shape: bf16[384,1024], index: 0, kind: input, shape index: {}]   ;;  %s6482_s1 = inlined_call_operand.hbm [shape: bf16[1024,640], index: 1, kind: input, shape index: {}]   ;;  %s6483_s2 = inlined_call_operand.hbm [shape: f32[384,640], index: 2, kind: output, shape index: {}]  }
   0x1   :  { %6503 = sst [smem:[#allocation25_spill]] %s6481_s0 }
   0x2   :  { %6504 = sst [smem:[#allocation26_spill]] %s6483_s2 }
   0x3   :  { %7 = vsyncpa [#allocation3], 0 }
   0x4   :  { %9 = vsyncpa [#allocation3 + $0x1], 0 }
   0x5   :  { %10 = vsyncpa [#allocation6], 0 }
   0x6   :  { %12 = vsyncpa [#allocation6 + $0x1], 0 }
   0x7   :  { %13 = vsyncpa [#allocation4], 0 }
   0x8   :  { %15 = vsyncpa [#allocation4 + $0x1], 0  ;;  %s4995_s9 = smov 0   ;;  %s4997_s10 = smov 0  }
   0x9   :  { %s4999_s11 = smov 0   ;;  %s5001_s12 = smov 0  }
   0xa   :  { %s5003_s13 = smov 0   ;;  %s5005_s14 = smov 0  }
   0xb   :  { %s5007_s15 = smov 0   ;;  %s5009_s16 = smov 0  }
   0xc   :  { %s5011_s17 = smov 0   ;;  %s5013_s18 = smov 0  }
   0xd   :  { %s5015_s19 = smov 0   ;;  %s5017_s20 = smov 0  }
   0xe   :  { %s5019_s21 = smov 0   ;;  %s5021_s22 = smov 0  }
   0xf LB: > { %6505 = sst [smem:[#allocation11_spill]] %s4950_s17  ;;  %s33_s23 = sadd.s32 1, %s4962_s20  ;;  %s4970_s22 = sphi %s5021_s22, %s21_s22   ;;  %s4966_s21 = sphi %s5019_s21, %s6555_s21   ;;  %s4962_s20 = sphi %s5017_s20, %s6554_s20   ;;  %s4958_s19 = sphi %s5015_s19, %s6553_s19   ;;  %s4954_s18 = sphi %s5013_s18, %s6566_s18   ;;  %s4950_s17 = sphi %s5011_s17, %s6565_s17   ;;  %s4946_s16 = sphi %s5009_s16, %s6564_s16   ;;  %s4942_s15 = sphi %s5007_s15, %s6563_s15   ;;  %s4938_s14 = sphi %s5005_s14, %s6562_s14   ;;  %s4934_s13 = sphi %s5003_s13, %s6561_s13   ;;  %s4930_s12 = sphi %s5001_s12, %s6560_s12   ;;  %s4926_s11 = sphi %s4999_s11, %s6559_s11   ;;  %s4922_s10 = sphi %s4997_s10, %s6558_s10   ;;  %s4918_s9 = sphi %s4995_s9, %s6557_s9  }
  0x10   : > { %6506 = sst [smem:[#allocation12_spill]] %s4958_s19  ;;  %s40_s24 = sadd.s32 1, %s4966_s21 }
  0x11   : > { %6507 = sst [smem:[#allocation13_spill]] %s4962_s20  ;;  %p34_p0 = scmp.ge.s32.totalorder %s33_s23, 2 }
  0x12   : > { %6508 = sst [smem:[#allocation14_spill]] %s4966_s21  ;;  %s49_s25 = sadd.s32 1, %s4950_s17 }
  0x13   : > { %p56_p1 = scmp.ne.s32.totalorder %s4950_s17, %s4946_s16  ;;  %p57_p2 = scmp.eq.s32.totalorder %s4970_s22, 0 }
  0x14   : > { %s6568_s23 = smov (%p34_p0, %s33_s23), 0  ;;  %s6570_s24 = smov (!%p34_p0, %s40_s24), %s4966_s21 }
  0x15   : > { %6509 = sst [smem:[#allocation15_spill]] %s6568_s23  ;;  %s5076_s26 = ssub.s32 %s4962_s20, %s6568_s23 }
  0x16   : > { %p5080_p3 = por %p57_p2, %p56_p1  ;;  %p42_p4 = scmp.ge.s32.totalorder %s6570_s24, 2 }
  0x17   : > { %p62_p5 = scmp.ne.s32.totalorder %s4946_s16, %s4942_s15  ;;  %s105_s28 = sadd.s32 1, %s4926_s11 }
  0x18   : > { %s6572_s24 = smov (%p42_p4, %s6570_s24), 0  ;;  %p6487_p6 = scmp.lt.s32.totalorder %s4970_s22, 4 }
  0x19   : > { %6511 = sst [smem:[#allocation16_spill]] %s6572_s24  ;;  %s142_s29 = sand.u32 1, %s4950_s17  }
  0x1a   : > { %s44_s30 = ssub.s32 %s4966_s21, %s6572_s24  ;;  %s4613_s4 = smul.u32 384, %s142_s29 }
  0x1b   : > { %s46_s3 = sor.u32 %s5076_s26, %s44_s30  ;;  %p103_p7 = scmp.eq.s32.totalorder %s44_s30, 0 }
  0x1c   : > { %p47_p8 = scmp.eq.s32.totalorder %s46_s3, 0  ;;  %s3561_s7 = sshll.u32 %s4962_s20, 2 }
  0x1d   : > { %s5095_s5 = scalar_select %p103_p7, %s4926_s11, %s105_s28  }
  0x1e   : > { %s5098_s6 = scalar_select %p47_p8, %s4950_s17, %s49_s25  }
  0x1f   : > { %s4404_s8 = smul.u32 192, %s4966_s21  ;;  %s146_s23 = scalar_lea.vmem [#allocation2], %s4613_s4 }
  0x20   : > { %6512 = sst [smem:[#allocation17_spill]] %s5098_s6  ;;  %s157_s2 = sshll.u32 %s146_s23, 4  ;;  %s158_s2 = int_to_ptr.vmem [resolvable:$true] %s157_s2 }
  0x21   : > { %p4627_p9 = pnand %p6487_p6, %p5080_p3  ;;  %s152_s24 = sadd.s32 %s4404_s8, %s3561_s7 }
  0x22   : > { %s3563_s30 = sshll.u32 %s152_s24, 2  ;;  %s6513_s0 = sld [smem:[#allocation25_spill]] }
  0x23   : > { %p3567_p10 = scmp.ge.s32.totalorder %s4970_s22, 1  ;;  %s143_s23 = scalar_lea.sflag [#allocation3], %s142_s29 }
  0x24   : > { %s4972_s27 = smov 512   ;;  %s4973_s4 = smov 256  }
  0x25   : > { %s4974_s24 = smov 16   ;;  %p190_p11 = scmp.lt.s32.totalorder %s4970_s22, 5 }
  0x26   : > { %s3557_s7 = sadd.s32 4294967295, %s4970_s22   ;;  %s3558_s8 = sadd.s32 4294967294, %s4970_s22  }
  0x27   : > { %p5111_p12 = pnand %p3567_p10, %p190_p11  ;;  %p63_p13 = scmp.eq.s32.totalorder %s3557_s7, 0 }
  0x28   : > { %s154_s25 = scalar_lea.hbm %s6513_s0, %s3563_s30  ;;  %p75_p0 = scmp.eq.s32.totalorder %s5076_s26, 0 }
  0x29   : > { %s155_s28 = sshll.u32 %s154_s25, 4  ;;  %s77_s29 = sadd.s32 1, %s4938_s14  ;;  %s156_s28 = int_to_ptr.hbm [resolvable:$true] %s155_s28 }
  0x2a   : > { %4629 = dma.hbm_to_vmem [thread:$0]  (!%p4627_p9), %s156_s28, 6144, %s158_s2, %s143_s23, %s4972_s27, %s4973_s4, %s4974_s24  }
  0x2b   : > { %s6514_s19 = scalar_select %p5111_p12, 1, 0 }
  0x2c   : > { %p84_p1 = scmp.ne.s32.totalorder %s4938_s14, %s4934_s13  ;;  %p5124_p3 = por %p63_p13, %p62_p5 }
  0x2d   : > { %p90_p4 = scmp.ne.s32.totalorder %s4934_s13, %s4930_s12  ;;  %p115_p9 = scmp.ne.s32.totalorder %s4926_s11, %s4922_s10 }
  0x2e   : > { %s5131_s2 = scalar_select %p75_p0, %s4938_s14, %s77_s29  }
  0x2f   : > { %p86_p7 = por %p84_p1, %p57_p2  ;;  %p5135_p8 = por %p90_p4, %p63_p13 }
  0x30   : > { %6516 = sst [smem:[#allocation18_spill]] %s5131_s2  ;;  %p116_p10 = scmp.eq.s32.totalorder %s3557_s7, 3 }
  0x31   : > { %p121_p11 = scmp.ne.s32.totalorder %s4922_s10, %s4918_s9  ;;  %p122_p6 = scmp.eq.s32.totalorder %s3558_s8, 3 }
  0x32   : > { %p5143_p12 = por %p116_p10, %p115_p9  ;;  %s167_s15 = sand.u32 1, %s4938_s14  }
  0x33   : > { %p5148_p5 = por %p122_p6, %p121_p11  ;;  %s4614_s12 = smul.u32 1280, %s167_s15 }
  0x34   : > { %p6520_p0 = scmp.lt.s32.totalorder %s4970_s22, 4  ;;  %s4615_s28 = smul.u32 1280, %s4962_s20 }
  0x35   : > { %s171_s24 = scalar_lea.vmem [#allocation5], %s4614_s12  ;;  %s168_s29 = scalar_lea.sflag [#allocation6], %s167_s15 }
  0x36   : > { %p4630_p2 = pnand %p6520_p0, %p86_p7  ;;  %s179_s4 = scalar_lea.hbm %s6482_s1, %s4615_s28 }
  0x37   : > { %s182_s7 = sshll.u32 %s171_s24, 4  ;;  %s180_s8 = sshll.u32 %s179_s4, 4  ;;  %s183_s7 = int_to_ptr.vmem [resolvable:$true] %s182_s7  ;;  %s181_s8 = int_to_ptr.hbm [resolvable:$true] %s180_s8 }
  0x38   : > { %s4975_s0 = smov 320   ;;  %s4976_s21 = smov 20  }
  0x39   : > { %4632 = dma.hbm_to_vmem [thread:$0]  (!%p4630_p2), %s181_s8, 20480, %s183_s7, %s168_s29, %s4975_s0, %s4975_s0, %s4976_s21  }
  0x3a   : > { %p6521_p6 = scmp.ne.s32.totalorder %s6514_s19, 0 }
  0x3c   : > { %194 = sbr.rel (%p6521_p6) target bundleno = 1333 (0x535), region = 28 }
  0x41   : > { %s196_s6 = sand.u32 1, %s4946_s16  }
  0x42   : > { %s4616_s20 = smul.u32 384, %s196_s6  ;;  %s197_s17 = scalar_lea.sflag [#allocation3], %s196_s6 }
  0x44   : > { %s5161_s2 = scalar_lea.vmem [#allocation2], %s4616_s20 }
  0x45   : > { %4905 = dma.done.wait (%p5124_p3), %s197_s17, 6144  }
  0x46   : > { %4907 = vsyncadd (%p5124_p3), %s197_s17, 4294961152  ;;  %s206_s15 = sand.u32 1, %s4934_s13  }
  0x47   : > { %s4617_s12 = smul.u32 1280, %s206_s15  ;;  %s207_s0 = scalar_lea.sflag [#allocation6], %s206_s15 }
  0x49   : > { %s5168_s21 = scalar_lea.vmem [#allocation5], %s4617_s12 }
  0x4a   : > { %4909 = dma.done.wait (%p5135_p8), %s207_s0, 20480  }
  0x4b   : > { %4911 = vsyncadd (%p5135_p8), %s207_s0, 4294946816  ;;  %s234_s20 = sand.u32 1, %s4922_s10   ;;  %p3568_p13 = scmp.ne.s32.totalorder %s4954_s18, 0 }
  0x4c   : > { %s4618_s6 = smul.u32 960, %s234_s20 }
  0x4d   : > { %246 = sbr.rel (%p3568_p13) target bundleno = 203 (0xcb), region = 40 }
  0x4e   : > { %s5177_s19 = scalar_lea.vmem [#allocation7], %s4618_s6 }
  0x52   : > { %v4977_v0 = vmov 0.0  }
  0x53   : > { %247 = vst [vmem:[%s5177_s19] sm:$0xff] %v4977_v0 }
  0x54   : > { %248 = vst [vmem:[%s5177_s19 + $0x8] sm:$0xff] %v4977_v0 }
  0x55   : > { %249 = vst [vmem:[%s5177_s19 + $0x10] sm:$0xff] %v4977_v0 }
  0x56   : > { %250 = vst [vmem:[%s5177_s19 + $0x18] sm:$0xff] %v4977_v0 }
  0x57   : > { %251 = vst [vmem:[%s5177_s19 + $0x20] sm:$0xff] %v4977_v0 }
  0x58   : > { %252 = vst [vmem:[%s5177_s19 + $0x28] sm:$0xff] %v4977_v0 }
  0x59   : > { %253 = vst [vmem:[%s5177_s19 + $0x30] sm:$0xff] %v4977_v0 }
  0x5a   : > { %254 = vst [vmem:[%s5177_s19 + $0x38] sm:$0xff] %v4977_v0 }
  0x5b   : > { %255 = vst [vmem:[%s5177_s19 + $0x40] sm:$0xff] %v4977_v0 }
  0x5c   : > { %256 = vst [vmem:[%s5177_s19 + $0x48] sm:$0xff] %v4977_v0 }
  0x5d   : > { %257 = vst [vmem:[%s5177_s19 + $0x50] sm:$0xff] %v4977_v0 }
  0x5e   : > { %258 = vst [vmem:[%s5177_s19 + $0x58] sm:$0xff] %v4977_v0 }
  0x5f   : > { %259 = vst [vmem:[%s5177_s19 + $0x60] sm:$0xff] %v4977_v0 }
  0x60   : > { %260 = vst [vmem:[%s5177_s19 + $0x68] sm:$0xff] %v4977_v0 }
  0x61   : > { %261 = vst [vmem:[%s5177_s19 + $0x70] sm:$0xff] %v4977_v0 }
  0x62   : > { %262 = vst [vmem:[%s5177_s19 + $0x78] sm:$0xff] %v4977_v0 }
  0x63   : > { %263 = vst [vmem:[%s5177_s19 + $0x80] sm:$0xff] %v4977_v0 }
  0x64   : > { %264 = vst [vmem:[%s5177_s19 + $0x88] sm:$0xff] %v4977_v0 }
  0x65   : > { %265 = vst [vmem:[%s5177_s19 + $0x90] sm:$0xff] %v4977_v0 }
  0x66   : > { %266 = vst [vmem:[%s5177_s19 + $0x98] sm:$0xff] %v4977_v0 }
  0x67   : > { %267 = vst [vmem:[%s5177_s19 + $0xa0] sm:$0xff] %v4977_v0 }
  0x68   : > { %268 = vst [vmem:[%s5177_s19 + $0xa8] sm:$0xff] %v4977_v0 }
  0x69   : > { %269 = vst [vmem:[%s5177_s19 + $0xb0] sm:$0xff] %v4977_v0 }
  0x6a   : > { %270 = vst [vmem:[%s5177_s19 + $0xb8] sm:$0xff] %v4977_v0 }
  0x6b   : > { %271 = vst [vmem:[%s5177_s19 + $0xc0] sm:$0xff] %v4977_v0 }
  0x6c   : > { %272 = vst [vmem:[%s5177_s19 + $0xc8] sm:$0xff] %v4977_v0 }
  0x6d   : > { %273 = vst [vmem:[%s5177_s19 + $0xd0] sm:$0xff] %v4977_v0 }
  0x6e   : > { %274 = vst [vmem:[%s5177_s19 + $0xd8] sm:$0xff] %v4977_v0 }
  0x6f   : > { %275 = vst [vmem:[%s5177_s19 + $0xe0] sm:$0xff] %v4977_v0 }
  0x70   : > { %276 = vst [vmem:[%s5177_s19 + $0xe8] sm:$0xff] %v4977_v0 }
  0x71   : > { %277 = vst [vmem:[%s5177_s19 + $0xf0] sm:$0xff] %v4977_v0 }
  0x72   : > { %278 = vst [vmem:[%s5177_s19 + $0xf8] sm:$0xff] %v4977_v0 }
  0x73   : > { %279 = vst [vmem:[%s5177_s19 + $0x100] sm:$0xff] %v4977_v0 }
  0x74   : > { %280 = vst [vmem:[%s5177_s19 + $0x108] sm:$0xff] %v4977_v0 }
  0x75   : > { %281 = vst [vmem:[%s5177_s19 + $0x110] sm:$0xff] %v4977_v0 }
  0x76   : > { %282 = vst [vmem:[%s5177_s19 + $0x118] sm:$0xff] %v4977_v0 }
  0x77   : > { %283 = vst [vmem:[%s5177_s19 + $0x120] sm:$0xff] %v4977_v0 }
  0x78   : > { %284 = vst [vmem:[%s5177_s19 + $0x128] sm:$0xff] %v4977_v0 }
  0x79   : > { %285 = vst [vmem:[%s5177_s19 + $0x130] sm:$0xff] %v4977_v0 }
  0x7a   : > { %286 = vst [vmem:[%s5177_s19 + $0x138] sm:$0xff] %v4977_v0 }
  0x7b   : > { %287 = vst [vmem:[%s5177_s19 + $0x140] sm:$0xff] %v4977_v0 }
  0x7c   : > { %288 = vst [vmem:[%s5177_s19 + $0x148] sm:$0xff] %v4977_v0 }
  0x7d   : > { %289 = vst [vmem:[%s5177_s19 + $0x150] sm:$0xff] %v4977_v0 }
  0x7e   : > { %290 = vst [vmem:[%s5177_s19 + $0x158] sm:$0xff] %v4977_v0 }
  0x7f   : > { %291 = vst [vmem:[%s5177_s19 + $0x160] sm:$0xff] %v4977_v0 }
  0x80   : > { %292 = vst [vmem:[%s5177_s19 + $0x168] sm:$0xff] %v4977_v0 }
  0x81   : > { %293 = vst [vmem:[%s5177_s19 + $0x170] sm:$0xff] %v4977_v0 }
  0x82   : > { %294 = vst [vmem:[%s5177_s19 + $0x178] sm:$0xff] %v4977_v0 }
  0x83   : > { %295 = vst [vmem:[%s5177_s19 + $0x180] sm:$0xff] %v4977_v0 }
  0x84   : > { %296 = vst [vmem:[%s5177_s19 + $0x188] sm:$0xff] %v4977_v0 }
  0x85   : > { %297 = vst [vmem:[%s5177_s19 + $0x190] sm:$0xff] %v4977_v0 }
  0x86   : > { %298 = vst [vmem:[%s5177_s19 + $0x198] sm:$0xff] %v4977_v0 }
  0x87   : > { %299 = vst [vmem:[%s5177_s19 + $0x1a0] sm:$0xff] %v4977_v0 }
  0x88   : > { %300 = vst [vmem:[%s5177_s19 + $0x1a8] sm:$0xff] %v4977_v0 }
  0x89   : > { %301 = vst [vmem:[%s5177_s19 + $0x1b0] sm:$0xff] %v4977_v0 }
  0x8a   : > { %302 = vst [vmem:[%s5177_s19 + $0x1b8] sm:$0xff] %v4977_v0 }
  0x8b   : > { %303 = vst [vmem:[%s5177_s19 + $0x1c0] sm:$0xff] %v4977_v0 }
  0x8c   : > { %304 = vst [vmem:[%s5177_s19 + $0x1c8] sm:$0xff] %v4977_v0 }
  0x8d   : > { %305 = vst [vmem:[%s5177_s19 + $0x1d0] sm:$0xff] %v4977_v0 }
  0x8e   : > { %306 = vst [vmem:[%s5177_s19 + $0x1d8] sm:$0xff] %v4977_v0 }
  0x8f   : > { %307 = vst [vmem:[%s5177_s19 + $0x1e0] sm:$0xff] %v4977_v0 }
  0x90   : > { %308 = vst [vmem:[%s5177_s19 + $0x1e8] sm:$0xff] %v4977_v0 }
  0x91   : > { %309 = vst [vmem:[%s5177_s19 + $0x1f0] sm:$0xff] %v4977_v0 }
  0x92   : > { %310 = vst [vmem:[%s5177_s19 + $0x1f8] sm:$0xff] %v4977_v0 }
  0x93   : > { %311 = vst [vmem:[%s5177_s19 + $0x200] sm:$0xff] %v4977_v0 }
  0x94   : > { %312 = vst [vmem:[%s5177_s19 + $0x208] sm:$0xff] %v4977_v0 }
  0x95   : > { %313 = vst [vmem:[%s5177_s19 + $0x210] sm:$0xff] %v4977_v0 }
  0x96   : > { %314 = vst [vmem:[%s5177_s19 + $0x218] sm:$0xff] %v4977_v0 }
  0x97   : > { %315 = vst [vmem:[%s5177_s19 + $0x220] sm:$0xff] %v4977_v0 }
  0x98   : > { %316 = vst [vmem:[%s5177_s19 + $0x228] sm:$0xff] %v4977_v0 }
  0x99   : > { %317 = vst [vmem:[%s5177_s19 + $0x230] sm:$0xff] %v4977_v0 }
  0x9a   : > { %318 = vst [vmem:[%s5177_s19 + $0x238] sm:$0xff] %v4977_v0 }
  0x9b   : > { %319 = vst [vmem:[%s5177_s19 + $0x240] sm:$0xff] %v4977_v0 }
  0x9c   : > { %320 = vst [vmem:[%s5177_s19 + $0x248] sm:$0xff] %v4977_v0 }
  0x9d   : > { %321 = vst [vmem:[%s5177_s19 + $0x250] sm:$0xff] %v4977_v0 }
  0x9e   : > { %322 = vst [vmem:[%s5177_s19 + $0x258] sm:$0xff] %v4977_v0 }
  0x9f   : > { %323 = vst [vmem:[%s5177_s19 + $0x260] sm:$0xff] %v4977_v0 }
  0xa0   : > { %324 = vst [vmem:[%s5177_s19 + $0x268] sm:$0xff] %v4977_v0 }
  0xa1   : > { %325 = vst [vmem:[%s5177_s19 + $0x270] sm:$0xff] %v4977_v0 }
  0xa2   : > { %326 = vst [vmem:[%s5177_s19 + $0x278] sm:$0xff] %v4977_v0 }
  0xa3   : > { %327 = vst [vmem:[%s5177_s19 + $0x280] sm:$0xff] %v4977_v0 }
  0xa4   : > { %328 = vst [vmem:[%s5177_s19 + $0x288] sm:$0xff] %v4977_v0 }
  0xa5   : > { %329 = vst [vmem:[%s5177_s19 + $0x290] sm:$0xff] %v4977_v0 }
  0xa6   : > { %330 = vst [vmem:[%s5177_s19 + $0x298] sm:$0xff] %v4977_v0 }
  0xa7   : > { %331 = vst [vmem:[%s5177_s19 + $0x2a0] sm:$0xff] %v4977_v0 }
  0xa8   : > { %332 = vst [vmem:[%s5177_s19 + $0x2a8] sm:$0xff] %v4977_v0 }
  0xa9   : > { %333 = vst [vmem:[%s5177_s19 + $0x2b0] sm:$0xff] %v4977_v0 }
  0xaa   : > { %334 = vst [vmem:[%s5177_s19 + $0x2b8] sm:$0xff] %v4977_v0 }
  0xab   : > { %335 = vst [vmem:[%s5177_s19 + $0x2c0] sm:$0xff] %v4977_v0 }
  0xac   : > { %336 = vst [vmem:[%s5177_s19 + $0x2c8] sm:$0xff] %v4977_v0 }
  0xad   : > { %337 = vst [vmem:[%s5177_s19 + $0x2d0] sm:$0xff] %v4977_v0 }
  0xae   : > { %338 = vst [vmem:[%s5177_s19 + $0x2d8] sm:$0xff] %v4977_v0 }
  0xaf   : > { %339 = vst [vmem:[%s5177_s19 + $0x2e0] sm:$0xff] %v4977_v0 }
  0xb0   : > { %340 = vst [vmem:[%s5177_s19 + $0x2e8] sm:$0xff] %v4977_v0 }
  0xb1   : > { %341 = vst [vmem:[%s5177_s19 + $0x2f0] sm:$0xff] %v4977_v0 }
  0xb2   : > { %342 = vst [vmem:[%s5177_s19 + $0x2f8] sm:$0xff] %v4977_v0 }
  0xb3   : > { %343 = vst [vmem:[%s5177_s19 + $0x300] sm:$0xff] %v4977_v0 }
  0xb4   : > { %344 = vst [vmem:[%s5177_s19 + $0x308] sm:$0xff] %v4977_v0 }
  0xb5   : > { %345 = vst [vmem:[%s5177_s19 + $0x310] sm:$0xff] %v4977_v0 }
  0xb6   : > { %346 = vst [vmem:[%s5177_s19 + $0x318] sm:$0xff] %v4977_v0 }
  0xb7   : > { %347 = vst [vmem:[%s5177_s19 + $0x320] sm:$0xff] %v4977_v0 }
  0xb8   : > { %348 = vst [vmem:[%s5177_s19 + $0x328] sm:$0xff] %v4977_v0 }
  0xb9   : > { %349 = vst [vmem:[%s5177_s19 + $0x330] sm:$0xff] %v4977_v0 }
  0xba   : > { %350 = vst [vmem:[%s5177_s19 + $0x338] sm:$0xff] %v4977_v0 }
  0xbb   : > { %351 = vst [vmem:[%s5177_s19 + $0x340] sm:$0xff] %v4977_v0 }
  0xbc   : > { %352 = vst [vmem:[%s5177_s19 + $0x348] sm:$0xff] %v4977_v0 }
  0xbd   : > { %353 = vst [vmem:[%s5177_s19 + $0x350] sm:$0xff] %v4977_v0 }
  0xbe   : > { %354 = vst [vmem:[%s5177_s19 + $0x358] sm:$0xff] %v4977_v0 }
  0xbf   : > { %355 = vst [vmem:[%s5177_s19 + $0x360] sm:$0xff] %v4977_v0 }
  0xc0   : > { %356 = vst [vmem:[%s5177_s19 + $0x368] sm:$0xff] %v4977_v0 }
  0xc1   : > { %357 = vst [vmem:[%s5177_s19 + $0x370] sm:$0xff] %v4977_v0 }
  0xc2   : > { %358 = vst [vmem:[%s5177_s19 + $0x378] sm:$0xff] %v4977_v0 }
  0xc3   : > { %359 = vst [vmem:[%s5177_s19 + $0x380] sm:$0xff] %v4977_v0 }
  0xc4   : > { %360 = vst [vmem:[%s5177_s19 + $0x388] sm:$0xff] %v4977_v0 }
  0xc5   : > { %361 = vst [vmem:[%s5177_s19 + $0x390] sm:$0xff] %v4977_v0 }
  0xc6   : > { %362 = vst [vmem:[%s5177_s19 + $0x398] sm:$0xff] %v4977_v0 }
  0xc7   : > { %363 = vst [vmem:[%s5177_s19 + $0x3a0] sm:$0xff] %v4977_v0 }
  0xc8   : > { %364 = vst [vmem:[%s5177_s19 + $0x3a8] sm:$0xff] %v4977_v0 }
  0xc9   : > { %365 = vst [vmem:[%s5177_s19 + $0x3b0] sm:$0xff] %v4977_v0 }
  0xca   : > { %366 = vst [vmem:[%s5177_s19 + $0x3b8] sm:$0xff] %v4977_v0 }
  0xcb PF: > { %v3903_v1 = vld [vmem:[%s5168_s21 + $0x118] sm:$0xf]  ;;  %v4490_v2 = vld [vmem:[%s5168_s21 + $0x128] sm:$0xf0]  ;;  %v3883_v12 = vld [vmem:[%s5168_s21 + $0xf0] sm:$0xf] }
  0xcc   : > { %v4063_v3 = vld [vmem:[%s5168_s21 + $0x258] sm:$0xf]  ;;  %v3904_v4 = vor.u32 %v4490_v2, %v3903_v1  ;;  %v4530_v5 = vld [vmem:[%s5168_s21 + $0x268] sm:$0xf0]  ;;  %v4485_v14 = vld [vmem:[%s5168_s21 + $0x100] sm:$0xf0] }
  0xcd   : > { %v4223_v6 = vld [vmem:[%s5168_s21 + $0x398] sm:$0xf]  ;;  %v4570_v7 = vld [vmem:[%s5168_s21 + $0x3a8] sm:$0xf0]  ;;  %v4064_v8 = vor.u32 %v4530_v5, %v4063_v3  ;;  %v4043_v15 = vld [vmem:[%s5168_s21 + $0x230] sm:$0xf]  ;;  %v3884_v17 = vor.u32 %v4485_v14, %v3883_v12 }
  0xce   : > { %v4224_v9 = vor.u32 %v4570_v7, %v4223_v6  ;;  %v4383_v10 = vld [vmem:[%s5168_s21 + $0x4d8] sm:$0xf]  ;;  %v4610_v11 = vld [vmem:[%s5168_s21 + $0x4e8] sm:$0xf0]  ;;  %1799 = vmatpush.bf16.msra.mxu0 %v3904_v4  ;;  %v4525_v16 = vld [vmem:[%s5168_s21 + $0x240] sm:$0xf0] }
  0xcf   : > { %v4384_v13 = vor.u32 %v4610_v11, %v4383_v10  ;;  %1868 = vmatpush.bf16.msra.mxu1 %v4064_v8  ;;  %v4044_v18 = vor.u32 %v4525_v16, %v4043_v15  ;;  %v4203_v19 = vld [vmem:[%s5168_s21 + $0x370] sm:$0xf]  ;;  %v4565_v20 = vld [vmem:[%s5168_s21 + $0x380] sm:$0xf0]  ;;  %v3863_v24 = vld [vmem:[%s5168_s21 + $0xc8] sm:$0xf] }
  0xd0   : > { %1937 = vmatpush.bf16.msra.mxu2 %v4224_v9  ;;  %v4363_v21 = vld [vmem:[%s5168_s21 + $0x4b0] sm:$0xf]  ;;  %v4204_v22 = vor.u32 %v4565_v20, %v4203_v19  ;;  %v4605_v23 = vld [vmem:[%s5168_s21 + $0x4c0] sm:$0xf0]  ;;  %v4480_v25 = vld [vmem:[%s5168_s21 + $0xd8] sm:$0xf0] }
  0xd1   : > { %2006 = vmatpush.bf16.msra.mxu3 %v4384_v13  ;;  %v4364_v26 = vor.u32 %v4605_v23, %v4363_v21  ;;  %v4023_v27 = vld [vmem:[%s5168_s21 + $0x208] sm:$0xf]  ;;  %v4520_v28 = vld [vmem:[%s5168_s21 + $0x218] sm:$0xf0]  ;;  %v3864_v30 = vor.u32 %v4480_v25, %v3863_v24  ;;  %v3843_v36 = vld [vmem:[%s5168_s21 + $0xa0] sm:$0xf] }
  0xd2   : > { %v4183_v29 = vld [vmem:[%s5168_s21 + $0x348] sm:$0xf]  ;;  %1800 = vmatpush.bf16.msra.mxu0 %v3884_v17  ;;  %v4560_v31 = vld [vmem:[%s5168_s21 + $0x358] sm:$0xf0]  ;;  %v4024_v34 = vor.u32 %v4520_v28, %v4023_v27  ;;  %v4475_v37 = vld [vmem:[%s5168_s21 + $0xb0] sm:$0xf0] }
  0xd3   : > { %v4343_v32 = vld [vmem:[%s5168_s21 + $0x488] sm:$0xf]  ;;  %v4600_v33 = vld [vmem:[%s5168_s21 + $0x498] sm:$0xf0]  ;;  %1869 = vmatpush.bf16.msra.mxu1 %v4044_v18  ;;  %v4184_v35 = vor.u32 %v4560_v31, %v4183_v29  ;;  %v4003_v38 = vld [vmem:[%s5168_s21 + $0x1e0] sm:$0xf]  ;;  %v3844_v45 = vor.u32 %v4475_v37, %v3843_v36 }
  0xd4   : > { %1938 = vmatpush.bf16.msra.mxu2 %v4204_v22  ;;  %v4344_v39 = vor.u32 %v4600_v33, %v4343_v32  ;;  %v4515_v40 = vld [vmem:[%s5168_s21 + $0x1f0] sm:$0xf0]  ;;  %v4163_v41 = vld [vmem:[%s5168_s21 + $0x320] sm:$0xf]  ;;  %v3823_v48 = vld [vmem:[%s5168_s21 + $0x78] sm:$0xf] }
  0xd5   : > { %2007 = vmatpush.bf16.msra.mxu3 %v4364_v26  ;;  %v4555_v42 = vld [vmem:[%s5168_s21 + $0x330] sm:$0xf0]  ;;  %v4323_v43 = vld [vmem:[%s5168_s21 + $0x460] sm:$0xf]  ;;  %v4004_v46 = vor.u32 %v4515_v40, %v4003_v38  ;;  %v4470_v49 = vld [vmem:[%s5168_s21 + $0x88] sm:$0xf0] }
  0xd6   : > { %v4595_v44 = vld [vmem:[%s5168_s21 + $0x470] sm:$0xf0]  ;;  %1801 = vmatpush.bf16.msra.mxu0 %v3864_v30  ;;  %v4164_v47 = vor.u32 %v4555_v42, %v4163_v41  ;;  %v3983_v50 = vld [vmem:[%s5168_s21 + $0x1b8] sm:$0xf]  ;;  %v4510_v52 = vld [vmem:[%s5168_s21 + $0x1c8] sm:$0xf0]  ;;  %v3824_v57 = vor.u32 %v4470_v49, %v3823_v48 }
  0xd7   : > { %1870 = vmatpush.bf16.msra.mxu1 %v4024_v34  ;;  %v4324_v51 = vor.u32 %v4595_v44, %v4323_v43  ;;  %v4143_v53 = vld [vmem:[%s5168_s21 + $0x2f8] sm:$0xf]  ;;  %v4550_v54 = vld [vmem:[%s5168_s21 + $0x308] sm:$0xf0]  ;;  %v3984_v58 = vor.u32 %v4510_v52, %v3983_v50  ;;  %v3803_v60 = vld [vmem:[%s5168_s21 + $0x50] sm:$0xf] }
  0xd8   : > { %1939 = vmatpush.bf16.msra.mxu2 %v4184_v35  ;;  %v4303_v55 = vld [vmem:[%s5168_s21 + $0x438] sm:$0xf]  ;;  %v4590_v56 = vld [vmem:[%s5168_s21 + $0x448] sm:$0xf0]  ;;  %v4144_v59 = vor.u32 %v4550_v54, %v4143_v53  ;;  %v4465_v61 = vld [vmem:[%s5168_s21 + $0x60] sm:$0xf0] }
  0xd9   : > { %2008 = vmatpush.bf16.msra.mxu3 %v4344_v39  ;;  %v3963_v62 = vld [vmem:[%s5168_s21 + $0x190] sm:$0xf]  ;;  %v4304_v63 = vor.u32 %v4590_v56, %v4303_v55  ;;  %v4505_v0 = vld [vmem:[%s5168_s21 + $0x1a0] sm:$0xf0]  ;;  %v3804_v5 = vor.u32 %v4465_v61, %v3803_v60  ;;  %v3783_v8 = vld [vmem:[%s5168_s21 + $0x28] sm:$0xf] }
  0xda   : > { %1802 = vmatpush.bf16.msra.mxu0 %v3844_v45  ;;  %v4123_v1 = vld [vmem:[%s5168_s21 + $0x2d0] sm:$0xf]  ;;  %v4545_v2 = vld [vmem:[%s5168_s21 + $0x2e0] sm:$0xf0]  ;;  %v3964_v6 = vor.u32 %v4505_v0, %v3963_v62  ;;  %v4460_v9 = vld [vmem:[%s5168_s21 + $0x38] sm:$0xf0] }
  0xdb   : > { %1871 = vmatpush.bf16.msra.mxu1 %v4004_v46  ;;  %v4283_v3 = vld [vmem:[%s5168_s21 + $0x410] sm:$0xf]  ;;  %v4585_v4 = vld [vmem:[%s5168_s21 + $0x420] sm:$0xf0]  ;;  %v4124_v7 = vor.u32 %v4545_v2, %v4123_v1  ;;  %v3943_v10 = vld [vmem:[%s5168_s21 + $0x168] sm:$0xf]  ;;  %v3784_v18 = vor.u32 %v4460_v9, %v3783_v8 }
  0xdc   : > { %1940 = vmatpush.bf16.msra.mxu2 %v4164_v47  ;;  %v4284_v11 = vor.u32 %v4585_v4, %v4283_v3  ;;  %v4500_v12 = vld [vmem:[%s5168_s21 + $0x178] sm:$0xf0]  ;;  %v4103_v13 = vld [vmem:[%s5168_s21 + $0x2a8] sm:$0xf]  ;;  %v3763_v17 = vld [vmem:[%s5168_s21] sm:$0xf] }
  0xdd   : > { %2009 = vmatpush.bf16.msra.mxu3 %v4324_v51  ;;  %v4540_v14 = vld [vmem:[%s5168_s21 + $0x2b8] sm:$0xf0]  ;;  %v4263_v15 = vld [vmem:[%s5168_s21 + $0x3e8] sm:$0xf]  ;;  %v4455_v19 = vld [vmem:[%s5168_s21 + $0x10] sm:$0xf0]  ;;  %v3944_v22 = vor.u32 %v4500_v12, %v3943_v10 }
  0xde   : > { %1803 = vmatpush.bf16.msra.mxu0 %v3824_v57  ;;  %v4580_v16 = vld [vmem:[%s5168_s21 + $0x3f8] sm:$0xf0]  ;;  %v3923_v20 = vld [vmem:[%s5168_s21 + $0x140] sm:$0xf]  ;;  %v4495_v21 = vld [vmem:[%s5168_s21 + $0x150] sm:$0xf0]  ;;  %v4104_v23 = vor.u32 %v4540_v14, %v4103_v13  ;;  %v3764_v35 = vor.u32 %v4455_v19, %v3763_v17 }
  0xdf   : > { %1872 = vmatpush.bf16.msra.mxu1 %v3984_v58  ;;  %v4083_v24 = vld [vmem:[%s5168_s21 + $0x280] sm:$0xf]  ;;  %v4535_v25 = vld [vmem:[%s5168_s21 + $0x290] sm:$0xf0]  ;;  %v4264_v27 = vor.u32 %v4580_v16, %v4263_v15  ;;  %v4407_v30 = vld [vmem:[%s5161_s2 + $0xc] sm:$0xf0]  ;;  %v3924_v39 = vor.u32 %v4495_v21, %v3923_v20 }
  0xe0   : > { %1941 = vmatpush.bf16.msra.mxu2 %v4144_v59  ;;  %v4243_v26 = vld [vmem:[%s5168_s21 + $0x3c0] sm:$0xf]  ;;  %v4575_v28 = vld [vmem:[%s5168_s21 + $0x3d0] sm:$0xf0]  ;;  %v4405_v31 = vld [vmem:[%s5161_s2 + $0x4] sm:$0xf]  ;;  %v4084_v40 = vor.u32 %v4535_v25, %v4083_v24 }
  0xe1   : > { %2010 = vmatpush.bf16.msra.mxu3 %v4304_v63  ;;  %v3571_v29 = vld [vmem:[%s5161_s2] sm:$0xf]  ;;  %v3573_v32 = vld [vmem:[%s5161_s2 + $0x10] sm:$0xf0]  ;;  %v4568_v33 = vld [vmem:[%s5168_s21 + $0x39c] sm:$0xf]  ;;  %v4244_v44 = vor.u32 %v4575_v28, %v4243_v26 }
  0xe2   : > { %1804 = vmatpush.bf16.msra.mxu0 %v3804_v5  ;;  %v4225_v34 = vld [vmem:[%s5168_s21 + $0x3ac] sm:$0xf0]  ;;  %v3579_v36 = vld [vmem:[%s5161_s2 + $0x8] sm:$0xf]  ;;  %v4608_v37 = vld [vmem:[%s5168_s21 + $0x4dc] sm:$0xf]  ;;  %v5499_v49 = vor.u32 %v4407_v30, %v3571_v29  ;;  %v5504_v54 = vor.u32 %v4405_v31, %v3573_v32 }
  0xe3   : > { %1873 = vmatpush.bf16.msra.mxu1 %v3964_v6  ;;  %v4385_v38 = vld [vmem:[%s5168_s21 + $0x4ec] sm:$0xf0]  ;;  %v4408_v41 = vld [vmem:[%s5161_s2 + $0x14] sm:$0xf0]  ;;  %v4406_v42 = vld [vmem:[%s5161_s2 + $0xc] sm:$0xf]  ;;  %v4228_v45 = vor.u32 %v4568_v33, %v4225_v34 }
  0xe4   : > { %1942 = vmatpush.bf16.msra.mxu2 %v4124_v7  ;;  %v3581_v43 = vld [vmem:[%s5161_s2 + $0x18] sm:$0xf0]  ;;  %v3905_v47 = vld [vmem:[%s5168_s21 + $0x12c] sm:$0xf0]  ;;  %v4388_v50 = vor.u32 %v4608_v37, %v4385_v38  ;;  %v4563_v52 = vld [vmem:[%s5168_s21 + $0x374] sm:$0xf]  ;;  %v5506_v55 = vor.u32 %v4408_v41, %v3579_v36 }
  0xe5   : > { %2011 = vmatpush.bf16.msra.mxu3 %v4284_v11  ;;  %v4488_v46 = vld [vmem:[%s5168_s21 + $0x11c] sm:$0xf]  ;;  %v4065_v51 = vld [vmem:[%s5168_s21 + $0x26c] sm:$0xf0]  ;;  %v4205_v53 = vld [vmem:[%s5168_s21 + $0x384] sm:$0xf0]  ;;  %v5510_v58 = vor.u32 %v4406_v42, %v3581_v43 }
  0xe6   : > { %1805 = vmatpush.bf16.msra.mxu0 %v3784_v18  ;;  %v4528_v48 = vld [vmem:[%s5168_s21 + $0x25c] sm:$0xf]  ;;  %v4603_v56 = vld [vmem:[%s5168_s21 + $0x4b4] sm:$0xf]  ;;  %v4365_v57 = vld [vmem:[%s5168_s21 + $0x4c4] sm:$0xf0]  ;;  %v3908_v59 = vor.u32 %v4488_v46, %v3905_v47  ;;  %v4208_v61 = vor.u32 %v4563_v52, %v4205_v53 }
  0xe7   : > { %1874 = vmatpush.bf16.msra.mxu1 %v3944_v22  ;;  %v4068_v60 = vor.u32 %v4528_v48, %v4065_v51  ;;  %v4483_v62 = vld [vmem:[%s5168_s21 + $0xf4] sm:$0xf]  ;;  %v3885_v63 = vld [vmem:[%s5168_s21 + $0x104] sm:$0xf0]  ;;  %v4368_v0 = vor.u32 %v4603_v56, %v4365_v57  ;;  %v3587_v5 = vld [vmem:[%s5161_s2 + $0x20] sm:$0xf] }
  0xe8   : > { %1943 = vmatpush.bf16.msra.mxu2 %v4104_v23  ;;  %v4523_v1 = vld [vmem:[%s5168_s21 + $0x234] sm:$0xf]  ;;  %v4045_v2 = vld [vmem:[%s5168_s21 + $0x244] sm:$0xf0]  ;;  %v3888_v3 = vor.u32 %v4483_v62, %v3885_v63  ;;  %v4411_v6 = vld [vmem:[%s5161_s2 + $0x2c] sm:$0xf0] }
  0xe9   : > { %2012 = vmatpush.bf16.msra.mxu3 %v4264_v27  ;;  %v4048_v4 = vor.u32 %v4523_v1, %v4045_v2  ;;  %v4409_v7 = vld [vmem:[%s5161_s2 + $0x24] sm:$0xf]  ;;  %v3589_v8 = vld [vmem:[%s5161_s2 + $0x30] sm:$0xf0]  ;;  %v3595_v9 = vld [vmem:[%s5161_s2 + $0x28] sm:$0xf]  ;;  %v5528_v13 = vor.u32 %v4411_v6, %v3587_v5 }
  0xea   : > { %1806 = vmatpush.bf16.msra.mxu0 %v3764_v35  ;;  %v4412_v10 = vld [vmem:[%s5161_s2 + $0x34] sm:$0xf0]  ;;  %v4410_v11 = vld [vmem:[%s5161_s2 + $0x2c] sm:$0xf]  ;;  %v3597_v12 = vld [vmem:[%s5161_s2 + $0x38] sm:$0xf0]  ;;  %v5530_v14 = vor.u32 %v4409_v7, %v3589_v8 }
  0xeb   : > { %1875 = vmatpush.bf16.msra.mxu1 %v3924_v39  ;;  %v5532_v15 = vor.u32 %v4412_v10, %v3595_v9  ;;  %v5534_v16 = vor.u32 %v4410_v11, %v3597_v12  ;;  %v4558_v17 = vld [vmem:[%s5168_s21 + $0x34c] sm:$0xf]  ;;  %v4185_v18 = vld [vmem:[%s5168_s21 + $0x35c] sm:$0xf0]  ;;  %v4415_v30 = vld [vmem:[%s5161_s2 + $0x4c] sm:$0xf0] }
  0xec   : > { %1944 = vmatpush.bf16.msra.mxu2 %v4084_v40  ;;  %v4598_v19 = vld [vmem:[%s5168_s21 + $0x48c] sm:$0xf]  ;;  %v4188_v20 = vor.u32 %v4558_v17, %v4185_v18  ;;  %v4345_v21 = vld [vmem:[%s5168_s21 + $0x49c] sm:$0xf0]  ;;  %v4413_v31 = vld [vmem:[%s5161_s2 + $0x44] sm:$0xf] }
  0xed   : > { %2013 = vmatpush.bf16.msra.mxu3 %v4244_v44  ;;  %1807 = vmatmul.bf16.vlgmr.msra.gmra.mxu0 %v5499_v49  ;;  %v4478_v22 = vld [vmem:[%s5168_s21 + $0xcc] sm:$0xf]  ;;  %v3865_v23 = vld [vmem:[%s5168_s21 + $0xdc] sm:$0xf0]  ;;  %v4348_v24 = vor.u32 %v4598_v19, %v4345_v21  ;;  %v3605_v32 = vld [vmem:[%s5161_s2 + $0x50] sm:$0xf0] }
  0xee   : > { %1876 = vmatmul.bf16.vlgmr.msra.gmra.mxu1 %v5504_v54  ;;  %2075 = vmatpush.bf16.msrb.mxu0 %v3908_v59  ;;  %v3868_v25 = vor.u32 %v4478_v22, %v3865_v23  ;;  %v4518_v26 = vld [vmem:[%s5168_s21 + $0x20c] sm:$0xf]  ;;  %v4025_v27 = vld [vmem:[%s5168_s21 + $0x21c] sm:$0xf0]  ;;  %v3611_v33 = vld [vmem:[%s5161_s2 + $0x48] sm:$0xf]  ;;  %v5558_v38 = vor.u32 %v4413_v31, %v3605_v32 }
  0xef   : > { %1945 = vmatmul.bf16.vlgmr.msra.gmra.mxu2 %v5506_v55  ;;  %2144 = vmatpush.bf16.msrb.mxu1 %v4068_v60  ;;  %v4028_v28 = vor.u32 %v4518_v26, %v4025_v27  ;;  %v3603_v29 = vld [vmem:[%s5161_s2 + $0x40] sm:$0xf]  ;;  %v4416_v34 = vld [vmem:[%s5161_s2 + $0x54] sm:$0xf0]  ;;  %v4414_v35 = vld [vmem:[%s5161_s2 + $0x4c] sm:$0xf] }
  0xf0   : > { %2213 = vmatpush.bf16.msrb.mxu2 %v4228_v45  ;;  %2014 = vmatmul.bf16.vlgmr.msra.gmra.mxu3 %v5510_v58  ;;  %v3613_v36 = vld [vmem:[%s5161_s2 + $0x58] sm:$0xf0]  ;;  %v5556_v37 = vor.u32 %v4415_v30, %v3603_v29  ;;  %v5560_v39 = vor.u32 %v4416_v34, %v3611_v33  ;;  %v4553_v41 = vld [vmem:[%s5168_s21 + $0x324] sm:$0xf]  ;;  %v4165_v42 = vld [vmem:[%s5168_s21 + $0x334] sm:$0xf0] }
  0xf1   : > { %2282 = vmatpush.bf16.msrb.mxu3 %v4388_v50  ;;  %v5562_v40 = vor.u32 %v4414_v35, %v3613_v36  ;;  %v4593_v43 = vld [vmem:[%s5168_s21 + $0x464] sm:$0xf]  ;;  %v4168_v44 = vor.u32 %v4553_v41, %v4165_v42  ;;  %v4325_v45 = vld [vmem:[%s5168_s21 + $0x474] sm:$0xf0]  ;;  %v3619_v56 = vld [vmem:[%s5161_s2 + $0x60] sm:$0xf] }
  0xf2   : > { %2076 = vmatpush.bf16.msrb.mxu0 %v3888_v3  ;;  %v4473_v46 = vld [vmem:[%s5168_s21 + $0xa4] sm:$0xf]  ;;  %v3845_v47 = vld [vmem:[%s5168_s21 + $0xb4] sm:$0xf0]  ;;  %v4328_v48 = vor.u32 %v4593_v43, %v4325_v45  ;;  %v4419_v57 = vld [vmem:[%s5161_s2 + $0x6c] sm:$0xf0] }
  0xf3   : > { %2145 = vmatpush.bf16.msrb.mxu1 %v4048_v4  ;;  %v3848_v50 = vor.u32 %v4473_v46, %v3845_v47  ;;  %v4513_v51 = vld [vmem:[%s5168_s21 + $0x1e4] sm:$0xf]  ;;  %v4005_v52 = vld [vmem:[%s5168_s21 + $0x1f4] sm:$0xf0]  ;;  %v3621_v60 = vld [vmem:[%s5161_s2 + $0x70] sm:$0xf0]  ;;  %v5584_v1 = vor.u32 %v4419_v57, %v3619_v56 }
  0xf4   : > { %2214 = vmatpush.bf16.msrb.mxu2 %v4208_v61  ;;  %v4008_v53 = vor.u32 %v4513_v51, %v4005_v52  ;;  %v4417_v59 = vld [vmem:[%s5161_s2 + $0x64] sm:$0xf]  ;;  %v3627_v61 = vld [vmem:[%s5161_s2 + $0x68] sm:$0xf]  ;;  %v4420_v62 = vld [vmem:[%s5161_s2 + $0x74] sm:$0xf0] }
  0xf5   : > { %2283 = vmatpush.bf16.msrb.mxu3 %v4368_v0  ;;  %v4418_v63 = vld [vmem:[%s5161_s2 + $0x6c] sm:$0xf]  ;;  %v3629_v0 = vld [vmem:[%s5161_s2 + $0x78] sm:$0xf0]  ;;  %v5586_v2 = vor.u32 %v4417_v59, %v3621_v60  ;;  %v5588_v3 = vor.u32 %v4420_v62, %v3627_v61  ;;  %v3635_v5 = vld [vmem:[%s5161_s2 + $0x80] sm:$0xf] }
  0xf6   : > { %2077 = vmatpush.bf16.msrb.mxu0 %v3868_v25  ;;  %v5590_v4 = vor.u32 %v4418_v63, %v3629_v0  ;;  %v4423_v6 = vld [vmem:[%s5161_s2 + $0x8c] sm:$0xf0]  ;;  %v4421_v7 = vld [vmem:[%s5161_s2 + $0x84] sm:$0xf]  ;;  %v3637_v8 = vld [vmem:[%s5161_s2 + $0x90] sm:$0xf0] }
  0xf7   : > { %2146 = vmatpush.bf16.msrb.mxu1 %v4028_v28  ;;  %v3643_v9 = vld [vmem:[%s5161_s2 + $0x88] sm:$0xf]  ;;  %v4424_v10 = vld [vmem:[%s5161_s2 + $0x94] sm:$0xf0]  ;;  %v4422_v11 = vld [vmem:[%s5161_s2 + $0x8c] sm:$0xf]  ;;  %v5604_v17 = vor.u32 %v4423_v6, %v3635_v5  ;;  %v5606_v18 = vor.u32 %v4421_v7, %v3637_v8 }
  0xf8   : > { %2215 = vmatpush.bf16.msrb.mxu2 %v4188_v20  ;;  %v3645_v12 = vld [vmem:[%s5161_s2 + $0x98] sm:$0xf0]  ;;  %v5608_v19 = vor.u32 %v4424_v10, %v3643_v9  ;;  %v4145_v22 = vld [vmem:[%s5168_s21 + $0x30c] sm:$0xf0]  ;;  %v3651_v33 = vld [vmem:[%s5161_s2 + $0xa0] sm:$0xf] }
  0xf9   : > { %2284 = vmatpush.bf16.msrb.mxu3 %v4348_v24  ;;  %v5610_v20 = vor.u32 %v4422_v11, %v3645_v12  ;;  %v4548_v21 = vld [vmem:[%s5168_s21 + $0x2fc] sm:$0xf]  ;;  %v4305_v25 = vld [vmem:[%s5168_s21 + $0x44c] sm:$0xf0]  ;;  %v4425_v35 = vld [vmem:[%s5161_s2 + $0xa4] sm:$0xf] }
  0xfa   : > { %2078 = vmatpush.bf16.msrb.mxu0 %v3848_v50  ;;  %v4588_v23 = vld [vmem:[%s5168_s21 + $0x43c] sm:$0xf]  ;;  %v4148_v24 = vor.u32 %v4548_v21, %v4145_v22  ;;  %v3825_v27 = vld [vmem:[%s5168_s21 + $0x8c] sm:$0xf0]  ;;  %v3653_v36 = vld [vmem:[%s5161_s2 + $0xb0] sm:$0xf0] }
  0xfb   : > { %2147 = vmatpush.bf16.msrb.mxu1 %v4008_v53  ;;  %v4468_v26 = vld [vmem:[%s5168_s21 + $0x7c] sm:$0xf]  ;;  %v4308_v28 = vor.u32 %v4588_v23, %v4305_v25  ;;  %v3985_v31 = vld [vmem:[%s5168_s21 + $0x1cc] sm:$0xf0]  ;;  %v3659_v41 = vld [vmem:[%s5161_s2 + $0xa8] sm:$0xf]  ;;  %v5634_v46 = vor.u32 %v4425_v35, %v3653_v36 }
  0xfc   : > { %2216 = vmatpush.bf16.msrb.mxu2 %v4168_v44  ;;  %v3828_v29 = vor.u32 %v4468_v26, %v3825_v27  ;;  %v4508_v30 = vld [vmem:[%s5168_s21 + $0x1bc] sm:$0xf]  ;;  %v4427_v34 = vld [vmem:[%s5161_s2 + $0xac] sm:$0xf0]  ;;  %v4428_v42 = vld [vmem:[%s5161_s2 + $0xb4] sm:$0xf0] }
  0xfd   : > { %1812 = vmatmul.bf16.gmra.mxu0 %v5528_v13  ;;  %2285 = vmatpush.bf16.msrb.mxu3 %v4328_v48  ;;  %v3988_v32 = vor.u32 %v4508_v30, %v3985_v31  ;;  %v4426_v43 = vld [vmem:[%s5161_s2 + $0xac] sm:$0xf]  ;;  %v3661_v44 = vld [vmem:[%s5161_s2 + $0xb8] sm:$0xf0]  ;;  %v5632_v45 = vor.u32 %v4427_v34, %v3651_v33  ;;  %v5636_v47 = vor.u32 %v4428_v42, %v3659_v41  ;;  %v4543_v50 = vld [vmem:[%s5168_s21 + $0x2d4] sm:$0xf] }
  0xfe   : > { %1881 = vmatmul.bf16.gmra.mxu1 %v5530_v14  ;;  %2079 = vmatpush.bf16.msrb.mxu0 %v3828_v29  ;;  %v5638_v48 = vor.u32 %v4426_v43, %v3661_v44  ;;  %v4125_v51 = vld [vmem:[%s5168_s21 + $0x2e4] sm:$0xf0]  ;;  %v4583_v52 = vld [vmem:[%s5168_s21 + $0x414] sm:$0xf]  ;;  %v3667_v5 = vld [vmem:[%s5161_s2 + $0xc0] sm:$0xf] }
  0xff   : > { %1950 = vmatmul.bf16.gmra.mxu2 %v5532_v15  ;;  %2148 = vmatpush.bf16.msrb.mxu1 %v3988_v32  ;;  %v4128_v53 = vor.u32 %v4543_v50, %v4125_v51  ;;  %v4285_v56 = vld [vmem:[%s5168_s21 + $0x424] sm:$0xf0]  ;;  %v4463_v57 = vld [vmem:[%s5168_s21 + $0x54] sm:$0xf]  ;;  %v4431_v6 = vld [vmem:[%s5161_s2 + $0xcc] sm:$0xf0] }
 0x100   : > { %2019 = vmatmul.bf16.gmra.mxu3 %v5534_v16  ;;  %2217 = vmatpush.bf16.msrb.mxu2 %v4148_v24  ;;  %v3805_v59 = vld [vmem:[%s5168_s21 + $0x64] sm:$0xf0]  ;;  %v4288_v60 = vor.u32 %v4583_v52, %v4285_v56  ;;  %v4503_v62 = vld [vmem:[%s5168_s21 + $0x194] sm:$0xf]  ;;  %v4429_v7 = vld [vmem:[%s5161_s2 + $0xc4] sm:$0xf]  ;;  %v5660_v21 = vor.u32 %v4431_v6, %v3667_v5 }
 0x101   : > { %2286 = vmatpush.bf16.msrb.mxu3 %v4308_v28  ;;  %v3808_v61 = vor.u32 %v4463_v57, %v3805_v59  ;;  %v3965_v63 = vld [vmem:[%s5168_s21 + $0x1a4] sm:$0xf0]  ;;  %v3669_v8 = vld [vmem:[%s5161_s2 + $0xd0] sm:$0xf0]  ;;  %v4432_v10 = vld [vmem:[%s5161_s2 + $0xd4] sm:$0xf0] }
 0x102   : > { %v3968_v0 = vor.u32 %v4503_v62, %v3965_v63  ;;  %v3675_v9 = vld [vmem:[%s5161_s2 + $0xc8] sm:$0xf]  ;;  %v4430_v11 = vld [vmem:[%s5161_s2 + $0xcc] sm:$0xf]  ;;  %v3677_v12 = vld [vmem:[%s5161_s2 + $0xd8] sm:$0xf0]  ;;  %v5662_v22 = vor.u32 %v4429_v7, %v3669_v8 }
 0x103   : > { %2080 = vmatpush.bf16.msrb.mxu0 %v3808_v61  ;;  %v5664_v23 = vor.u32 %v4432_v10, %v3675_v9  ;;  %v5666_v24 = vor.u32 %v4430_v11, %v3677_v12  ;;  %v3683_v25 = vld [vmem:[%s5161_s2 + $0xe0] sm:$0xf]  ;;  %v4435_v26 = vld [vmem:[%s5161_s2 + $0xec] sm:$0xf0]  ;;  %v4433_v27 = vld [vmem:[%s5161_s2 + $0xe4] sm:$0xf] }
 0x104   : > { %2218 = vmatpush.bf16.msrb.mxu2 %v4128_v53  ;;  %2149 = vmatpush.bf16.msrb.mxu1 %v3968_v0  ;;  %v3685_v28 = vld [vmem:[%s5161_s2 + $0xf0] sm:$0xf0]  ;;  %v3691_v29 = vld [vmem:[%s5161_s2 + $0xe8] sm:$0xf]  ;;  %v4436_v30 = vld [vmem:[%s5161_s2 + $0xf4] sm:$0xf0]  ;;  %v5680_v33 = vor.u32 %v4435_v26, %v3683_v25 }
 0x105   : > { %2287 = vmatpush.bf16.msrb.mxu3 %v4288_v60  ;;  %v4434_v31 = vld [vmem:[%s5161_s2 + $0xec] sm:$0xf]  ;;  %v3693_v32 = vld [vmem:[%s5161_s2 + $0xf8] sm:$0xf0]  ;;  %v5682_v34 = vor.u32 %v4433_v27, %v3685_v28  ;;  %v5684_v35 = vor.u32 %v4436_v30, %v3691_v29  ;;  %v4105_v42 = vld [vmem:[%s5168_s21 + $0x2bc] sm:$0xf0] }
 0x106   : > { %v5686_v36 = vor.u32 %v4434_v31, %v3693_v32  ;;  %v4538_v41 = vld [vmem:[%s5168_s21 + $0x2ac] sm:$0xf]  ;;  %v4265_v50 = vld [vmem:[%s5168_s21 + $0x3fc] sm:$0xf0]  ;;  %v4439_v53 = vld [vmem:[%s5161_s2 + $0x10c] sm:$0xf0] }
 0x107   : > { %v4578_v43 = vld [vmem:[%s5168_s21 + $0x3ec] sm:$0xf]  ;;  %v4108_v44 = vor.u32 %v4538_v41, %v4105_v42  ;;  %v3699_v52 = vld [vmem:[%s5161_s2 + $0x100] sm:$0xf]  ;;  %v4437_v56 = vld [vmem:[%s5161_s2 + $0x104] sm:$0xf] }
 0x108   : > { %v4268_v51 = vor.u32 %v4578_v43, %v4265_v50  ;;  %v3701_v57 = vld [vmem:[%s5161_s2 + $0x110] sm:$0xf0]  ;;  %v3707_v59 = vld [vmem:[%s5161_s2 + $0x108] sm:$0xf]  ;;  %v4440_v60 = vld [vmem:[%s5161_s2 + $0x114] sm:$0xf0]  ;;  %v5707_v6 = vor.u32 %v4439_v53, %v3699_v52 }
 0x109   : > { %2219 = vmatpush.bf16.msrb.mxu2 %v4108_v44  ;;  %v4438_v61 = vld [vmem:[%s5161_s2 + $0x10c] sm:$0xf]  ;;  %v3709_v62 = vld [vmem:[%s5161_s2 + $0x118] sm:$0xf0]  ;;  %v3785_v0 = vld [vmem:[%s5168_s21 + $0x3c] sm:$0xf0]  ;;  %v5710_v10 = vor.u32 %v4437_v56, %v3701_v57  ;;  %v5712_v11 = vor.u32 %v4440_v60, %v3707_v59 }
 0x10a   : > { %2288 = vmatpush.bf16.msrb.mxu3 %v4268_v51  ;;  %v4458_v63 = vld [vmem:[%s5168_s21 + $0x2c] sm:$0xf]  ;;  %v3945_v8 = vld [vmem:[%s5168_s21 + $0x17c] sm:$0xf0]  ;;  %v5714_v26 = vor.u32 %v4438_v61, %v3709_v62  ;;  %v4443_v44 = vld [vmem:[%s5161_s2 + $0x12c] sm:$0xf0] }
 0x10b   : > { %v4498_v5 = vld [vmem:[%s5168_s21 + $0x16c] sm:$0xf]  ;;  %v3788_v7 = vor.u32 %v4458_v63, %v3785_v0  ;;  %v367_v32 = vld [vmem:[%s5177_s19] sm:$0xff]  ;;  %v3717_v52 = vld [vmem:[%s5161_s2 + $0x130] sm:$0xf0]  ;;  %s6546_s17 = sld [smem:[#allocation12_spill]] }
 0x10c   : > { %v3948_v12 = vor.u32 %v4498_v5, %v3945_v8  ;;  %v3715_v43 = vld [vmem:[%s5161_s2 + $0x120] sm:$0xf]  ;;  %v4441_v51 = vld [vmem:[%s5161_s2 + $0x124] sm:$0xf]  ;;  %v3723_v53 = vld [vmem:[%s5161_s2 + $0x128] sm:$0xf] }
 0x10d   : > { %1817 = vmatmul.bf16.gmra.mxu0 %v5556_v37  ;;  %v4444_v56 = vld [vmem:[%s5161_s2 + $0x134] sm:$0xf0]  ;;  %v4442_v57 = vld [vmem:[%s5161_s2 + $0x12c] sm:$0xf]  ;;  %v3725_v59 = vld [vmem:[%s5161_s2 + $0x138] sm:$0xf0]  ;;  %v5733_v5 = vor.u32 %v4443_v44, %v3715_v43 }
 0x10e   : > { %1886 = vmatmul.bf16.gmra.mxu1 %v5558_v38  ;;  %2081 = vmatpush.bf16.msrb.mxu0 %v3788_v7  ;;  %v4533_v61 = vld [vmem:[%s5168_s21 + $0x284] sm:$0xf]  ;;  %v4085_v62 = vld [vmem:[%s5168_s21 + $0x294] sm:$0xf0]  ;;  %s6547_s3 = sld [smem:[#allocation26_spill]]  ;;  %s3435_s23 = sshll.u32 %s5177_s19, 4  ;;  %s3436_s23 = int_to_ptr.vmem [resolvable:$true] %s3435_s23 }
 0x10f   : > { %1955 = vmatmul.bf16.gmra.mxu2 %v5560_v39  ;;  %2150 = vmatpush.bf16.msrb.mxu1 %v3948_v12  ;;  %v4573_v63 = vld [vmem:[%s5168_s21 + $0x3c4] sm:$0xf]  ;;  %v4088_v7 = vor.u32 %v4533_v61, %v4085_v62  ;;  %v4245_v8 = vld [vmem:[%s5168_s21 + $0x3d4] sm:$0xf0]  ;;  %v377_v62 = vld [vmem:[%s5177_s19 + $0x50] sm:$0xff]  ;;  %s3420_s4 = scalar_lea.sflag [#allocation4], %s234_s20 }
 0x110   : > { %2024 = vmatmul.bf16.gmra.mxu3 %v5562_v40  ;;  %v4453_v44 = vld [vmem:[%s5168_s21 + $0x4] sm:$0xf] }
 0x111   : > { %2220 = vmatpush.bf16.msrb.mxu2 %v4088_v7  ;;  %s4638_s18 = smul.u32 960, %s6546_s17 }
 0x114   : > { %s3434_s28 = scalar_lea.hbm %s6547_s3, %s4638_s18  ;;  %s4840_s15 = scalar_lea.hbm %s6547_s3, 1920 }
 0x115   : > { %s3437_s27 = sshll.u32 %s3434_s28, 4  ;;  %s3438_s27 = int_to_ptr.hbm [resolvable:$true] %s3437_s27 }
 0x116   : > { %s4834_s24 = sshra.s32 %s3438_s27, 4  ;;  %s4835_s24 = int_to_ptr.hbm [resolvable:$true] %s4834_s24 }
 0x117   : > { %s4836_s7 = scalar_lea.hbm %s4835_s24, 960  ;;  %p4841_p7 = scmp.lt.s32.totalorder %s4835_s24, %s6547_s3 }
 0x118   : > { %p4837_p1 = scmp.ne.s32.totalorder %s4835_s24, %s4836_s7  ;;  %p4842_p8 = scmp.lt.s32.totalorder %s4840_s15, %s4836_s7 }
 0x11a   : > { %p4838_p3 = pnand %p4837_p1, %p5143_p12  ;;  %p4843_p9 = por %p4842_p8, %p4841_p7 }
 0x11c   : > { %p4839_p4 = pneg %p4838_p3 }
 0x11d   : > { %1822 = vmatmul.bf16.gmra.mxu0 %v5584_v1 }
 0x11e   : > { %1891 = vmatmul.bf16.gmra.mxu1 %v5586_v2  ;;  %p4844_p10 = pnand %p4843_p9, %p4839_p4 }
 0x11f   : > { %1960 = vmatmul.bf16.gmra.mxu2 %v5588_v3 }
 0x120   : > { %2029 = vmatmul.bf16.gmra.mxu3 %v5590_v4 }
 0x12d   : > { %1827 = vmatmul.bf16.gmra.mxu0 %v5604_v17 }
 0x12e   : > { %1896 = vmatmul.bf16.gmra.mxu1 %v5606_v18 }
 0x12f   : > { %1965 = vmatmul.bf16.gmra.mxu2 %v5608_v19 }
 0x130   : > { %2034 = vmatmul.bf16.gmra.mxu3 %v5610_v20 }
 0x13d   : > { %1832 = vmatmul.bf16.gmra.mxu0 %v5632_v45 }
 0x13e   : > { %1901 = vmatmul.bf16.gmra.mxu1 %v5634_v46 }
 0x13f   : > { %1970 = vmatmul.bf16.gmra.mxu2 %v5636_v47 }
 0x140   : > { %2039 = vmatmul.bf16.gmra.mxu3 %v5638_v48 }
 0x14d   : > { %1837 = vmatmul.bf16.gmra.mxu0 %v5660_v21 }
 0x14e   : > { %1906 = vmatmul.bf16.gmra.mxu1 %v5662_v22 }
 0x14f   : > { %1975 = vmatmul.bf16.gmra.mxu2 %v5664_v23 }
 0x150   : > { %2044 = vmatmul.bf16.gmra.mxu3 %v5666_v24 }
 0x15d   : > { %1842 = vmatmul.bf16.gmra.mxu0 %v5680_v33 }
 0x15e   : > { %1911 = vmatmul.bf16.gmra.mxu1 %v5682_v34 }
 0x15f   : > { %1980 = vmatmul.bf16.gmra.mxu2 %v5684_v35 }
 0x160   : > { %2049 = vmatmul.bf16.gmra.mxu3 %v5686_v36 }
 0x16a   : > { %v1808_v9 = vpop.f32.mrf.mxu0 }
 0x16b   : > { %v1877_v25 = vpop.f32.mrf.mxu1 }
 0x16c   : > { %v1878_v27 = vadd.f32 %v1877_v25, %v1808_v9 }
 0x16d   : > { %1847 = vmatmul.bf16.gmra.mxu0 %v5707_v6 }
 0x16e   : > { %1916 = vmatmul.bf16.gmra.mxu1 %v5710_v10 }
 0x16f   : > { %1985 = vmatmul.bf16.gmra.mxu2 %v5712_v11 }
 0x170   : > { %2054 = vmatmul.bf16.gmra.mxu3 %v5714_v26 }
 0x172   : > { %v1946_v28 = vpop.f32.mrf.mxu2  ;;  %v1810_v31 = vpop.f32.mrf.mxu0 }
 0x173   : > { %v1947_v29 = vadd.f32 %v1946_v28, %v1878_v27  ;;  %v2015_v30 = vpop.f32.mrf.mxu3  ;;  %v1879_v41 = vpop.f32.mrf.mxu1  ;;  %v5736_v27 = vor.u32 %v4441_v51, %v3717_v52  ;;  %v5738_v28 = vor.u32 %v4444_v56, %v3723_v53  ;;  %v4493_v53 = vld [vmem:[%s5168_s21 + $0x144] sm:$0xf]  ;;  %v3925_v56 = vld [vmem:[%s5168_s21 + $0x154] sm:$0xf0] }
 0x174   : > { %v1880_v60 = vadd.f32 %v1879_v41, %v1810_v31  ;;  %v3928_v61 = vor.u32 %v4493_v53, %v3925_v56 }
 0x175   : > { %v2016_v42 = vadd.f32 %v2015_v30, %v1947_v29  ;;  %6522 = vst [vmem:[#allocation19_spill] sm:$0xff] %v5738_v28  ;;  %v4248_v29 = vor.u32 %v4573_v63, %v4245_v8  ;;  %v372_v30 = vld [vmem:[%s5177_s19 + $0x28] sm:$0xff]  ;;  %v3731_v8 = vld [vmem:[%s5161_s2 + $0x140] sm:$0xf] }
 0x176   : > { %2151 = vmatpush.bf16.msrb.mxu1 %v3928_v61 }
 0x177   : > { %v3179_v50 = vadd.f32 %v2016_v42, %v367_v32  ;;  %v5741_v32 = vor.u32 %v4442_v57, %v3725_v59  ;;  %2289 = vmatpush.bf16.msrb.mxu3 %v4248_v29  ;;  %v3739_v29 = vld [vmem:[%s5161_s2 + $0x148] sm:$0xf] }
 0x179   : > { %3299 = vst [vmem:[%s5177_s19] sm:$0xff] %v3179_v50  ;;  %v3765_v50 = vld [vmem:[%s5168_s21 + $0x14] sm:$0xf0] }
 0x17a   : > { %v1948_v0 = vpop.f32.mrf.mxu2  ;;  %v1813_v25 = vpop.f32.mrf.mxu0  ;;  %6523 = vst [vmem:[#allocation20_spill] sm:$0xff] %v5741_v32  ;;  %v3768_v52 = vor.u32 %v4453_v44, %v3765_v50 }
 0x17b   : > { %v1949_v9 = vadd.f32 %v1948_v0, %v1880_v60  ;;  %v2017_v12 = vpop.f32.mrf.mxu3  ;;  %v1882_v31 = vpop.f32.mrf.mxu1 }
 0x17c   : > { %v1883_v43 = vadd.f32 %v1882_v31, %v1813_v25  ;;  %2082 = vmatpush.bf16.msrb.mxu0 %v3768_v52  ;;  %v3733_v25 = vld [vmem:[%s5161_s2 + $0x150] sm:$0xf0] }
 0x17d   : > { %v2018_v41 = vadd.f32 %v2017_v12, %v1949_v9  ;;  %1852 = vmatmul.bf16.gmra.mxu0 %v5733_v5  ;;  %v4447_v9 = vld [vmem:[%s5161_s2 + $0x14c] sm:$0xf0]  ;;  %v4445_v12 = vld [vmem:[%s5161_s2 + $0x144] sm:$0xf] }
 0x17e   : > { %1921 = vmatmul.bf16.gmra.mxu1 %v5736_v27  ;;  %v5762_v44 = vor.u32 %v4447_v9, %v3731_v8  ;;  %v5764_v53 = vor.u32 %v4445_v12, %v3733_v25  ;;  %v4391_v12 = vld [vmem:[%s5168_s21 + $0x4e0] sm:$0xf]  ;;  %v4611_v25 = vld [vmem:[%s5168_s21 + $0x4f0] sm:$0xf0] }
 0x17f   : > { %v3184_v42 = vadd.f32 %v2018_v41, %v372_v30  ;;  %1990 = vmatmul.bf16.gmra.mxu2 %v5738_v28  ;;  %v4448_v30 = vld [vmem:[%s5161_s2 + $0x154] sm:$0xf0]  ;;  %v4446_v41 = vld [vmem:[%s5161_s2 + $0x14c] sm:$0xf] }
 0x180   : > { %2059 = vmatmul.bf16.gmra.mxu3 %v5741_v32  ;;  %6524 = vst [vmem:[#allocation21_spill] sm:$0xff] %v5762_v44  ;;  %v5766_v56 = vor.u32 %v4448_v30, %v3739_v29  ;;  %v392_v28 = vld [vmem:[%s5177_s19 + $0xc8] sm:$0xff] }
 0x181   : > { %3304 = vst [vmem:[%s5177_s19 + $0x28] sm:$0xff] %v3184_v42  ;;  %v3741_v42 = vld [vmem:[%s5161_s2 + $0x158] sm:$0xf0] }
 0x182   : > { %v1951_v51 = vpop.f32.mrf.mxu2  ;;  %v1815_v60 = vpop.f32.mrf.mxu0  ;;  %6525 = vst [vmem:[#allocation22_spill] sm:$0xff] %v5764_v53 }
 0x183   : > { %v1952_v57 = vadd.f32 %v1951_v51, %v1883_v43  ;;  %v2020_v59 = vpop.f32.mrf.mxu3  ;;  %v1884_v63 = vpop.f32.mrf.mxu1  ;;  %6526 = vst [vmem:[#allocation23_spill] sm:$0xff] %v5766_v56 }
 0x184   : > { %v1885_v31 = vadd.f32 %v1884_v63, %v1815_v60  ;;  %v5769_v60 = vor.u32 %v4446_v41, %v3741_v42  ;;  %v4392_v41 = vor.u32 %v4611_v25, %v4391_v12  ;;  %v387_v42 = vld [vmem:[%s5177_s19 + $0xa0] sm:$0xff]  ;;  %v4491_v25 = vld [vmem:[%s5168_s21 + $0x130] sm:$0xf0] }
 0x185   : > { %v2021_v0 = vadd.f32 %v2020_v59, %v1952_v57  ;;  %v382_v57 = vld [vmem:[%s5177_s19 + $0x78] sm:$0xff]  ;;  %v3911_v12 = vld [vmem:[%s5168_s21 + $0x120] sm:$0xf] }
 0x186   : > { %6527 = vst [vmem:[#allocation24_spill] sm:$0xff] %v5769_v60  ;;  %2558 = vmatpush.bf16.msra.mxu3 %v4392_v41  ;;  %v4531_v41 = vld [vmem:[%s5168_s21 + $0x270] sm:$0xf0] }
 0x187   : > { %v3189_v7 = vadd.f32 %v2021_v0, %v377_v62  ;;  %v4231_v0 = vld [vmem:[%s5168_s21 + $0x3a0] sm:$0xf] }
 0x189   : > { %3309 = vst [vmem:[%s5177_s19 + $0x50] sm:$0xff] %v3189_v7  ;;  %v4571_v7 = vld [vmem:[%s5168_s21 + $0x3b0] sm:$0xf0] }
 0x18a   : > { %v1953_v43 = vpop.f32.mrf.mxu2  ;;  %v1818_v52 = vpop.f32.mrf.mxu0  ;;  %v4232_v9 = vor.u32 %v4571_v7, %v4231_v0  ;;  %v4450_v0 = vld [vmem:[%s5161_s2 + $0x16c] sm:$0xf]  ;;  %v3757_v7 = vld [vmem:[%s5161_s2 + $0x178] sm:$0xf0] }
 0x18b   : > { %v1954_v50 = vadd.f32 %v1953_v43, %v1885_v31  ;;  %v2022_v51 = vpop.f32.mrf.mxu3  ;;  %v1887_v59 = vpop.f32.mrf.mxu1 }
 0x18c   : > { %v1888_v63 = vadd.f32 %v1887_v59, %v1818_v52  ;;  %2489 = vmatpush.bf16.msra.mxu2 %v4232_v9  ;;  %v4451_v52 = vld [vmem:[%s5161_s2 + $0x16c] sm:$0xf0]  ;;  %v4449_v59 = vld [vmem:[%s5161_s2 + $0x164] sm:$0xf] }
 0x18d   : > { %v2023_v61 = vadd.f32 %v2022_v51, %v1954_v50  ;;  %1857 = vmatmul.bf16.gmra.mxu0 %v5762_v44  ;;  %v3747_v51 = vld [vmem:[%s5161_s2 + $0x160] sm:$0xf] }
 0x18e   : > { %1926 = vmatmul.bf16.gmra.mxu1 %v5764_v53  ;;  %v5792_v9 = vor.u32 %v4451_v52, %v3747_v51 }
 0x18f   : > { %v3194_v62 = vadd.f32 %v2023_v61, %v382_v57  ;;  %1995 = vmatmul.bf16.gmra.mxu2 %v5766_v56  ;;  %v3749_v61 = vld [vmem:[%s5161_s2 + $0x170] sm:$0xf0] }
 0x190   : > { %2064 = vmatmul.bf16.gmra.mxu3 %v5769_v60 }
 0x191   : > { %3314 = vst [vmem:[%s5177_s19 + $0x78] sm:$0xff] %v3194_v62  ;;  %v3755_v62 = vld [vmem:[%s5161_s2 + $0x168] sm:$0xf] }
 0x192   : > { %v1956_v8 = vpop.f32.mrf.mxu2  ;;  %v1820_v31 = vpop.f32.mrf.mxu0 }
 0x193   : > { %v1957_v29 = vadd.f32 %v1956_v8, %v1888_v63  ;;  %v2025_v30 = vpop.f32.mrf.mxu3  ;;  %v1889_v43 = vpop.f32.mrf.mxu1  ;;  %v4452_v63 = vld [vmem:[%s5161_s2 + $0x174] sm:$0xf0] }
 0x194   : > { %v1890_v8 = vadd.f32 %v1889_v43, %v1820_v31  ;;  %v5798_v44 = vor.u32 %v4452_v63, %v3755_v62  ;;  %v5801_v31 = vor.u32 %v4450_v0, %v3757_v7  ;;  %v4211_v0 = vld [vmem:[%s5168_s21 + $0x378] sm:$0xf]  ;;  %v4566_v7 = vld [vmem:[%s5168_s21 + $0x388] sm:$0xf0] }
 0x195   : > { %v2026_v50 = vadd.f32 %v2025_v30, %v1957_v29  ;;  %v3912_v29 = vor.u32 %v4491_v25, %v3911_v12  ;;  %v4071_v30 = vld [vmem:[%s5168_s21 + $0x260] sm:$0xf]  ;;  %v4212_v12 = vor.u32 %v4566_v7, %v4211_v0  ;;  %v4371_v25 = vld [vmem:[%s5168_s21 + $0x4b8] sm:$0xf] }
 0x196   : > { %v4072_v32 = vor.u32 %v4531_v41, %v4071_v30 }
 0x197   : > { %v3199_v57 = vadd.f32 %v2026_v50, %v387_v42  ;;  %v5796_v50 = vor.u32 %v4449_v59, %v3749_v61  ;;  %2351 = vmatpush.bf16.msra.mxu0 %v3912_v29  ;;  %v4606_v29 = vld [vmem:[%s5168_s21 + $0x4c8] sm:$0xf0]  ;;  %2490 = vmatpush.bf16.msra.mxu2 %v4212_v12  ;;  %v407_v12 = vld [vmem:[%s5177_s19 + $0x140] sm:$0xff] }
 0x198   : > { %2420 = vmatpush.bf16.msra.mxu1 %v4072_v32 }
 0x199   : > { %3319 = vst [vmem:[%s5177_s19 + $0xa0] sm:$0xff] %v3199_v57 }
 0x19a   : > { %v1958_v60 = vpop.f32.mrf.mxu2  ;;  %v1823_v42 = vpop.f32.mrf.mxu0 }
 0x19b   : > { %v1959_v56 = vadd.f32 %v1958_v60, %v1890_v8  ;;  %v2027_v53 = vpop.f32.mrf.mxu3  ;;  %v1892_v57 = vpop.f32.mrf.mxu1 }
 0x19c   : > { %v1893_v51 = vadd.f32 %v1892_v57, %v1823_v42  ;;  %v4372_v57 = vor.u32 %v4606_v29, %v4371_v25 }
 0x19d   : > { %v2028_v43 = vadd.f32 %v2027_v53, %v1959_v56  ;;  %1862 = vmatmul.bf16.gmra.mxu0 %v5792_v9  ;;  %v397_v56 = vld [vmem:[%s5177_s19 + $0xf0] sm:$0xff] }
 0x19e   : > { %1931 = vmatmul.bf16.gmra.mxu1 %v5796_v50  ;;  %2559 = vmatpush.bf16.msra.mxu3 %v4372_v57 }
 0x19f   : > { %v3204_v60 = vadd.f32 %v2028_v43, %v392_v28  ;;  %2000 = vmatmul.bf16.gmra.mxu2 %v5798_v44  ;;  %v402_v43 = vld [vmem:[%s5177_s19 + $0x118] sm:$0xff] }
 0x1a0   : > { %2069 = vmatmul.bf16.gmra.mxu3 %v5801_v31 }
 0x1a1   : > { %3324 = vst [vmem:[%s5177_s19 + $0xc8] sm:$0xff] %v3204_v60 }
 0x1a2   : > { %v1961_v52 = vpop.f32.mrf.mxu2  ;;  %v1825_v32 = vpop.f32.mrf.mxu0 }
 0x1a3   : > { %v1962_v59 = vadd.f32 %v1961_v52, %v1893_v51  ;;  %v2030_v53 = vpop.f32.mrf.mxu3  ;;  %v1894_v61 = vpop.f32.mrf.mxu1 }
 0x1a4   : > { %v1895_v63 = vadd.f32 %v1894_v61, %v1825_v32  ;;  %v4486_v32 = vld [vmem:[%s5168_s21 + $0x108] sm:$0xf0] }
 0x1a5   : > { %v2031_v28 = vadd.f32 %v2030_v53, %v1962_v59  ;;  %v3891_v53 = vld [vmem:[%s5168_s21 + $0xf8] sm:$0xf] }
 0x1a6   : > { %v3892_v61 = vor.u32 %v4486_v32, %v3891_v53 }
 0x1a7   : > { %v3209_v62 = vadd.f32 %v2031_v28, %v397_v56  ;;  %v4051_v28 = vld [vmem:[%s5168_s21 + $0x238] sm:$0xf] }
 0x1a8   : > { %2352 = vmatpush.bf16.msra.mxu0 %v3892_v61  ;;  %v4561_v61 = vld [vmem:[%s5168_s21 + $0x360] sm:$0xf0] }
 0x1a9   : > { %3329 = vst [vmem:[%s5177_s19 + $0xf0] sm:$0xff] %v3209_v62  ;;  %v4526_v62 = vld [vmem:[%s5168_s21 + $0x248] sm:$0xf0] }
 0x1aa   : > { %v1963_v8 = vpop.f32.mrf.mxu2  ;;  %v1828_v42 = vpop.f32.mrf.mxu0 }
 0x1ab   : > { %v1964_v30 = vadd.f32 %v1963_v8, %v1895_v63  ;;  %v2032_v41 = vpop.f32.mrf.mxu3  ;;  %v1897_v60 = vpop.f32.mrf.mxu1  ;;  %v4052_v8 = vor.u32 %v4526_v62, %v4051_v28 }
 0x1ac   : > { %v1898_v59 = vadd.f32 %v1897_v60, %v1828_v42 }
 0x1ad   : > { %v2033_v51 = vadd.f32 %v2032_v41, %v1964_v30  ;;  %2083 = vmatmul.bf16.vlgmr.msrb.gmra.mxu0 %v5499_v49  ;;  %2421 = vmatpush.bf16.msra.mxu1 %v4052_v8 }
 0x1ae   : > { %2152 = vmatmul.bf16.vlgmr.msrb.gmra.mxu1 %v5504_v54 }
 0x1af   : > { %v3214_v52 = vadd.f32 %v2033_v51, %v402_v43  ;;  %2221 = vmatmul.bf16.vlgmr.msrb.gmra.mxu2 %v5506_v55  ;;  %v412_v51 = vld [vmem:[%s5177_s19 + $0x168] sm:$0xff] }
 0x1b0   : > { %2290 = vmatmul.bf16.vlgmr.msrb.gmra.mxu3 %v5510_v58 }
 0x1b1   : > { %3334 = vst [vmem:[%s5177_s19 + $0x118] sm:$0xff] %v3214_v52 }
 0x1b2   : > { %v1966_v56 = vpop.f32.mrf.mxu2  ;;  %v1830_v7 = vpop.f32.mrf.mxu0 }
 0x1b3   : > { %v1967_v63 = vadd.f32 %v1966_v56, %v1898_v59  ;;  %v2035_v0 = vpop.f32.mrf.mxu3  ;;  %v1899_v25 = vpop.f32.mrf.mxu1  ;;  %v4191_v56 = vld [vmem:[%s5168_s21 + $0x350] sm:$0xf] }
 0x1b4   : > { %v1900_v41 = vadd.f32 %v1899_v25, %v1830_v7  ;;  %v4192_v62 = vor.u32 %v4561_v61, %v4191_v56 }
 0x1b5   : > { %v2036_v29 = vadd.f32 %v2035_v0, %v1967_v63  ;;  %v4351_v63 = vld [vmem:[%s5168_s21 + $0x490] sm:$0xf]  ;;  %v4601_v0 = vld [vmem:[%s5168_s21 + $0x4a0] sm:$0xf0] }
 0x1b6   : > { %v4352_v25 = vor.u32 %v4601_v0, %v4351_v63  ;;  %2491 = vmatpush.bf16.msra.mxu2 %v4192_v62  ;;  %v422_v63 = vld [vmem:[%s5177_s19 + $0x1b8] sm:$0xff] }
 0x1b7   : > { %v3219_v30 = vadd.f32 %v2036_v29, %v407_v12  ;;  %v417_v29 = vld [vmem:[%s5177_s19 + $0x190] sm:$0xff] }
 0x1b8   : > { %2560 = vmatpush.bf16.msra.mxu3 %v4352_v25 }
 0x1b9   : > { %3339 = vst [vmem:[%s5177_s19 + $0x140] sm:$0xff] %v3219_v30 }
 0x1ba   : > { %v1968_v42 = vpop.f32.mrf.mxu2  ;;  %v1833_v60 = vpop.f32.mrf.mxu0 }
 0x1bb   : > { %v1969_v57 = vadd.f32 %v1968_v42, %v1900_v41  ;;  %v2037_v43 = vpop.f32.mrf.mxu3  ;;  %v1902_v52 = vpop.f32.mrf.mxu1 }
 0x1bc   : > { %v1903_v32 = vadd.f32 %v1902_v52, %v1833_v60  ;;  %v4481_v60 = vld [vmem:[%s5168_s21 + $0xe0] sm:$0xf0] }
 0x1bd   : > { %v2038_v59 = vadd.f32 %v2037_v43, %v1969_v57  ;;  %2088 = vmatmul.bf16.gmra.mxu0 %v5528_v13  ;;  %v3871_v43 = vld [vmem:[%s5168_s21 + $0xd0] sm:$0xf] }
 0x1be   : > { %2157 = vmatmul.bf16.gmra.mxu1 %v5530_v14  ;;  %v3872_v52 = vor.u32 %v4481_v60, %v3871_v43 }
 0x1bf   : > { %v3224_v53 = vadd.f32 %v2038_v59, %v412_v51  ;;  %2226 = vmatmul.bf16.gmra.mxu2 %v5532_v15  ;;  %v4031_v59 = vld [vmem:[%s5168_s21 + $0x210] sm:$0xf] }
 0x1c0   : > { %2295 = vmatmul.bf16.gmra.mxu3 %v5534_v16  ;;  %2353 = vmatpush.bf16.msra.mxu0 %v3872_v52  ;;  %v4556_v52 = vld [vmem:[%s5168_s21 + $0x338] sm:$0xf0] }
 0x1c1   : > { %3344 = vst [vmem:[%s5177_s19 + $0x168] sm:$0xff] %v3224_v53  ;;  %v4521_v53 = vld [vmem:[%s5168_s21 + $0x220] sm:$0xf0] }
 0x1c2   : > { %v1971_v28 = vpop.f32.mrf.mxu2  ;;  %v1835_v12 = vpop.f32.mrf.mxu0 }
 0x1c3   : > { %v1972_v7 = vadd.f32 %v1971_v28, %v1903_v32  ;;  %v2040_v8 = vpop.f32.mrf.mxu3  ;;  %v1904_v30 = vpop.f32.mrf.mxu1  ;;  %v4032_v28 = vor.u32 %v4521_v53, %v4031_v59 }
 0x1c4   : > { %v1905_v57 = vadd.f32 %v1904_v30, %v1835_v12 }
 0x1c5   : > { %v2041_v41 = vadd.f32 %v2040_v8, %v1972_v7  ;;  %2422 = vmatpush.bf16.msra.mxu1 %v4032_v28 }
 0x1c7   : > { %v3229_v42 = vadd.f32 %v2041_v41, %v417_v29  ;;  %v427_v41 = vld [vmem:[%s5177_s19 + $0x1e0] sm:$0xff] }
 0x1c9   : > { %3349 = vst [vmem:[%s5177_s19 + $0x190] sm:$0xff] %v3229_v42 }
 0x1ca   : > { %v1973_v51 = vpop.f32.mrf.mxu2  ;;  %v1838_v61 = vpop.f32.mrf.mxu0 }
 0x1cb   : > { %v1974_v32 = vadd.f32 %v1973_v51, %v1905_v57  ;;  %v2042_v56 = vpop.f32.mrf.mxu3  ;;  %v1907_v62 = vpop.f32.mrf.mxu1  ;;  %v4171_v51 = vld [vmem:[%s5168_s21 + $0x328] sm:$0xf] }
 0x1cc   : > { %v1908_v8 = vadd.f32 %v1907_v62, %v1838_v61  ;;  %v4172_v53 = vor.u32 %v4556_v52, %v4171_v51 }
 0x1cd   : > { %v2043_v0 = vadd.f32 %v2042_v56, %v1974_v32  ;;  %2093 = vmatmul.bf16.gmra.mxu0 %v5556_v37  ;;  %v4331_v32 = vld [vmem:[%s5168_s21 + $0x468] sm:$0xf]  ;;  %v4596_v56 = vld [vmem:[%s5168_s21 + $0x478] sm:$0xf0] }
 0x1ce   : > { %2162 = vmatmul.bf16.gmra.mxu1 %v5558_v38  ;;  %v4332_v62 = vor.u32 %v4596_v56, %v4331_v32  ;;  %2492 = vmatpush.bf16.msra.mxu2 %v4172_v53  ;;  %v437_v53 = vld [vmem:[%s5177_s19 + $0x230] sm:$0xff] }
 0x1cf   : > { %v3234_v7 = vadd.f32 %v2043_v0, %v422_v63  ;;  %2231 = vmatmul.bf16.gmra.mxu2 %v5560_v39  ;;  %v432_v0 = vld [vmem:[%s5177_s19 + $0x208] sm:$0xff] }
 0x1d0   : > { %2300 = vmatmul.bf16.gmra.mxu3 %v5562_v40 }
 0x1d1   : > { %3354 = vst [vmem:[%s5177_s19 + $0x1b8] sm:$0xff] %v3234_v7  ;;  %2561 = vmatpush.bf16.msra.mxu3 %v4332_v62 }
 0x1d2   : > { %v1976_v12 = vpop.f32.mrf.mxu2  ;;  %v1840_v30 = vpop.f32.mrf.mxu0 }
 0x1d3   : > { %v1977_v25 = vadd.f32 %v1976_v12, %v1908_v8  ;;  %v2045_v29 = vpop.f32.mrf.mxu3  ;;  %v1909_v42 = vpop.f32.mrf.mxu1 }
 0x1d4   : > { %v1910_v60 = vadd.f32 %v1909_v42, %v1840_v30  ;;  %v4476_v30 = vld [vmem:[%s5168_s21 + $0xb8] sm:$0xf0] }
 0x1d5   : > { %v2046_v57 = vadd.f32 %v2045_v29, %v1977_v25  ;;  %v3851_v29 = vld [vmem:[%s5168_s21 + $0xa8] sm:$0xf] }
 0x1d6   : > { %v3852_v42 = vor.u32 %v4476_v30, %v3851_v29 }
 0x1d7   : > { %v3239_v43 = vadd.f32 %v2046_v57, %v427_v41  ;;  %v4011_v57 = vld [vmem:[%s5168_s21 + $0x1e8] sm:$0xf] }
 0x1d8   : > { %2354 = vmatpush.bf16.msra.mxu0 %v3852_v42  ;;  %v4551_v42 = vld [vmem:[%s5168_s21 + $0x310] sm:$0xf0] }
 0x1d9   : > { %3359 = vst [vmem:[%s5177_s19 + $0x1e0] sm:$0xff] %v3239_v43  ;;  %v4516_v43 = vld [vmem:[%s5168_s21 + $0x1f8] sm:$0xf0] }
 0x1da   : > { %v1978_v59 = vpop.f32.mrf.mxu2  ;;  %v1843_v63 = vpop.f32.mrf.mxu0 }
 0x1db   : > { %v1979_v61 = vadd.f32 %v1978_v59, %v1910_v60  ;;  %v2047_v28 = vpop.f32.mrf.mxu3  ;;  %v1912_v7 = vpop.f32.mrf.mxu1  ;;  %v4012_v59 = vor.u32 %v4516_v43, %v4011_v57 }
 0x1dc   : > { %v1913_v25 = vadd.f32 %v1912_v7, %v1843_v63 }
 0x1dd   : > { %v2048_v8 = vadd.f32 %v2047_v28, %v1979_v61  ;;  %2098 = vmatmul.bf16.gmra.mxu0 %v5584_v1  ;;  %2423 = vmatpush.bf16.msra.mxu1 %v4012_v59 }
 0x1de   : > { %2167 = vmatmul.bf16.gmra.mxu1 %v5586_v2 }
 0x1df   : > { %v3244_v12 = vadd.f32 %v2048_v8, %v432_v0  ;;  %2236 = vmatmul.bf16.gmra.mxu2 %v5588_v3  ;;  %v442_v8 = vld [vmem:[%s5177_s19 + $0x258] sm:$0xff] }
 0x1e0   : > { %2305 = vmatmul.bf16.gmra.mxu3 %v5590_v4 }
 0x1e1   : > { %3364 = vst [vmem:[%s5177_s19 + $0x208] sm:$0xff] %v3244_v12 }
 0x1e2   : > { %v1981_v41 = vpop.f32.mrf.mxu2  ;;  %v1845_v52 = vpop.f32.mrf.mxu0 }
 0x1e3   : > { %v1982_v60 = vadd.f32 %v1981_v41, %v1913_v25  ;;  %v2050_v51 = vpop.f32.mrf.mxu3  ;;  %v1914_v32 = vpop.f32.mrf.mxu1  ;;  %v4151_v41 = vld [vmem:[%s5168_s21 + $0x300] sm:$0xf] }
 0x1e4   : > { %v1915_v28 = vadd.f32 %v1914_v32, %v1845_v52  ;;  %v4152_v43 = vor.u32 %v4551_v42, %v4151_v41 }
 0x1e5   : > { %v2051_v56 = vadd.f32 %v2050_v51, %v1982_v60  ;;  %v4311_v60 = vld [vmem:[%s5168_s21 + $0x440] sm:$0xf]  ;;  %v4591_v51 = vld [vmem:[%s5168_s21 + $0x450] sm:$0xf0] }
 0x1e6   : > { %v4312_v32 = vor.u32 %v4591_v51, %v4311_v60  ;;  %2493 = vmatpush.bf16.msra.mxu2 %v4152_v43  ;;  %v452_v60 = vld [vmem:[%s5177_s19 + $0x2a8] sm:$0xff] }
 0x1e7   : > { %v3249_v61 = vadd.f32 %v2051_v56, %v437_v53  ;;  %v447_v56 = vld [vmem:[%s5177_s19 + $0x280] sm:$0xff] }
 0x1e8   : > { %2562 = vmatpush.bf16.msra.mxu3 %v4312_v32 }
 0x1e9   : > { %3369 = vst [vmem:[%s5177_s19 + $0x230] sm:$0xff] %v3249_v61 }
 0x1ea   : > { %v1983_v63 = vpop.f32.mrf.mxu2  ;;  %v1848_v7 = vpop.f32.mrf.mxu0 }
 0x1eb   : > { %v1984_v62 = vadd.f32 %v1983_v63, %v1915_v28  ;;  %v2052_v0 = vpop.f32.mrf.mxu3  ;;  %v1917_v12 = vpop.f32.mrf.mxu1 }
 0x1ec   : > { %v1918_v30 = vadd.f32 %v1917_v12, %v1848_v7  ;;  %v4471_v7 = vld [vmem:[%s5168_s21 + $0x90] sm:$0xf0] }
 0x1ed   : > { %v2053_v25 = vadd.f32 %v2052_v0, %v1984_v62  ;;  %2103 = vmatmul.bf16.gmra.mxu0 %v5604_v17  ;;  %v3831_v0 = vld [vmem:[%s5168_s21 + $0x80] sm:$0xf] }
 0x1ee   : > { %2172 = vmatmul.bf16.gmra.mxu1 %v5606_v18  ;;  %v3832_v12 = vor.u32 %v4471_v7, %v3831_v0 }
 0x1ef   : > { %v3254_v29 = vadd.f32 %v2053_v25, %v442_v8  ;;  %2241 = vmatmul.bf16.gmra.mxu2 %v5608_v19  ;;  %v3991_v25 = vld [vmem:[%s5168_s21 + $0x1c0] sm:$0xf] }
 0x1f0   : > { %2310 = vmatmul.bf16.gmra.mxu3 %v5610_v20  ;;  %2355 = vmatpush.bf16.msra.mxu0 %v3832_v12  ;;  %v4546_v12 = vld [vmem:[%s5168_s21 + $0x2e8] sm:$0xf0] }
 0x1f1   : > { %3374 = vst [vmem:[%s5177_s19 + $0x258] sm:$0xff] %v3254_v29  ;;  %v4511_v29 = vld [vmem:[%s5168_s21 + $0x1d0] sm:$0xf0] }
 0x1f2   : > { %v1986_v57 = vpop.f32.mrf.mxu2  ;;  %v1850_v53 = vpop.f32.mrf.mxu0 }
 0x1f3   : > { %v1987_v52 = vadd.f32 %v1986_v57, %v1918_v30  ;;  %v2055_v59 = vpop.f32.mrf.mxu3  ;;  %v1919_v61 = vpop.f32.mrf.mxu1  ;;  %v3992_v57 = vor.u32 %v4511_v29, %v3991_v25 }
 0x1f4   : > { %v1920_v62 = vadd.f32 %v1919_v61, %v1850_v53 }
 0x1f5   : > { %v2056_v28 = vadd.f32 %v2055_v59, %v1987_v52  ;;  %2424 = vmatpush.bf16.msra.mxu1 %v3992_v57 }
 0x1f7   : > { %v3259_v63 = vadd.f32 %v2056_v28, %v447_v56  ;;  %v457_v28 = vld [vmem:[%s5177_s19 + $0x2d0] sm:$0xff] }
 0x1f9   : > { %3379 = vst [vmem:[%s5177_s19 + $0x280] sm:$0xff] %v3259_v63 }
 0x1fa   : > { %v1988_v8 = vpop.f32.mrf.mxu2  ;;  %v1853_v42 = vpop.f32.mrf.mxu0 }
 0x1fb   : > { %v1989_v30 = vadd.f32 %v1988_v8, %v1920_v62  ;;  %v2057_v41 = vpop.f32.mrf.mxu3  ;;  %v1922_v43 = vpop.f32.mrf.mxu1  ;;  %v4131_v8 = vld [vmem:[%s5168_s21 + $0x2d8] sm:$0xf] }
 0x1fc   : > { %v1923_v59 = vadd.f32 %v1922_v43, %v1853_v42  ;;  %v4132_v29 = vor.u32 %v4546_v12, %v4131_v8 }
 0x1fd   : > { %v2058_v51 = vadd.f32 %v2057_v41, %v1989_v30  ;;  %2108 = vmatmul.bf16.gmra.mxu0 %v5632_v45  ;;  %v4291_v30 = vld [vmem:[%s5168_s21 + $0x418] sm:$0xf]  ;;  %v4586_v41 = vld [vmem:[%s5168_s21 + $0x428] sm:$0xf0] }
 0x1fe   : > { %2177 = vmatmul.bf16.gmra.mxu1 %v5634_v46  ;;  %v4292_v43 = vor.u32 %v4586_v41, %v4291_v30  ;;  %2494 = vmatpush.bf16.msra.mxu2 %v4132_v29  ;;  %v467_v29 = vld [vmem:[%s5177_s19 + $0x320] sm:$0xff] }
 0x1ff   : > { %v3264_v52 = vadd.f32 %v2058_v51, %v452_v60  ;;  %2246 = vmatmul.bf16.gmra.mxu2 %v5636_v47  ;;  %v462_v51 = vld [vmem:[%s5177_s19 + $0x2f8] sm:$0xff] }
 0x200   : > { %2315 = vmatmul.bf16.gmra.mxu3 %v5638_v48 }
 0x201   : > { %3384 = vst [vmem:[%s5177_s19 + $0x2a8] sm:$0xff] %v3264_v52  ;;  %2563 = vmatpush.bf16.msra.mxu3 %v4292_v43 }
 0x202   : > { %v1991_v53 = vpop.f32.mrf.mxu2  ;;  %v1855_v61 = vpop.f32.mrf.mxu0 }
 0x203   : > { %v1992_v32 = vadd.f32 %v1991_v53, %v1923_v59  ;;  %v2060_v56 = vpop.f32.mrf.mxu3  ;;  %v1924_v63 = vpop.f32.mrf.mxu1 }
 0x204   : > { %v1925_v7 = vadd.f32 %v1924_v63, %v1855_v61  ;;  %v4466_v61 = vld [vmem:[%s5168_s21 + $0x68] sm:$0xf0] }
 0x205   : > { %v2061_v62 = vadd.f32 %v2060_v56, %v1992_v32  ;;  %v3811_v56 = vld [vmem:[%s5168_s21 + $0x58] sm:$0xf] }
 0x206   : > { %v3812_v63 = vor.u32 %v4466_v61, %v3811_v56 }
 0x207   : > { %v3269_v0 = vadd.f32 %v2061_v62, %v457_v28  ;;  %v3971_v62 = vld [vmem:[%s5168_s21 + $0x198] sm:$0xf] }
 0x208   : > { %2356 = vmatpush.bf16.msra.mxu0 %v3812_v63  ;;  %v4541_v63 = vld [vmem:[%s5168_s21 + $0x2c0] sm:$0xf0] }
 0x209   : > { %3389 = vst [vmem:[%s5177_s19 + $0x2d0] sm:$0xff] %v3269_v0  ;;  %v4506_v0 = vld [vmem:[%s5168_s21 + $0x1a8] sm:$0xf0] }
 0x20a   : > { %v1993_v25 = vpop.f32.mrf.mxu2  ;;  %v1858_v60 = vpop.f32.mrf.mxu0 }
 0x20b   : > { %v1994_v42 = vadd.f32 %v1993_v25, %v1925_v7  ;;  %v2062_v57 = vpop.f32.mrf.mxu3  ;;  %v1927_v52 = vpop.f32.mrf.mxu1  ;;  %v3972_v25 = vor.u32 %v4506_v0, %v3971_v62 }
 0x20c   : > { %v1928_v32 = vadd.f32 %v1927_v52, %v1858_v60 }
 0x20d   : > { %v2063_v59 = vadd.f32 %v2062_v57, %v1994_v42  ;;  %2113 = vmatmul.bf16.gmra.mxu0 %v5660_v21  ;;  %2425 = vmatpush.bf16.msra.mxu1 %v3972_v25 }
 0x20e   : > { %2182 = vmatmul.bf16.gmra.mxu1 %v5662_v22 }
 0x20f   : > { %v3274_v53 = vadd.f32 %v2063_v59, %v462_v51  ;;  %2251 = vmatmul.bf16.gmra.mxu2 %v5664_v23  ;;  %v472_v59 = vld [vmem:[%s5177_s19 + $0x348] sm:$0xff] }
 0x210   : > { %2320 = vmatmul.bf16.gmra.mxu3 %v5666_v24 }
 0x211   : > { %3394 = vst [vmem:[%s5177_s19 + $0x2f8] sm:$0xff] %v3274_v53 }
 0x212   : > { %v1996_v28 = vpop.f32.mrf.mxu2  ;;  %v1860_v12 = vpop.f32.mrf.mxu0 }
 0x213   : > { %v1997_v7 = vadd.f32 %v1996_v28, %v1928_v32  ;;  %v2065_v8 = vpop.f32.mrf.mxu3  ;;  %v1929_v30 = vpop.f32.mrf.mxu1  ;;  %v4111_v28 = vld [vmem:[%s5168_s21 + $0x2b0] sm:$0xf] }
 0x214   : > { %v1930_v57 = vadd.f32 %v1929_v30, %v1860_v12  ;;  %v4112_v0 = vor.u32 %v4541_v63, %v4111_v28 }
 0x215   : > { %v2066_v41 = vadd.f32 %v2065_v8, %v1997_v7  ;;  %v4271_v7 = vld [vmem:[%s5168_s21 + $0x3f0] sm:$0xf]  ;;  %v4581_v8 = vld [vmem:[%s5168_s21 + $0x400] sm:$0xf0] }
 0x216   : > { %v4272_v30 = vor.u32 %v4581_v8, %v4271_v7  ;;  %2495 = vmatpush.bf16.msra.mxu2 %v4112_v0  ;;  %v482_v7 = vld [vmem:[%s5177_s19 + $0x398] sm:$0xff] }
 0x217   : > { %v3279_v42 = vadd.f32 %v2066_v41, %v467_v29  ;;  %v477_v41 = vld [vmem:[%s5177_s19 + $0x370] sm:$0xff] }
 0x218   : > { %2564 = vmatpush.bf16.msra.mxu3 %v4272_v30 }
 0x219   : > { %3399 = vst [vmem:[%s5177_s19 + $0x320] sm:$0xff] %v3279_v42 }
 0x21a   : > { %v1998_v60 = vpop.f32.mrf.mxu2  ;;  %v1863_v52 = vpop.f32.mrf.mxu0 }
 0x21b   : > { %v1999_v43 = vadd.f32 %v1998_v60, %v1930_v57  ;;  %v2067_v51 = vpop.f32.mrf.mxu3  ;;  %v1932_v53 = vpop.f32.mrf.mxu1 }
 0x21c   : > { %v1933_v61 = vadd.f32 %v1932_v53, %v1863_v52  ;;  %v4461_v52 = vld [vmem:[%s5168_s21 + $0x40] sm:$0xf0] }
 0x21d   : > { %v2068_v32 = vadd.f32 %v2067_v51, %v1999_v43  ;;  %2118 = vmatmul.bf16.gmra.mxu0 %v5680_v33  ;;  %v3791_v51 = vld [vmem:[%s5168_s21 + $0x30] sm:$0xf] }
 0x21e   : > { %2187 = vmatmul.bf16.gmra.mxu1 %v5682_v34  ;;  %v3792_v53 = vor.u32 %v4461_v52, %v3791_v51 }
 0x21f   : > { %v3284_v56 = vadd.f32 %v2068_v32, %v472_v59  ;;  %2256 = vmatmul.bf16.gmra.mxu2 %v5684_v35  ;;  %v3951_v32 = vld [vmem:[%s5168_s21 + $0x170] sm:$0xf] }
 0x220   : > { %2325 = vmatmul.bf16.gmra.mxu3 %v5686_v36  ;;  %2357 = vmatpush.bf16.msra.mxu0 %v3792_v53  ;;  %v4536_v53 = vld [vmem:[%s5168_s21 + $0x298] sm:$0xf0] }
 0x221   : > { %3404 = vst [vmem:[%s5177_s19 + $0x348] sm:$0xff] %v3284_v56  ;;  %v4501_v56 = vld [vmem:[%s5168_s21 + $0x180] sm:$0xf0] }
 0x222   : > { %v2001_v62 = vpop.f32.mrf.mxu2  ;;  %v1865_v29 = vpop.f32.mrf.mxu0 }
 0x223   : > { %v2002_v12 = vadd.f32 %v2001_v62, %v1933_v61  ;;  %v2070_v25 = vpop.f32.mrf.mxu3  ;;  %v1934_v42 = vpop.f32.mrf.mxu1  ;;  %v3952_v62 = vor.u32 %v4501_v56, %v3951_v32 }
 0x224   : > { %v1935_v43 = vadd.f32 %v1934_v42, %v1865_v29 }
 0x225   : > { %v2071_v57 = vadd.f32 %v2070_v25, %v2002_v12  ;;  %2426 = vmatpush.bf16.msra.mxu1 %v3952_v62 }
 0x227   : > { %v3289_v60 = vadd.f32 %v2071_v57, %v477_v41  ;;  %v368_v57 = vld [vmem:[%s5177_s19 + $0x8] sm:$0xff] }
 0x229   : > { %3409 = vst [vmem:[%s5177_s19 + $0x370] sm:$0xff] %v3289_v60 }
 0x22a   : > { %v2003_v59 = vpop.f32.mrf.mxu2  ;;  %v2084_v63 = vpop.f32.mrf.mxu0 }
 0x22b   : > { %v2004_v61 = vadd.f32 %v2003_v59, %v1935_v43  ;;  %v2072_v28 = vpop.f32.mrf.mxu3  ;;  %v2153_v0 = vpop.f32.mrf.mxu1  ;;  %v4091_v59 = vld [vmem:[%s5168_s21 + $0x288] sm:$0xf] }
 0x22c   : > { %v2154_v25 = vadd.f32 %v2153_v0, %v2084_v63  ;;  %v4092_v56 = vor.u32 %v4536_v53, %v4091_v59  ;;  %v4496_v59 = vld [vmem:[%s5168_s21 + $0x158] sm:$0xf0] }
 0x22d   : > { %v2073_v8 = vadd.f32 %v2072_v28, %v2004_v61  ;;  %2123 = vmatmul.bf16.gmra.mxu0 %v5707_v6  ;;  %v4251_v61 = vld [vmem:[%s5168_s21 + $0x3c8] sm:$0xf]  ;;  %v4576_v28 = vld [vmem:[%s5168_s21 + $0x3d8] sm:$0xf0] }
 0x22e   : > { %2192 = vmatmul.bf16.gmra.mxu1 %v5710_v10  ;;  %v4252_v0 = vor.u32 %v4576_v28, %v4251_v61  ;;  %2496 = vmatpush.bf16.msra.mxu2 %v4092_v56  ;;  %v378_v28 = vld [vmem:[%s5177_s19 + $0x58] sm:$0xff] }
 0x22f   : > { %v3294_v12 = vadd.f32 %v2073_v8, %v482_v7  ;;  %2261 = vmatmul.bf16.gmra.mxu2 %v5712_v11  ;;  %v373_v8 = vld [vmem:[%s5177_s19 + $0x30] sm:$0xff] }
 0x230   : > { %2330 = vmatmul.bf16.gmra.mxu3 %v5714_v26 }
 0x231   : > { %3414 = vst [vmem:[%s5177_s19 + $0x398] sm:$0xff] %v3294_v12  ;;  %2565 = vmatpush.bf16.msra.mxu3 %v4252_v0 }
 0x232   : > { %v2222_v29 = vpop.f32.mrf.mxu2  ;;  %v2086_v42 = vpop.f32.mrf.mxu0 }
 0x233   : > { %v2223_v30 = vadd.f32 %v2222_v29, %v2154_v25  ;;  %v2291_v41 = vpop.f32.mrf.mxu3  ;;  %v2155_v60 = vpop.f32.mrf.mxu1 }
 0x234   : > { %v2156_v52 = vadd.f32 %v2155_v60, %v2086_v42  ;;  %v6529_v42 = vld [vmem:[#allocation20_spill] sm:$0xff]  ;;  %v4456_v60 = vld [vmem:[%s5168_s21 + $0x18] sm:$0xf0] }
 0x235   : > { %v2292_v43 = vadd.f32 %v2291_v41, %v2223_v30  ;;  %v6528_v41 = vld [vmem:[#allocation19_spill] sm:$0xff] }
 0x237   : > { %v3180_v51 = vadd.f32 %v2292_v43, %v368_v57  ;;  %v3771_v57 = vld [vmem:[%s5168_s21 + $0x8] sm:$0xf] }
 0x239   : > { %3300 = vst [vmem:[%s5177_s19 + $0x8] sm:$0xff] %v3180_v51  ;;  %v3772_v51 = vor.u32 %v4456_v60, %v3771_v57 }
 0x23a   : > { %v2224_v32 = vpop.f32.mrf.mxu2  ;;  %v2089_v7 = vpop.f32.mrf.mxu0 }
 0x23b   : > { %v2225_v63 = vadd.f32 %v2224_v32, %v2156_v52  ;;  %v2293_v62 = vpop.f32.mrf.mxu3  ;;  %v2158_v12 = vpop.f32.mrf.mxu1  ;;  %v3931_v52 = vld [vmem:[%s5168_s21 + $0x148] sm:$0xf]  ;;  %2358 = vmatpush.bf16.msra.mxu0 %v3772_v51 }
 0x23c   : > { %v2159_v30 = vadd.f32 %v2158_v12, %v2089_v7  ;;  %v3932_v61 = vor.u32 %v4496_v59, %v3931_v52  ;;  %v6531_v59 = vld [vmem:[#allocation22_spill] sm:$0xff] }
 0x23d   : > { %v2294_v25 = vadd.f32 %v2293_v62, %v2225_v63  ;;  %2128 = vmatmul.bf16.gmra.mxu0 %v5733_v5 }
 0x23e   : > { %2197 = vmatmul.bf16.gmra.mxu1 %v5736_v27 }
 0x23f   : > { %v3185_v29 = vadd.f32 %v2294_v25, %v373_v8  ;;  %2266 = vmatmul.bf16.gmra.mxu2 %v6528_v41  ;;  %2427 = vmatpush.bf16.msra.mxu1 %v3932_v61  ;;  %v4233_v61 = vld [vmem:[%s5168_s21 + $0x3b4] sm:$0xf0] }
 0x240   : > { %2335 = vmatmul.bf16.gmra.mxu3 %v6529_v42 }
 0x241   : > { %3305 = vst [vmem:[%s5177_s19 + $0x30] sm:$0xff] %v3185_v29 }
 0x242   : > { %v2227_v43 = vpop.f32.mrf.mxu2  ;;  %v2091_v56 = vpop.f32.mrf.mxu0 }
 0x243   : > { %v2228_v53 = vadd.f32 %v2227_v43, %v2159_v30  ;;  %v2296_v32 = vpop.f32.mrf.mxu3  ;;  %v2160_v63 = vpop.f32.mrf.mxu1  ;;  %v383_v30 = vld [vmem:[%s5177_s19 + $0x80] sm:$0xff]  ;;  %v6530_v43 = vld [vmem:[#allocation21_spill] sm:$0xff] }
 0x244   : > { %v2161_v0 = vadd.f32 %v2160_v63, %v2091_v56  ;;  %v4569_v56 = vld [vmem:[%s5168_s21 + $0x3a4] sm:$0xf] }
 0x245   : > { %v2297_v62 = vadd.f32 %v2296_v32, %v2228_v53  ;;  %v6532_v53 = vld [vmem:[#allocation23_spill] sm:$0xff]  ;;  %v6533_v32 = vld [vmem:[#allocation24_spill] sm:$0xff]  ;;  %v4236_v63 = vor.u32 %v4569_v56, %v4233_v61  ;;  %v3913_v56 = vld [vmem:[%s5168_s21 + $0x134] sm:$0xf0] }
 0x247   : > { %v3190_v7 = vadd.f32 %v2297_v62, %v378_v28  ;;  %v4609_v62 = vld [vmem:[%s5168_s21 + $0x4e4] sm:$0xf]  ;;  %2765 = vmatpush.bf16.msrb.mxu2 %v4236_v63 }
 0x249   : > { %3310 = vst [vmem:[%s5177_s19 + $0x58] sm:$0xff] %v3190_v7  ;;  %v4393_v7 = vld [vmem:[%s5168_s21 + $0x4f4] sm:$0xf0] }
 0x24a   : > { %v2229_v8 = vpop.f32.mrf.mxu2  ;;  %v2094_v29 = vpop.f32.mrf.mxu0 }
 0x24b   : > { %v2230_v12 = vadd.f32 %v2229_v8, %v2161_v0  ;;  %v2298_v25 = vpop.f32.mrf.mxu3  ;;  %v2163_v57 = vpop.f32.mrf.mxu1 }
 0x24c   : > { %v2164_v52 = vadd.f32 %v2163_v57, %v2094_v29  ;;  %v388_v29 = vld [vmem:[%s5177_s19 + $0xa8] sm:$0xff] }
 0x24d   : > { %v2299_v60 = vadd.f32 %v2298_v25, %v2230_v12  ;;  %2133 = vmatmul.bf16.gmra.mxu0 %v6530_v43  ;;  %v4396_v25 = vor.u32 %v4609_v62, %v4393_v7  ;;  %v393_v7 = vld [vmem:[%s5177_s19 + $0xd0] sm:$0xff] }
 0x24e   : > { %2202 = vmatmul.bf16.gmra.mxu1 %v6531_v59  ;;  %v4529_v59 = vld [vmem:[%s5168_s21 + $0x264] sm:$0xf] }
 0x24f   : > { %v3195_v51 = vadd.f32 %v2299_v60, %v383_v30  ;;  %2271 = vmatmul.bf16.gmra.mxu2 %v6532_v53  ;;  %2834 = vmatpush.bf16.msrb.mxu3 %v4396_v25  ;;  %v398_v25 = vld [vmem:[%s5177_s19 + $0xf8] sm:$0xff] }
 0x250   : > { %2340 = vmatmul.bf16.gmra.mxu3 %v6533_v32  ;;  %v4489_v32 = vld [vmem:[%s5168_s21 + $0x124] sm:$0xf] }
 0x251   : > { %3315 = vst [vmem:[%s5177_s19 + $0x80] sm:$0xff] %v3195_v51  ;;  %v3916_v53 = vor.u32 %v4489_v32, %v3913_v56 }
 0x252   : > { %v2232_v28 = vpop.f32.mrf.mxu2  ;;  %v2096_v12 = vpop.f32.mrf.mxu0 }
 0x253   : > { %v2233_v0 = vadd.f32 %v2232_v28, %v2164_v52  ;;  %v2301_v8 = vpop.f32.mrf.mxu3  ;;  %v2165_v30 = vpop.f32.mrf.mxu1  ;;  %v4073_v52 = vld [vmem:[%s5168_s21 + $0x274] sm:$0xf0]  ;;  %2627 = vmatpush.bf16.msrb.mxu0 %v3916_v53 }
 0x254   : > { %v2166_v51 = vadd.f32 %v2165_v30, %v2096_v12  ;;  %v4076_v62 = vor.u32 %v4529_v59, %v4073_v52  ;;  %v4604_v52 = vld [vmem:[%s5168_s21 + $0x4bc] sm:$0xf] }
 0x255   : > { %v2302_v57 = vadd.f32 %v2301_v8, %v2233_v0 }
 0x256   : > { %2696 = vmatpush.bf16.msrb.mxu1 %v4076_v62 }
 0x257   : > { %v3200_v60 = vadd.f32 %v2302_v57, %v388_v29 }
 0x259   : > { %3320 = vst [vmem:[%s5177_s19 + $0xa8] sm:$0xff] %v3200_v60  ;;  %v4564_v60 = vld [vmem:[%s5168_s21 + $0x37c] sm:$0xf] }
 0x25a   : > { %v2234_v61 = vpop.f32.mrf.mxu2  ;;  %v2099_v42 = vpop.f32.mrf.mxu0 }
 0x25b   : > { %v2235_v28 = vadd.f32 %v2234_v61, %v2166_v51  ;;  %v2303_v43 = vpop.f32.mrf.mxu3  ;;  %v2168_v63 = vpop.f32.mrf.mxu1  ;;  %v4213_v51 = vld [vmem:[%s5168_s21 + $0x38c] sm:$0xf0] }
 0x25c   : > { %v2169_v12 = vadd.f32 %v2168_v63, %v2099_v42  ;;  %v4216_v61 = vor.u32 %v4564_v60, %v4213_v51 }
 0x25d   : > { %v2304_v0 = vadd.f32 %v2303_v43, %v2235_v28  ;;  %2138 = vmatmul.bf16.gmra.mxu0 %v5792_v9  ;;  %v4373_v28 = vld [vmem:[%s5168_s21 + $0x4cc] sm:$0xf0] }
 0x25e   : > { %2207 = vmatmul.bf16.gmra.mxu1 %v5796_v50  ;;  %2766 = vmatpush.bf16.msrb.mxu2 %v4216_v61 }
 0x25f   : > { %v3205_v8 = vadd.f32 %v2304_v0, %v393_v7  ;;  %2276 = vmatmul.bf16.gmra.mxu2 %v5798_v44  ;;  %v4376_v0 = vor.u32 %v4604_v52, %v4373_v28  ;;  %v408_v52 = vld [vmem:[%s5177_s19 + $0x148] sm:$0xff] }
 0x260   : > { %2345 = vmatmul.bf16.gmra.mxu3 %v5801_v31 }
 0x261   : > { %3325 = vst [vmem:[%s5177_s19 + $0xd0] sm:$0xff] %v3205_v8  ;;  %v403_v8 = vld [vmem:[%s5177_s19 + $0x120] sm:$0xff]  ;;  %2835 = vmatpush.bf16.msrb.mxu3 %v4376_v0 }
 0x262   : > { %v2237_v59 = vpop.f32.mrf.mxu2  ;;  %v2101_v32 = vpop.f32.mrf.mxu0 }
 0x263   : > { %v2238_v53 = vadd.f32 %v2237_v59, %v2169_v12  ;;  %v2306_v43 = vpop.f32.mrf.mxu3  ;;  %v2170_v29 = vpop.f32.mrf.mxu1 }
 0x264   : > { %v2171_v42 = vadd.f32 %v2170_v29, %v2101_v32  ;;  %v4484_v32 = vld [vmem:[%s5168_s21 + $0xfc] sm:$0xf] }
 0x265   : > { %v2307_v30 = vadd.f32 %v2306_v43, %v2238_v53 }
 0x267   : > { %v3210_v57 = vadd.f32 %v2307_v30, %v398_v25  ;;  %v3893_v25 = vld [vmem:[%s5168_s21 + $0x10c] sm:$0xf0] }
 0x268   : > { %v3896_v30 = vor.u32 %v4484_v32, %v3893_v25 }
 0x269   : > { %3330 = vst [vmem:[%s5177_s19 + $0xf8] sm:$0xff] %v3210_v57  ;;  %v4524_v57 = vld [vmem:[%s5168_s21 + $0x23c] sm:$0xf] }
 0x26a   : > { %v2239_v56 = vpop.f32.mrf.mxu2  ;;  %v2104_v63 = vpop.f32.mrf.mxu0  ;;  %2628 = vmatpush.bf16.msrb.mxu0 %v3896_v30  ;;  %v4559_v30 = vld [vmem:[%s5168_s21 + $0x354] sm:$0xf] }
 0x26b   : > { %v2240_v62 = vadd.f32 %v2239_v56, %v2171_v42  ;;  %v2308_v7 = vpop.f32.mrf.mxu3  ;;  %v2173_v12 = vpop.f32.mrf.mxu1  ;;  %v4053_v42 = vld [vmem:[%s5168_s21 + $0x24c] sm:$0xf0] }
 0x26c   : > { %v2174_v43 = vadd.f32 %v2173_v12, %v2104_v63  ;;  %v4056_v61 = vor.u32 %v4524_v57, %v4053_v42  ;;  %v4193_v57 = vld [vmem:[%s5168_s21 + $0x364] sm:$0xf0] }
 0x26d   : > { %v2309_v59 = vadd.f32 %v2308_v7, %v2240_v62  ;;  %2359 = vmatmul.bf16.vlgmr.msra.gmra.mxu0 %v5499_v49 }
 0x26e   : > { %2428 = vmatmul.bf16.vlgmr.msra.gmra.mxu1 %v5504_v54 }
 0x26f   : > { %v3215_v53 = vadd.f32 %v2309_v59, %v403_v8  ;;  %2497 = vmatmul.bf16.vlgmr.msra.gmra.mxu2 %v5506_v55  ;;  %2697 = vmatpush.bf16.msrb.mxu1 %v4056_v61 }
 0x270   : > { %2566 = vmatmul.bf16.vlgmr.msra.gmra.mxu3 %v5510_v58 }
 0x271   : > { %3335 = vst [vmem:[%s5177_s19 + $0x120] sm:$0xff] %v3215_v53  ;;  %v413_v53 = vld [vmem:[%s5177_s19 + $0x170] sm:$0xff] }
 0x272   : > { %v2242_v29 = vpop.f32.mrf.mxu2  ;;  %v2106_v56 = vpop.f32.mrf.mxu0 }
 0x273   : > { %v2243_v60 = vadd.f32 %v2242_v29, %v2174_v43  ;;  %v2311_v51 = vpop.f32.mrf.mxu3  ;;  %v2175_v28 = vpop.f32.mrf.mxu1 }
 0x274   : > { %v2176_v63 = vadd.f32 %v2175_v28, %v2106_v56  ;;  %v4353_v56 = vld [vmem:[%s5168_s21 + $0x4a4] sm:$0xf0] }
 0x275   : > { %v2312_v62 = vadd.f32 %v2311_v51, %v2243_v60  ;;  %v4196_v60 = vor.u32 %v4559_v30, %v4193_v57  ;;  %v4599_v51 = vld [vmem:[%s5168_s21 + $0x494] sm:$0xf] }
 0x277   : > { %v3220_v7 = vadd.f32 %v2312_v62, %v408_v52  ;;  %v4356_v62 = vor.u32 %v4599_v51, %v4353_v56  ;;  %2767 = vmatpush.bf16.msrb.mxu2 %v4196_v60  ;;  %v423_v56 = vld [vmem:[%s5177_s19 + $0x1c0] sm:$0xff] }
 0x279   : > { %3340 = vst [vmem:[%s5177_s19 + $0x148] sm:$0xff] %v3220_v7  ;;  %v418_v7 = vld [vmem:[%s5177_s19 + $0x198] sm:$0xff]  ;;  %2836 = vmatpush.bf16.msrb.mxu3 %v4356_v62 }
 0x27a   : > { %v2244_v0 = vpop.f32.mrf.mxu2  ;;  %v2109_v59 = vpop.f32.mrf.mxu0 }
 0x27b   : > { %v2245_v8 = vadd.f32 %v2244_v0, %v2176_v63  ;;  %v2313_v12 = vpop.f32.mrf.mxu3  ;;  %v2178_v43 = vpop.f32.mrf.mxu1 }
 0x27c   : > { %v2179_v29 = vadd.f32 %v2178_v43, %v2109_v59  ;;  %v4479_v59 = vld [vmem:[%s5168_s21 + $0xd4] sm:$0xf] }
 0x27d   : > { %v2314_v32 = vadd.f32 %v2313_v12, %v2245_v8  ;;  %2364 = vmatmul.bf16.gmra.mxu0 %v5528_v13 }
 0x27e   : > { %2433 = vmatmul.bf16.gmra.mxu1 %v5530_v14 }
 0x27f   : > { %v3225_v25 = vadd.f32 %v2314_v32, %v413_v53  ;;  %2502 = vmatmul.bf16.gmra.mxu2 %v5532_v15  ;;  %v3873_v53 = vld [vmem:[%s5168_s21 + $0xe4] sm:$0xf0] }
 0x280   : > { %2571 = vmatmul.bf16.gmra.mxu3 %v5534_v16  ;;  %v3876_v32 = vor.u32 %v4479_v59, %v3873_v53 }
 0x281   : > { %3345 = vst [vmem:[%s5177_s19 + $0x170] sm:$0xff] %v3225_v25  ;;  %v4519_v25 = vld [vmem:[%s5168_s21 + $0x214] sm:$0xf] }
 0x282   : > { %v2247_v42 = vpop.f32.mrf.mxu2  ;;  %v2111_v28 = vpop.f32.mrf.mxu0  ;;  %2629 = vmatpush.bf16.msrb.mxu0 %v3876_v32  ;;  %v4554_v32 = vld [vmem:[%s5168_s21 + $0x32c] sm:$0xf] }
 0x283   : > { %v2248_v61 = vadd.f32 %v2247_v42, %v2179_v29  ;;  %v2316_v52 = vpop.f32.mrf.mxu3  ;;  %v2180_v63 = vpop.f32.mrf.mxu1  ;;  %v4033_v29 = vld [vmem:[%s5168_s21 + $0x224] sm:$0xf0] }
 0x284   : > { %v2181_v12 = vadd.f32 %v2180_v63, %v2111_v28  ;;  %v4036_v51 = vor.u32 %v4519_v25, %v4033_v29  ;;  %v4173_v25 = vld [vmem:[%s5168_s21 + $0x33c] sm:$0xf0] }
 0x285   : > { %v2317_v0 = vadd.f32 %v2316_v52, %v2248_v61 }
 0x286   : > { %2698 = vmatpush.bf16.msrb.mxu1 %v4036_v51 }
 0x287   : > { %v3230_v8 = vadd.f32 %v2317_v0, %v418_v7 }
 0x289   : > { %3350 = vst [vmem:[%s5177_s19 + $0x198] sm:$0xff] %v3230_v8  ;;  %v428_v8 = vld [vmem:[%s5177_s19 + $0x1e8] sm:$0xff] }
 0x28a   : > { %v2249_v43 = vpop.f32.mrf.mxu2  ;;  %v2114_v42 = vpop.f32.mrf.mxu0 }
 0x28b   : > { %v2250_v30 = vadd.f32 %v2249_v43, %v2181_v12  ;;  %v2318_v57 = vpop.f32.mrf.mxu3  ;;  %v2183_v60 = vpop.f32.mrf.mxu1 }
 0x28c   : > { %v2184_v28 = vadd.f32 %v2183_v60, %v2114_v42  ;;  %v4333_v42 = vld [vmem:[%s5168_s21 + $0x47c] sm:$0xf0] }
 0x28d   : > { %v2319_v61 = vadd.f32 %v2318_v57, %v2250_v30  ;;  %2369 = vmatmul.bf16.gmra.mxu0 %v5556_v37  ;;  %v4176_v30 = vor.u32 %v4554_v32, %v4173_v25  ;;  %v4594_v57 = vld [vmem:[%s5168_s21 + $0x46c] sm:$0xf] }
 0x28e   : > { %2438 = vmatmul.bf16.gmra.mxu1 %v5558_v38 }
 0x28f   : > { %v3235_v52 = vadd.f32 %v2319_v61, %v423_v56  ;;  %2507 = vmatmul.bf16.gmra.mxu2 %v5560_v39  ;;  %v4336_v61 = vor.u32 %v4594_v57, %v4333_v42  ;;  %v438_v57 = vld [vmem:[%s5177_s19 + $0x238] sm:$0xff] }
 0x290   : > { %2576 = vmatmul.bf16.gmra.mxu3 %v5562_v40  ;;  %2768 = vmatpush.bf16.msrb.mxu2 %v4176_v30 }
 0x291   : > { %3355 = vst [vmem:[%s5177_s19 + $0x1c0] sm:$0xff] %v3235_v52  ;;  %v433_v52 = vld [vmem:[%s5177_s19 + $0x210] sm:$0xff]  ;;  %2837 = vmatpush.bf16.msrb.mxu3 %v4336_v61 }
 0x292   : > { %v2252_v62 = vpop.f32.mrf.mxu2  ;;  %v2116_v0 = vpop.f32.mrf.mxu0 }
 0x293   : > { %v2253_v7 = vadd.f32 %v2252_v62, %v2184_v28  ;;  %v2321_v63 = vpop.f32.mrf.mxu3  ;;  %v2185_v12 = vpop.f32.mrf.mxu1 }
 0x294   : > { %v2186_v43 = vadd.f32 %v2185_v12, %v2116_v0  ;;  %v4474_v0 = vld [vmem:[%s5168_s21 + $0xac] sm:$0xf] }
 0x295   : > { %v2322_v59 = vadd.f32 %v2321_v63, %v2253_v7 }
 0x297   : > { %v3240_v53 = vadd.f32 %v2322_v59, %v428_v8  ;;  %v3853_v8 = vld [vmem:[%s5168_s21 + $0xbc] sm:$0xf0] }
 0x298   : > { %v3856_v59 = vor.u32 %v4474_v0, %v3853_v8 }
 0x299   : > { %3360 = vst [vmem:[%s5177_s19 + $0x1e8] sm:$0xff] %v3240_v53  ;;  %v4514_v53 = vld [vmem:[%s5168_s21 + $0x1ec] sm:$0xf] }
 0x29a   : > { %v2254_v29 = vpop.f32.mrf.mxu2  ;;  %v2119_v60 = vpop.f32.mrf.mxu0  ;;  %2630 = vmatpush.bf16.msrb.mxu0 %v3856_v59  ;;  %v4549_v59 = vld [vmem:[%s5168_s21 + $0x304] sm:$0xf] }
 0x29b   : > { %v2255_v51 = vadd.f32 %v2254_v29, %v2186_v43  ;;  %v2323_v56 = vpop.f32.mrf.mxu3  ;;  %v2188_v28 = vpop.f32.mrf.mxu1  ;;  %v4013_v43 = vld [vmem:[%s5168_s21 + $0x1fc] sm:$0xf0] }
 0x29c   : > { %v2189_v63 = vadd.f32 %v2188_v28, %v2119_v60  ;;  %v4016_v30 = vor.u32 %v4514_v53, %v4013_v43  ;;  %v4153_v53 = vld [vmem:[%s5168_s21 + $0x314] sm:$0xf0] }
 0x29d   : > { %v2324_v62 = vadd.f32 %v2323_v56, %v2255_v51  ;;  %2374 = vmatmul.bf16.gmra.mxu0 %v5584_v1 }
 0x29e   : > { %2443 = vmatmul.bf16.gmra.mxu1 %v5586_v2 }
 0x29f   : > { %v3245_v7 = vadd.f32 %v2324_v62, %v433_v52  ;;  %2512 = vmatmul.bf16.gmra.mxu2 %v5588_v3  ;;  %2699 = vmatpush.bf16.msrb.mxu1 %v4016_v30 }
 0x2a0   : > { %2581 = vmatmul.bf16.gmra.mxu3 %v5590_v4 }
 0x2a1   : > { %3365 = vst [vmem:[%s5177_s19 + $0x210] sm:$0xff] %v3245_v7  ;;  %v443_v7 = vld [vmem:[%s5177_s19 + $0x260] sm:$0xff] }
 0x2a2   : > { %v2257_v12 = vpop.f32.mrf.mxu2  ;;  %v2121_v29 = vpop.f32.mrf.mxu0 }
 0x2a3   : > { %v2258_v32 = vadd.f32 %v2257_v12, %v2189_v63  ;;  %v2326_v25 = vpop.f32.mrf.mxu3  ;;  %v2190_v42 = vpop.f32.mrf.mxu1 }
 0x2a4   : > { %v2191_v60 = vadd.f32 %v2190_v42, %v2121_v29  ;;  %v4313_v29 = vld [vmem:[%s5168_s21 + $0x454] sm:$0xf0] }
 0x2a5   : > { %v2327_v51 = vadd.f32 %v2326_v25, %v2258_v32  ;;  %v4156_v32 = vor.u32 %v4549_v59, %v4153_v53  ;;  %v4589_v25 = vld [vmem:[%s5168_s21 + $0x444] sm:$0xf] }
 0x2a7   : > { %v3250_v56 = vadd.f32 %v2327_v51, %v438_v57  ;;  %v4316_v51 = vor.u32 %v4589_v25, %v4313_v29  ;;  %2769 = vmatpush.bf16.msrb.mxu2 %v4156_v32  ;;  %v453_v29 = vld [vmem:[%s5177_s19 + $0x2b0] sm:$0xff] }
 0x2a9   : > { %3370 = vst [vmem:[%s5177_s19 + $0x238] sm:$0xff] %v3250_v56  ;;  %v448_v56 = vld [vmem:[%s5177_s19 + $0x288] sm:$0xff]  ;;  %2838 = vmatpush.bf16.msrb.mxu3 %v4316_v51 }
 0x2aa   : > { %v2259_v61 = vpop.f32.mrf.mxu2  ;;  %v2124_v62 = vpop.f32.mrf.mxu0 }
 0x2ab   : > { %v2260_v52 = vadd.f32 %v2259_v61, %v2191_v60  ;;  %v2328_v28 = vpop.f32.mrf.mxu3  ;;  %v2193_v63 = vpop.f32.mrf.mxu1 }
 0x2ac   : > { %v2194_v12 = vadd.f32 %v2193_v63, %v2124_v62  ;;  %v4469_v62 = vld [vmem:[%s5168_s21 + $0x84] sm:$0xf] }
 0x2ad   : > { %v2329_v0 = vadd.f32 %v2328_v28, %v2260_v52  ;;  %2379 = vmatmul.bf16.gmra.mxu0 %v5604_v17 }
 0x2ae   : > { %2448 = vmatmul.bf16.gmra.mxu1 %v5606_v18 }
 0x2af   : > { %v3255_v8 = vadd.f32 %v2329_v0, %v443_v7  ;;  %2517 = vmatmul.bf16.gmra.mxu2 %v5608_v19  ;;  %v3833_v7 = vld [vmem:[%s5168_s21 + $0x94] sm:$0xf0] }
 0x2b0   : > { %2586 = vmatmul.bf16.gmra.mxu3 %v5610_v20  ;;  %v3836_v0 = vor.u32 %v4469_v62, %v3833_v7 }
 0x2b1   : > { %3375 = vst [vmem:[%s5177_s19 + $0x260] sm:$0xff] %v3255_v8  ;;  %v4509_v8 = vld [vmem:[%s5168_s21 + $0x1c4] sm:$0xf] }
 0x2b2   : > { %v2262_v43 = vpop.f32.mrf.mxu2  ;;  %v2126_v42 = vpop.f32.mrf.mxu0  ;;  %2631 = vmatpush.bf16.msrb.mxu0 %v3836_v0  ;;  %v4544_v0 = vld [vmem:[%s5168_s21 + $0x2dc] sm:$0xf] }
 0x2b3   : > { %v2263_v30 = vadd.f32 %v2262_v43, %v2194_v12  ;;  %v2331_v57 = vpop.f32.mrf.mxu3  ;;  %v2195_v60 = vpop.f32.mrf.mxu1  ;;  %v3993_v12 = vld [vmem:[%s5168_s21 + $0x1d4] sm:$0xf0] }
 0x2b4   : > { %v2196_v28 = vadd.f32 %v2195_v60, %v2126_v42  ;;  %v3996_v25 = vor.u32 %v4509_v8, %v3993_v12  ;;  %v4133_v8 = vld [vmem:[%s5168_s21 + $0x2ec] sm:$0xf0] }
 0x2b5   : > { %v2332_v61 = vadd.f32 %v2331_v57, %v2263_v30 }
 0x2b6   : > { %2700 = vmatpush.bf16.msrb.mxu1 %v3996_v25 }
 0x2b7   : > { %v3260_v52 = vadd.f32 %v2332_v61, %v448_v56 }
 0x2b9   : > { %3380 = vst [vmem:[%s5177_s19 + $0x288] sm:$0xff] %v3260_v52  ;;  %v458_v52 = vld [vmem:[%s5177_s19 + $0x2d8] sm:$0xff] }
 0x2ba   : > { %v2264_v63 = vpop.f32.mrf.mxu2  ;;  %v2129_v43 = vpop.f32.mrf.mxu0 }
 0x2bb   : > { %v2265_v59 = vadd.f32 %v2264_v63, %v2196_v28  ;;  %v2333_v53 = vpop.f32.mrf.mxu3  ;;  %v2198_v32 = vpop.f32.mrf.mxu1 }
 0x2bc   : > { %v2199_v42 = vadd.f32 %v2198_v32, %v2129_v43  ;;  %v4293_v43 = vld [vmem:[%s5168_s21 + $0x42c] sm:$0xf0] }
 0x2bd   : > { %v2334_v30 = vadd.f32 %v2333_v53, %v2265_v59  ;;  %2384 = vmatmul.bf16.gmra.mxu0 %v5632_v45  ;;  %v4136_v59 = vor.u32 %v4544_v0, %v4133_v8  ;;  %v4584_v53 = vld [vmem:[%s5168_s21 + $0x41c] sm:$0xf] }
 0x2be   : > { %2453 = vmatmul.bf16.gmra.mxu1 %v5634_v46 }
 0x2bf   : > { %v3265_v57 = vadd.f32 %v2334_v30, %v453_v29  ;;  %2522 = vmatmul.bf16.gmra.mxu2 %v5636_v47  ;;  %v4296_v30 = vor.u32 %v4584_v53, %v4293_v43  ;;  %v468_v53 = vld [vmem:[%s5177_s19 + $0x328] sm:$0xff] }
 0x2c0   : > { %2591 = vmatmul.bf16.gmra.mxu3 %v5638_v48  ;;  %2770 = vmatpush.bf16.msrb.mxu2 %v4136_v59 }
 0x2c1   : > { %3385 = vst [vmem:[%s5177_s19 + $0x2b0] sm:$0xff] %v3265_v57  ;;  %v463_v57 = vld [vmem:[%s5177_s19 + $0x300] sm:$0xff]  ;;  %2839 = vmatpush.bf16.msrb.mxu3 %v4296_v30 }
 0x2c2   : > { %v2267_v51 = vpop.f32.mrf.mxu2  ;;  %v2131_v61 = vpop.f32.mrf.mxu0 }
 0x2c3   : > { %v2268_v56 = vadd.f32 %v2267_v51, %v2199_v42  ;;  %v2336_v60 = vpop.f32.mrf.mxu3  ;;  %v2200_v28 = vpop.f32.mrf.mxu1 }
 0x2c4   : > { %v2201_v63 = vadd.f32 %v2200_v28, %v2131_v61  ;;  %v4464_v61 = vld [vmem:[%s5168_s21 + $0x5c] sm:$0xf] }
 0x2c5   : > { %v2337_v62 = vadd.f32 %v2336_v60, %v2268_v56 }
 0x2c7   : > { %v3270_v7 = vadd.f32 %v2337_v62, %v458_v52  ;;  %v3813_v52 = vld [vmem:[%s5168_s21 + $0x6c] sm:$0xf0] }
 0x2c8   : > { %v3816_v62 = vor.u32 %v4464_v61, %v3813_v52 }
 0x2c9   : > { %3390 = vst [vmem:[%s5177_s19 + $0x2d8] sm:$0xff] %v3270_v7  ;;  %v4504_v7 = vld [vmem:[%s5168_s21 + $0x19c] sm:$0xf] }
 0x2ca   : > { %v2269_v12 = vpop.f32.mrf.mxu2  ;;  %v2134_v32 = vpop.f32.mrf.mxu0  ;;  %2632 = vmatpush.bf16.msrb.mxu0 %v3816_v62  ;;  %v4539_v62 = vld [vmem:[%s5168_s21 + $0x2b4] sm:$0xf] }
 0x2cb   : > { %v2270_v25 = vadd.f32 %v2269_v12, %v2201_v63  ;;  %v2338_v29 = vpop.f32.mrf.mxu3  ;;  %v2203_v42 = vpop.f32.mrf.mxu1  ;;  %v3973_v63 = vld [vmem:[%s5168_s21 + $0x1ac] sm:$0xf0] }
 0x2cc   : > { %v2204_v60 = vadd.f32 %v2203_v42, %v2134_v32  ;;  %v3976_v59 = vor.u32 %v4504_v7, %v3973_v63  ;;  %v4113_v7 = vld [vmem:[%s5168_s21 + $0x2c4] sm:$0xf0] }
 0x2cd   : > { %v2339_v51 = vadd.f32 %v2338_v29, %v2270_v25  ;;  %2389 = vmatmul.bf16.gmra.mxu0 %v5660_v21 }
 0x2ce   : > { %2458 = vmatmul.bf16.gmra.mxu1 %v5662_v22 }
 0x2cf   : > { %v3275_v56 = vadd.f32 %v2339_v51, %v463_v57  ;;  %2527 = vmatmul.bf16.gmra.mxu2 %v5664_v23  ;;  %2701 = vmatpush.bf16.msrb.mxu1 %v3976_v59 }
 0x2d0   : > { %2596 = vmatmul.bf16.gmra.mxu3 %v5666_v24 }
 0x2d1   : > { %3395 = vst [vmem:[%s5177_s19 + $0x300] sm:$0xff] %v3275_v56  ;;  %v473_v56 = vld [vmem:[%s5177_s19 + $0x350] sm:$0xff] }
 0x2d2   : > { %v2272_v28 = vpop.f32.mrf.mxu2  ;;  %v2136_v12 = vpop.f32.mrf.mxu0 }
 0x2d3   : > { %v2273_v0 = vadd.f32 %v2272_v28, %v2204_v60  ;;  %v2341_v8 = vpop.f32.mrf.mxu3  ;;  %v2205_v43 = vpop.f32.mrf.mxu1 }
 0x2d4   : > { %v2206_v32 = vadd.f32 %v2205_v43, %v2136_v12  ;;  %v4273_v12 = vld [vmem:[%s5168_s21 + $0x404] sm:$0xf0] }
 0x2d5   : > { %v2342_v25 = vadd.f32 %v2341_v8, %v2273_v0  ;;  %v4116_v0 = vor.u32 %v4539_v62, %v4113_v7  ;;  %v4579_v8 = vld [vmem:[%s5168_s21 + $0x3f4] sm:$0xf] }
 0x2d7   : > { %v3280_v29 = vadd.f32 %v2342_v25, %v468_v53  ;;  %v4276_v25 = vor.u32 %v4579_v8, %v4273_v12  ;;  %2771 = vmatpush.bf16.msrb.mxu2 %v4116_v0  ;;  %v483_v12 = vld [vmem:[%s5177_s19 + $0x3a0] sm:$0xff] }
 0x2d9   : > { %3400 = vst [vmem:[%s5177_s19 + $0x328] sm:$0xff] %v3280_v29  ;;  %v478_v29 = vld [vmem:[%s5177_s19 + $0x378] sm:$0xff]  ;;  %2840 = vmatpush.bf16.msrb.mxu3 %v4276_v25 }
 0x2da   : > { %v2274_v30 = vpop.f32.mrf.mxu2  ;;  %v2139_v51 = vpop.f32.mrf.mxu0 }
 0x2db   : > { %v2275_v57 = vadd.f32 %v2274_v30, %v2206_v32  ;;  %v2343_v42 = vpop.f32.mrf.mxu3  ;;  %v2208_v60 = vpop.f32.mrf.mxu1 }
 0x2dc   : > { %v2209_v28 = vadd.f32 %v2208_v60, %v2139_v51  ;;  %v4459_v51 = vld [vmem:[%s5168_s21 + $0x34] sm:$0xf] }
 0x2dd   : > { %v2344_v61 = vadd.f32 %v2343_v42, %v2275_v57  ;;  %2394 = vmatmul.bf16.gmra.mxu0 %v5680_v33 }
 0x2de   : > { %2463 = vmatmul.bf16.gmra.mxu1 %v5682_v34 }
 0x2df   : > { %v3285_v52 = vadd.f32 %v2344_v61, %v473_v56  ;;  %2532 = vmatmul.bf16.gmra.mxu2 %v5684_v35  ;;  %v3793_v56 = vld [vmem:[%s5168_s21 + $0x44] sm:$0xf0] }
 0x2e0   : > { %2601 = vmatmul.bf16.gmra.mxu3 %v5686_v36  ;;  %v3796_v61 = vor.u32 %v4459_v51, %v3793_v56 }
 0x2e1   : > { %3405 = vst [vmem:[%s5177_s19 + $0x350] sm:$0xff] %v3285_v52  ;;  %v4499_v52 = vld [vmem:[%s5168_s21 + $0x174] sm:$0xf] }
 0x2e2   : > { %v2277_v63 = vpop.f32.mrf.mxu2  ;;  %v2141_v43 = vpop.f32.mrf.mxu0  ;;  %2633 = vmatpush.bf16.msrb.mxu0 %v3796_v61  ;;  %v4534_v61 = vld [vmem:[%s5168_s21 + $0x28c] sm:$0xf] }
 0x2e3   : > { %v2278_v59 = vadd.f32 %v2277_v63, %v2209_v28  ;;  %v2346_v53 = vpop.f32.mrf.mxu3  ;;  %v2210_v32 = vpop.f32.mrf.mxu1  ;;  %v3953_v28 = vld [vmem:[%s5168_s21 + $0x184] sm:$0xf0] }
 0x2e4   : > { %v2211_v42 = vadd.f32 %v2210_v32, %v2141_v43  ;;  %v3956_v8 = vor.u32 %v4499_v52, %v3953_v28  ;;  %v4093_v52 = vld [vmem:[%s5168_s21 + $0x29c] sm:$0xf0] }
 0x2e5   : > { %v2347_v30 = vadd.f32 %v2346_v53, %v2278_v59 }
 0x2e6   : > { %2702 = vmatpush.bf16.msrb.mxu1 %v3956_v8 }
 0x2e7   : > { %v3290_v57 = vadd.f32 %v2347_v30, %v478_v29 }
 0x2e9   : > { %3410 = vst [vmem:[%s5177_s19 + $0x378] sm:$0xff] %v3290_v57  ;;  %v369_v57 = vld [vmem:[%s5177_s19 + $0x10] sm:$0xff] }
 0x2ea   : > { %v2279_v60 = vpop.f32.mrf.mxu2  ;;  %v2360_v63 = vpop.f32.mrf.mxu0 }
 0x2eb   : > { %v2280_v62 = vadd.f32 %v2279_v60, %v2211_v42  ;;  %v2348_v7 = vpop.f32.mrf.mxu3  ;;  %v2429_v0 = vpop.f32.mrf.mxu1 }
 0x2ec   : > { %v2430_v43 = vadd.f32 %v2429_v0, %v2360_v63  ;;  %v4253_v63 = vld [vmem:[%s5168_s21 + $0x3dc] sm:$0xf0] }
 0x2ed   : > { %v2349_v59 = vadd.f32 %v2348_v7, %v2280_v62  ;;  %2399 = vmatmul.bf16.gmra.mxu0 %v5707_v6  ;;  %v4096_v62 = vor.u32 %v4534_v61, %v4093_v52  ;;  %v4574_v7 = vld [vmem:[%s5168_s21 + $0x3cc] sm:$0xf]  ;;  %v3933_v61 = vld [vmem:[%s5168_s21 + $0x15c] sm:$0xf0] }
 0x2ee   : > { %2468 = vmatmul.bf16.gmra.mxu1 %v5710_v10 }
 0x2ef   : > { %v3295_v53 = vadd.f32 %v2349_v59, %v483_v12  ;;  %2537 = vmatmul.bf16.gmra.mxu2 %v5712_v11  ;;  %v4256_v59 = vor.u32 %v4574_v7, %v4253_v63  ;;  %v379_v63 = vld [vmem:[%s5177_s19 + $0x60] sm:$0xff] }
 0x2f0   : > { %2606 = vmatmul.bf16.gmra.mxu3 %v5714_v26  ;;  %2772 = vmatpush.bf16.msrb.mxu2 %v4096_v62 }
 0x2f1   : > { %3415 = vst [vmem:[%s5177_s19 + $0x3a0] sm:$0xff] %v3295_v53  ;;  %v374_v53 = vld [vmem:[%s5177_s19 + $0x38] sm:$0xff]  ;;  %2841 = vmatpush.bf16.msrb.mxu3 %v4256_v59 }
 0x2f2   : > { %v2498_v25 = vpop.f32.mrf.mxu2  ;;  %v2362_v30 = vpop.f32.mrf.mxu0 }
 0x2f3   : > { %v2499_v29 = vadd.f32 %v2498_v25, %v2430_v43  ;;  %v2567_v32 = vpop.f32.mrf.mxu3  ;;  %v2431_v42 = vpop.f32.mrf.mxu1 }
 0x2f4   : > { %v2432_v60 = vadd.f32 %v2431_v42, %v2362_v30  ;;  %v6534_v30 = vld [vmem:[#allocation20_spill] sm:$0xff]  ;;  %v3773_v42 = vld [vmem:[%s5168_s21 + $0x1c] sm:$0xf0] }
 0x2f5   : > { %v2568_v51 = vadd.f32 %v2567_v32, %v2499_v29 }
 0x2f7   : > { %v3181_v56 = vadd.f32 %v2568_v51, %v369_v57  ;;  %v4454_v57 = vld [vmem:[%s5168_s21 + $0xc] sm:$0xf] }
 0x2f9   : > { %3301 = vst [vmem:[%s5177_s19 + $0x10] sm:$0xff] %v3181_v56  ;;  %v3776_v56 = vor.u32 %v4454_v57, %v3773_v42 }
 0x2fa   : > { %v2500_v28 = vpop.f32.mrf.mxu2  ;;  %v2365_v0 = vpop.f32.mrf.mxu0 }
 0x2fb   : > { %v2501_v8 = vadd.f32 %v2500_v28, %v2432_v60  ;;  %v2569_v12 = vpop.f32.mrf.mxu3  ;;  %v2434_v43 = vpop.f32.mrf.mxu1  ;;  %v4494_v60 = vld [vmem:[%s5168_s21 + $0x14c] sm:$0xf]  ;;  %2634 = vmatpush.bf16.msrb.mxu0 %v3776_v56 }
 0x2fc   : > { %v2435_v32 = vadd.f32 %v2434_v43, %v2365_v0  ;;  %v3936_v7 = vor.u32 %v4494_v60, %v3933_v61  ;;  %v6536_v61 = vld [vmem:[#allocation22_spill] sm:$0xff] }
 0x2fd   : > { %v2570_v25 = vadd.f32 %v2569_v12, %v2501_v8  ;;  %2404 = vmatmul.bf16.gmra.mxu0 %v5733_v5 }
 0x2fe   : > { %2473 = vmatmul.bf16.gmra.mxu1 %v5736_v27 }
 0x2ff   : > { %v3186_v29 = vadd.f32 %v2570_v25, %v374_v53  ;;  %2542 = vmatmul.bf16.gmra.mxu2 %v6528_v41  ;;  %2703 = vmatpush.bf16.msrb.mxu1 %v3936_v7  ;;  %v4572_v7 = vld [vmem:[%s5168_s21 + $0x3b8] sm:$0xf0] }
 0x300   : > { %2611 = vmatmul.bf16.gmra.mxu3 %v6534_v30 }
 0x301   : > { %3306 = vst [vmem:[%s5177_s19 + $0x38] sm:$0xff] %v3186_v29 }
 0x302   : > { %v2503_v51 = vpop.f32.mrf.mxu2  ;;  %v2367_v62 = vpop.f32.mrf.mxu0 }
 0x303   : > { %v2504_v52 = vadd.f32 %v2503_v51, %v2435_v32  ;;  %v2572_v28 = vpop.f32.mrf.mxu3  ;;  %v2436_v8 = vpop.f32.mrf.mxu1  ;;  %v384_v32 = vld [vmem:[%s5177_s19 + $0x88] sm:$0xff]  ;;  %v6535_v51 = vld [vmem:[#allocation21_spill] sm:$0xff] }
 0x304   : > { %v2437_v59 = vadd.f32 %v2436_v8, %v2367_v62  ;;  %v4239_v62 = vld [vmem:[%s5168_s21 + $0x3a8] sm:$0xf] }
 0x305   : > { %v2573_v12 = vadd.f32 %v2572_v28, %v2504_v52  ;;  %v6537_v52 = vld [vmem:[#allocation23_spill] sm:$0xff]  ;;  %v6538_v28 = vld [vmem:[#allocation24_spill] sm:$0xff]  ;;  %v4240_v8 = vor.u32 %v4572_v7, %v4239_v62  ;;  %v4492_v62 = vld [vmem:[%s5168_s21 + $0x138] sm:$0xf0] }
 0x307   : > { %v3191_v0 = vadd.f32 %v2573_v12, %v379_v63  ;;  %v4399_v12 = vld [vmem:[%s5168_s21 + $0x4e8] sm:$0xf]  ;;  %3041 = vmatpush.bf16.msra.mxu2 %v4240_v8 }
 0x309   : > { %3311 = vst [vmem:[%s5177_s19 + $0x60] sm:$0xff] %v3191_v0  ;;  %v4612_v0 = vld [vmem:[%s5168_s21 + $0x4f8] sm:$0xf0] }
 0x30a   : > { %v2505_v53 = vpop.f32.mrf.mxu2  ;;  %v2370_v29 = vpop.f32.mrf.mxu0 }
 0x30b   : > { %v2506_v43 = vadd.f32 %v2505_v53, %v2437_v59  ;;  %v2574_v25 = vpop.f32.mrf.mxu3  ;;  %v2439_v57 = vpop.f32.mrf.mxu1 }
 0x30c   : > { %v2440_v60 = vadd.f32 %v2439_v57, %v2370_v29  ;;  %v389_v29 = vld [vmem:[%s5177_s19 + $0xb0] sm:$0xff] }
 0x30d   : > { %v2575_v42 = vadd.f32 %v2574_v25, %v2506_v43  ;;  %2409 = vmatmul.bf16.gmra.mxu0 %v6535_v51  ;;  %v4400_v25 = vor.u32 %v4612_v0, %v4399_v12  ;;  %v394_v0 = vld [vmem:[%s5177_s19 + $0xd8] sm:$0xff] }
 0x30e   : > { %2478 = vmatmul.bf16.gmra.mxu1 %v6536_v61  ;;  %v4079_v61 = vld [vmem:[%s5168_s21 + $0x268] sm:$0xf] }
 0x30f   : > { %v3196_v56 = vadd.f32 %v2575_v42, %v384_v32  ;;  %2547 = vmatmul.bf16.gmra.mxu2 %v6537_v52  ;;  %3110 = vmatpush.bf16.msra.mxu3 %v4400_v25  ;;  %v399_v25 = vld [vmem:[%s5177_s19 + $0x100] sm:$0xff] }
 0x310   : > { %2616 = vmatmul.bf16.gmra.mxu3 %v6538_v28  ;;  %v3919_v28 = vld [vmem:[%s5168_s21 + $0x128] sm:$0xf] }
 0x311   : > { %3316 = vst [vmem:[%s5177_s19 + $0x88] sm:$0xff] %v3196_v56  ;;  %v3920_v52 = vor.u32 %v4492_v62, %v3919_v28 }
 0x312   : > { %v2508_v63 = vpop.f32.mrf.mxu2  ;;  %v2372_v43 = vpop.f32.mrf.mxu0 }
 0x313   : > { %v2509_v59 = vadd.f32 %v2508_v63, %v2440_v60  ;;  %v2577_v53 = vpop.f32.mrf.mxu3  ;;  %v2441_v32 = vpop.f32.mrf.mxu1  ;;  %v4532_v60 = vld [vmem:[%s5168_s21 + $0x278] sm:$0xf0]  ;;  %2903 = vmatpush.bf16.msra.mxu0 %v3920_v52 }
 0x314   : > { %v2442_v56 = vadd.f32 %v2441_v32, %v2372_v43  ;;  %v4080_v12 = vor.u32 %v4532_v60, %v4079_v61  ;;  %v4379_v60 = vld [vmem:[%s5168_s21 + $0x4c0] sm:$0xf] }
 0x315   : > { %v2578_v57 = vadd.f32 %v2577_v53, %v2509_v59 }
 0x316   : > { %2972 = vmatpush.bf16.msra.mxu1 %v4080_v12 }
 0x317   : > { %v3201_v42 = vadd.f32 %v2578_v57, %v389_v29 }
 0x319   : > { %3321 = vst [vmem:[%s5177_s19 + $0xb0] sm:$0xff] %v3201_v42  ;;  %v4219_v42 = vld [vmem:[%s5168_s21 + $0x380] sm:$0xf] }
 0x31a   : > { %v2510_v7 = vpop.f32.mrf.mxu2  ;;  %v2375_v30 = vpop.f32.mrf.mxu0 }
 0x31b   : > { %v2511_v63 = vadd.f32 %v2510_v7, %v2442_v56  ;;  %v2579_v51 = vpop.f32.mrf.mxu3  ;;  %v2444_v8 = vpop.f32.mrf.mxu1  ;;  %v4567_v56 = vld [vmem:[%s5168_s21 + $0x390] sm:$0xf0] }
 0x31c   : > { %v2445_v43 = vadd.f32 %v2444_v8, %v2375_v30  ;;  %v4220_v7 = vor.u32 %v4567_v56, %v4219_v42 }
 0x31d   : > { %v2580_v59 = vadd.f32 %v2579_v51, %v2511_v63  ;;  %2414 = vmatmul.bf16.gmra.mxu0 %v5792_v9  ;;  %v4607_v63 = vld [vmem:[%s5168_s21 + $0x4d0] sm:$0xf0] }
 0x31e   : > { %2483 = vmatmul.bf16.gmra.mxu1 %v5796_v50  ;;  %3042 = vmatpush.bf16.msra.mxu2 %v4220_v7 }
 0x31f   : > { %v3206_v53 = vadd.f32 %v2580_v59, %v394_v0  ;;  %2552 = vmatmul.bf16.gmra.mxu2 %v5798_v44  ;;  %v4380_v59 = vor.u32 %v4607_v63, %v4379_v60  ;;  %v409_v60 = vld [vmem:[%s5177_s19 + $0x150] sm:$0xff] }
 0x320   : > { %2621 = vmatmul.bf16.gmra.mxu3 %v5801_v31 }
 0x321   : > { %3326 = vst [vmem:[%s5177_s19 + $0xd8] sm:$0xff] %v3206_v53  ;;  %v404_v53 = vld [vmem:[%s5177_s19 + $0x128] sm:$0xff]  ;;  %3111 = vmatpush.bf16.msra.mxu3 %v4380_v59 }
 0x322   : > { %v2513_v61 = vpop.f32.mrf.mxu2  ;;  %v2377_v28 = vpop.f32.mrf.mxu0 }
 0x323   : > { %v2514_v52 = vadd.f32 %v2513_v61, %v2445_v43  ;;  %v2582_v51 = vpop.f32.mrf.mxu3  ;;  %v2446_v29 = vpop.f32.mrf.mxu1 }
 0x324   : > { %v2447_v30 = vadd.f32 %v2446_v29, %v2377_v28  ;;  %v3899_v28 = vld [vmem:[%s5168_s21 + $0x100] sm:$0xf] }
 0x325   : > { %v2583_v32 = vadd.f32 %v2582_v51, %v2514_v52 }
 0x327   : > { %v3211_v57 = vadd.f32 %v2583_v32, %v399_v25  ;;  %v4487_v25 = vld [vmem:[%s5168_s21 + $0x110] sm:$0xf0] }
 0x328   : > { %v3900_v32 = vor.u32 %v4487_v25, %v3899_v28 }
 0x329   : > { %3331 = vst [vmem:[%s5177_s19 + $0x100] sm:$0xff] %v3211_v57  ;;  %v4059_v57 = vld [vmem:[%s5168_s21 + $0x240] sm:$0xf] }
 0x32a   : > { %v2515_v62 = vpop.f32.mrf.mxu2  ;;  %v2380_v8 = vpop.f32.mrf.mxu0  ;;  %2904 = vmatpush.bf16.msra.mxu0 %v3900_v32  ;;  %v4199_v32 = vld [vmem:[%s5168_s21 + $0x358] sm:$0xf] }
 0x32b   : > { %v2516_v12 = vadd.f32 %v2515_v62, %v2447_v30  ;;  %v2584_v0 = vpop.f32.mrf.mxu3  ;;  %v2449_v43 = vpop.f32.mrf.mxu1  ;;  %v4527_v30 = vld [vmem:[%s5168_s21 + $0x250] sm:$0xf0] }
 0x32c   : > { %v2450_v51 = vadd.f32 %v2449_v43, %v2380_v8  ;;  %v4060_v7 = vor.u32 %v4527_v30, %v4059_v57  ;;  %v4562_v57 = vld [vmem:[%s5168_s21 + $0x368] sm:$0xf0] }
 0x32d   : > { %v2585_v61 = vadd.f32 %v2584_v0, %v2516_v12  ;;  %2635 = vmatmul.bf16.vlgmr.msrb.gmra.mxu0 %v5499_v49 }
 0x32e   : > { %2704 = vmatmul.bf16.vlgmr.msrb.gmra.mxu1 %v5504_v54 }
 0x32f   : > { %v3216_v52 = vadd.f32 %v2585_v61, %v404_v53  ;;  %2773 = vmatmul.bf16.vlgmr.msrb.gmra.mxu2 %v5506_v55  ;;  %2973 = vmatpush.bf16.msra.mxu1 %v4060_v7 }
 0x330   : > { %2842 = vmatmul.bf16.vlgmr.msrb.gmra.mxu3 %v5510_v58 }
 0x331   : > { %3336 = vst [vmem:[%s5177_s19 + $0x128] sm:$0xff] %v3216_v52  ;;  %v414_v52 = vld [vmem:[%s5177_s19 + $0x178] sm:$0xff] }
 0x332   : > { %v2518_v29 = vpop.f32.mrf.mxu2  ;;  %v2382_v62 = vpop.f32.mrf.mxu0 }
 0x333   : > { %v2519_v42 = vadd.f32 %v2518_v29, %v2450_v51  ;;  %v2587_v56 = vpop.f32.mrf.mxu3  ;;  %v2451_v63 = vpop.f32.mrf.mxu1 }
 0x334   : > { %v2452_v8 = vadd.f32 %v2451_v63, %v2382_v62  ;;  %v4602_v62 = vld [vmem:[%s5168_s21 + $0x4a8] sm:$0xf0] }
 0x335   : > { %v2588_v12 = vadd.f32 %v2587_v56, %v2519_v42  ;;  %v4200_v42 = vor.u32 %v4562_v57, %v4199_v32  ;;  %v4359_v56 = vld [vmem:[%s5168_s21 + $0x498] sm:$0xf] }
 0x337   : > { %v3221_v0 = vadd.f32 %v2588_v12, %v409_v60  ;;  %v4360_v12 = vor.u32 %v4602_v62, %v4359_v56  ;;  %3043 = vmatpush.bf16.msra.mxu2 %v4200_v42  ;;  %v424_v62 = vld [vmem:[%s5177_s19 + $0x1c8] sm:$0xff] }
 0x339   : > { %3341 = vst [vmem:[%s5177_s19 + $0x150] sm:$0xff] %v3221_v0  ;;  %v419_v0 = vld [vmem:[%s5177_s19 + $0x1a0] sm:$0xff]  ;;  %3112 = vmatpush.bf16.msra.mxu3 %v4360_v12 }
 0x33a   : > { %v2520_v59 = vpop.f32.mrf.mxu2  ;;  %v2385_v61 = vpop.f32.mrf.mxu0 }
 0x33b   : > { %v2521_v53 = vadd.f32 %v2520_v59, %v2452_v8  ;;  %v2589_v43 = vpop.f32.mrf.mxu3  ;;  %v2454_v51 = vpop.f32.mrf.mxu1 }
 0x33c   : > { %v2455_v29 = vadd.f32 %v2454_v51, %v2385_v61  ;;  %v3879_v61 = vld [vmem:[%s5168_s21 + $0xd8] sm:$0xf] }
 0x33d   : > { %v2590_v28 = vadd.f32 %v2589_v43, %v2521_v53  ;;  %2640 = vmatmul.bf16.gmra.mxu0 %v5528_v13 }
 0x33e   : > { %2709 = vmatmul.bf16.gmra.mxu1 %v5530_v14 }
 0x33f   : > { %v3226_v25 = vadd.f32 %v2590_v28, %v414_v52  ;;  %2778 = vmatmul.bf16.gmra.mxu2 %v5532_v15  ;;  %v4482_v52 = vld [vmem:[%s5168_s21 + $0xe8] sm:$0xf0] }
 0x340   : > { %2847 = vmatmul.bf16.gmra.mxu3 %v5534_v16  ;;  %v3880_v28 = vor.u32 %v4482_v52, %v3879_v61 }
 0x341   : > { %3346 = vst [vmem:[%s5177_s19 + $0x178] sm:$0xff] %v3226_v25  ;;  %v4039_v25 = vld [vmem:[%s5168_s21 + $0x218] sm:$0xf] }
 0x342   : > { %v2523_v30 = vpop.f32.mrf.mxu2  ;;  %v2387_v63 = vpop.f32.mrf.mxu0  ;;  %2905 = vmatpush.bf16.msra.mxu0 %v3880_v28  ;;  %v4179_v28 = vld [vmem:[%s5168_s21 + $0x330] sm:$0xf] }
 0x343   : > { %v2524_v7 = vadd.f32 %v2523_v30, %v2455_v29  ;;  %v2592_v60 = vpop.f32.mrf.mxu3  ;;  %v2456_v8 = vpop.f32.mrf.mxu1  ;;  %v4522_v29 = vld [vmem:[%s5168_s21 + $0x228] sm:$0xf0] }
 0x344   : > { %v2457_v43 = vadd.f32 %v2456_v8, %v2387_v63  ;;  %v4040_v56 = vor.u32 %v4522_v29, %v4039_v25  ;;  %v4557_v25 = vld [vmem:[%s5168_s21 + $0x340] sm:$0xf0] }
 0x345   : > { %v2593_v59 = vadd.f32 %v2592_v60, %v2524_v7 }
 0x346   : > { %2974 = vmatpush.bf16.msra.mxu1 %v4040_v56 }
 0x347   : > { %v3231_v53 = vadd.f32 %v2593_v59, %v419_v0 }
 0x349   : > { %3351 = vst [vmem:[%s5177_s19 + $0x1a0] sm:$0xff] %v3231_v53  ;;  %v429_v53 = vld [vmem:[%s5177_s19 + $0x1f0] sm:$0xff] }
 0x34a   : > { %v2525_v51 = vpop.f32.mrf.mxu2  ;;  %v2390_v30 = vpop.f32.mrf.mxu0 }
 0x34b   : > { %v2526_v32 = vadd.f32 %v2525_v51, %v2457_v43  ;;  %v2594_v57 = vpop.f32.mrf.mxu3  ;;  %v2459_v42 = vpop.f32.mrf.mxu1 }
 0x34c   : > { %v2460_v63 = vadd.f32 %v2459_v42, %v2390_v30  ;;  %v4597_v30 = vld [vmem:[%s5168_s21 + $0x480] sm:$0xf0] }
 0x34d   : > { %v2595_v7 = vadd.f32 %v2594_v57, %v2526_v32  ;;  %2645 = vmatmul.bf16.gmra.mxu0 %v5556_v37  ;;  %v4180_v32 = vor.u32 %v4557_v25, %v4179_v28  ;;  %v4339_v57 = vld [vmem:[%s5168_s21 + $0x470] sm:$0xf] }
 0x34e   : > { %2714 = vmatmul.bf16.gmra.mxu1 %v5558_v38 }
 0x34f   : > { %v3236_v60 = vadd.f32 %v2595_v7, %v424_v62  ;;  %2783 = vmatmul.bf16.gmra.mxu2 %v5560_v39  ;;  %v4340_v7 = vor.u32 %v4597_v30, %v4339_v57  ;;  %v439_v57 = vld [vmem:[%s5177_s19 + $0x240] sm:$0xff] }
 0x350   : > { %2852 = vmatmul.bf16.gmra.mxu3 %v5562_v40  ;;  %3044 = vmatpush.bf16.msra.mxu2 %v4180_v32 }
 0x351   : > { %3356 = vst [vmem:[%s5177_s19 + $0x1c8] sm:$0xff] %v3236_v60  ;;  %v434_v60 = vld [vmem:[%s5177_s19 + $0x218] sm:$0xff]  ;;  %3113 = vmatpush.bf16.msra.mxu3 %v4340_v7 }
 0x352   : > { %v2528_v12 = vpop.f32.mrf.mxu2  ;;  %v2392_v59 = vpop.f32.mrf.mxu0 }
 0x353   : > { %v2529_v0 = vadd.f32 %v2528_v12, %v2460_v63  ;;  %v2597_v8 = vpop.f32.mrf.mxu3  ;;  %v2461_v43 = vpop.f32.mrf.mxu1 }
 0x354   : > { %v2462_v51 = vadd.f32 %v2461_v43, %v2392_v59  ;;  %v3859_v59 = vld [vmem:[%s5168_s21 + $0xb0] sm:$0xf] }
 0x355   : > { %v2598_v61 = vadd.f32 %v2597_v8, %v2529_v0 }
 0x357   : > { %v3241_v52 = vadd.f32 %v2598_v61, %v429_v53  ;;  %v4477_v53 = vld [vmem:[%s5168_s21 + $0xc0] sm:$0xf0] }
 0x358   : > { %v3860_v61 = vor.u32 %v4477_v53, %v3859_v59 }
 0x359   : > { %3361 = vst [vmem:[%s5177_s19 + $0x1f0] sm:$0xff] %v3241_v52  ;;  %v4019_v52 = vld [vmem:[%s5168_s21 + $0x1f0] sm:$0xf] }
 0x35a   : > { %v2530_v29 = vpop.f32.mrf.mxu2  ;;  %v2395_v42 = vpop.f32.mrf.mxu0  ;;  %2906 = vmatpush.bf16.msra.mxu0 %v3860_v61  ;;  %v4159_v61 = vld [vmem:[%s5168_s21 + $0x308] sm:$0xf] }
 0x35b   : > { %v2531_v56 = vadd.f32 %v2530_v29, %v2462_v51  ;;  %v2599_v62 = vpop.f32.mrf.mxu3  ;;  %v2464_v63 = vpop.f32.mrf.mxu1  ;;  %v4517_v51 = vld [vmem:[%s5168_s21 + $0x200] sm:$0xf0] }
 0x35c   : > { %v2465_v8 = vadd.f32 %v2464_v63, %v2395_v42  ;;  %v4020_v32 = vor.u32 %v4517_v51, %v4019_v52  ;;  %v4552_v52 = vld [vmem:[%s5168_s21 + $0x318] sm:$0xf0] }
 0x35d   : > { %v2600_v12 = vadd.f32 %v2599_v62, %v2531_v56  ;;  %2650 = vmatmul.bf16.gmra.mxu0 %v5584_v1 }
 0x35e   : > { %2719 = vmatmul.bf16.gmra.mxu1 %v5586_v2 }
 0x35f   : > { %v3246_v0 = vadd.f32 %v2600_v12, %v434_v60  ;;  %2788 = vmatmul.bf16.gmra.mxu2 %v5588_v3  ;;  %2975 = vmatpush.bf16.msra.mxu1 %v4020_v32 }
 0x360   : > { %2857 = vmatmul.bf16.gmra.mxu3 %v5590_v4 }
 0x361   : > { %3366 = vst [vmem:[%s5177_s19 + $0x218] sm:$0xff] %v3246_v0  ;;  %v444_v0 = vld [vmem:[%s5177_s19 + $0x268] sm:$0xff] }
 0x362   : > { %v2533_v43 = vpop.f32.mrf.mxu2  ;;  %v2397_v29 = vpop.f32.mrf.mxu0 }
 0x363   : > { %v2534_v28 = vadd.f32 %v2533_v43, %v2465_v8  ;;  %v2602_v25 = vpop.f32.mrf.mxu3  ;;  %v2466_v30 = vpop.f32.mrf.mxu1 }
 0x364   : > { %v2467_v42 = vadd.f32 %v2466_v30, %v2397_v29  ;;  %v4592_v29 = vld [vmem:[%s5168_s21 + $0x458] sm:$0xf0] }
 0x365   : > { %v2603_v56 = vadd.f32 %v2602_v25, %v2534_v28  ;;  %v4160_v28 = vor.u32 %v4552_v52, %v4159_v61  ;;  %v4319_v25 = vld [vmem:[%s5168_s21 + $0x448] sm:$0xf] }
 0x367   : > { %v3251_v62 = vadd.f32 %v2603_v56, %v439_v57  ;;  %v4320_v56 = vor.u32 %v4592_v29, %v4319_v25  ;;  %3045 = vmatpush.bf16.msra.mxu2 %v4160_v28  ;;  %v454_v29 = vld [vmem:[%s5177_s19 + $0x2b8] sm:$0xff] }
 0x369   : > { %3371 = vst [vmem:[%s5177_s19 + $0x240] sm:$0xff] %v3251_v62  ;;  %v449_v62 = vld [vmem:[%s5177_s19 + $0x290] sm:$0xff]  ;;  %3114 = vmatpush.bf16.msra.mxu3 %v4320_v56 }
 0x36a   : > { %v2535_v7 = vpop.f32.mrf.mxu2  ;;  %v2400_v12 = vpop.f32.mrf.mxu0 }
 0x36b   : > { %v2536_v60 = vadd.f32 %v2535_v7, %v2467_v42  ;;  %v2604_v63 = vpop.f32.mrf.mxu3  ;;  %v2469_v8 = vpop.f32.mrf.mxu1 }
 0x36c   : > { %v2470_v43 = vadd.f32 %v2469_v8, %v2400_v12  ;;  %v3839_v12 = vld [vmem:[%s5168_s21 + $0x88] sm:$0xf] }
 0x36d   : > { %v2605_v59 = vadd.f32 %v2604_v63, %v2536_v60  ;;  %2655 = vmatmul.bf16.gmra.mxu0 %v5604_v17 }
 0x36e   : > { %2724 = vmatmul.bf16.gmra.mxu1 %v5606_v18 }
 0x36f   : > { %v3256_v53 = vadd.f32 %v2605_v59, %v444_v0  ;;  %2793 = vmatmul.bf16.gmra.mxu2 %v5608_v19  ;;  %v4472_v0 = vld [vmem:[%s5168_s21 + $0x98] sm:$0xf0] }
 0x370   : > { %2862 = vmatmul.bf16.gmra.mxu3 %v5610_v20  ;;  %v3840_v59 = vor.u32 %v4472_v0, %v3839_v12 }
 0x371   : > { %3376 = vst [vmem:[%s5177_s19 + $0x268] sm:$0xff] %v3256_v53  ;;  %v3999_v53 = vld [vmem:[%s5168_s21 + $0x1c8] sm:$0xf] }
 0x372   : > { %v2538_v51 = vpop.f32.mrf.mxu2  ;;  %v2402_v30 = vpop.f32.mrf.mxu0  ;;  %2907 = vmatpush.bf16.msra.mxu0 %v3840_v59  ;;  %v4139_v59 = vld [vmem:[%s5168_s21 + $0x2e0] sm:$0xf] }
 0x373   : > { %v2539_v32 = vadd.f32 %v2538_v51, %v2470_v43  ;;  %v2607_v57 = vpop.f32.mrf.mxu3  ;;  %v2471_v42 = vpop.f32.mrf.mxu1  ;;  %v4512_v43 = vld [vmem:[%s5168_s21 + $0x1d8] sm:$0xf0] }
 0x374   : > { %v2472_v63 = vadd.f32 %v2471_v42, %v2402_v30  ;;  %v4000_v25 = vor.u32 %v4512_v43, %v3999_v53  ;;  %v4547_v53 = vld [vmem:[%s5168_s21 + $0x2f0] sm:$0xf0] }
 0x375   : > { %v2608_v7 = vadd.f32 %v2607_v57, %v2539_v32 }
 0x376   : > { %2976 = vmatpush.bf16.msra.mxu1 %v4000_v25 }
 0x377   : > { %v3261_v60 = vadd.f32 %v2608_v7, %v449_v62 }
 0x379   : > { %3381 = vst [vmem:[%s5177_s19 + $0x290] sm:$0xff] %v3261_v60  ;;  %v459_v60 = vld [vmem:[%s5177_s19 + $0x2e0] sm:$0xff] }
 0x37a   : > { %v2540_v8 = vpop.f32.mrf.mxu2  ;;  %v2405_v51 = vpop.f32.mrf.mxu0 }
 0x37b   : > { %v2541_v61 = vadd.f32 %v2540_v8, %v2472_v63  ;;  %v2609_v52 = vpop.f32.mrf.mxu3  ;;  %v2474_v28 = vpop.f32.mrf.mxu1 }
 0x37c   : > { %v2475_v30 = vadd.f32 %v2474_v28, %v2405_v51  ;;  %v4587_v51 = vld [vmem:[%s5168_s21 + $0x430] sm:$0xf0] }
 0x37d   : > { %v2610_v32 = vadd.f32 %v2609_v52, %v2541_v61  ;;  %2660 = vmatmul.bf16.gmra.mxu0 %v5632_v45  ;;  %v4140_v61 = vor.u32 %v4547_v53, %v4139_v59  ;;  %v4299_v52 = vld [vmem:[%s5168_s21 + $0x420] sm:$0xf] }
 0x37e   : > { %2729 = vmatmul.bf16.gmra.mxu1 %v5634_v46 }
 0x37f   : > { %v3266_v57 = vadd.f32 %v2610_v32, %v454_v29  ;;  %2798 = vmatmul.bf16.gmra.mxu2 %v5636_v47  ;;  %v4300_v32 = vor.u32 %v4587_v51, %v4299_v52  ;;  %v469_v52 = vld [vmem:[%s5177_s19 + $0x330] sm:$0xff] }
 0x380   : > { %2867 = vmatmul.bf16.gmra.mxu3 %v5638_v48  ;;  %3046 = vmatpush.bf16.msra.mxu2 %v4140_v61 }
 0x381   : > { %3386 = vst [vmem:[%s5177_s19 + $0x2b8] sm:$0xff] %v3266_v57  ;;  %v464_v57 = vld [vmem:[%s5177_s19 + $0x308] sm:$0xff]  ;;  %3115 = vmatpush.bf16.msra.mxu3 %v4300_v32 }
 0x382   : > { %v2543_v56 = vpop.f32.mrf.mxu2  ;;  %v2407_v7 = vpop.f32.mrf.mxu0 }
 0x383   : > { %v2544_v62 = vadd.f32 %v2543_v56, %v2475_v30  ;;  %v2612_v42 = vpop.f32.mrf.mxu3  ;;  %v2476_v63 = vpop.f32.mrf.mxu1 }
 0x384   : > { %v2477_v8 = vadd.f32 %v2476_v63, %v2407_v7  ;;  %v3819_v7 = vld [vmem:[%s5168_s21 + $0x60] sm:$0xf] }
 0x385   : > { %v2613_v12 = vadd.f32 %v2612_v42, %v2544_v62 }
 0x387   : > { %v3271_v0 = vadd.f32 %v2613_v12, %v459_v60  ;;  %v4467_v60 = vld [vmem:[%s5168_s21 + $0x70] sm:$0xf0] }
 0x388   : > { %v3820_v12 = vor.u32 %v4467_v60, %v3819_v7 }
 0x389   : > { %3391 = vst [vmem:[%s5177_s19 + $0x2e0] sm:$0xff] %v3271_v0  ;;  %v3979_v0 = vld [vmem:[%s5168_s21 + $0x1a0] sm:$0xf] }
 0x38a   : > { %v2545_v43 = vpop.f32.mrf.mxu2  ;;  %v2410_v28 = vpop.f32.mrf.mxu0  ;;  %2908 = vmatpush.bf16.msra.mxu0 %v3820_v12  ;;  %v4119_v12 = vld [vmem:[%s5168_s21 + $0x2b8] sm:$0xf] }
 0x38b   : > { %v2546_v25 = vadd.f32 %v2545_v43, %v2477_v8  ;;  %v2614_v29 = vpop.f32.mrf.mxu3  ;;  %v2479_v30 = vpop.f32.mrf.mxu1  ;;  %v4507_v8 = vld [vmem:[%s5168_s21 + $0x1b0] sm:$0xf0] }
 0x38c   : > { %v2480_v42 = vadd.f32 %v2479_v30, %v2410_v28  ;;  %v3980_v61 = vor.u32 %v4507_v8, %v3979_v0  ;;  %v4542_v0 = vld [vmem:[%s5168_s21 + $0x2c8] sm:$0xf0] }
 0x38d   : > { %v2615_v56 = vadd.f32 %v2614_v29, %v2546_v25  ;;  %2665 = vmatmul.bf16.gmra.mxu0 %v5660_v21 }
 0x38e   : > { %2734 = vmatmul.bf16.gmra.mxu1 %v5662_v22 }
 0x38f   : > { %v3276_v62 = vadd.f32 %v2615_v56, %v464_v57  ;;  %2803 = vmatmul.bf16.gmra.mxu2 %v5664_v23  ;;  %2977 = vmatpush.bf16.msra.mxu1 %v3980_v61 }
 0x390   : > { %2872 = vmatmul.bf16.gmra.mxu3 %v5666_v24 }
 0x391   : > { %3396 = vst [vmem:[%s5177_s19 + $0x308] sm:$0xff] %v3276_v62  ;;  %v474_v62 = vld [vmem:[%s5177_s19 + $0x358] sm:$0xff] }
 0x392   : > { %v2548_v63 = vpop.f32.mrf.mxu2  ;;  %v2412_v43 = vpop.f32.mrf.mxu0 }
 0x393   : > { %v2549_v59 = vadd.f32 %v2548_v63, %v2480_v42  ;;  %v2617_v53 = vpop.f32.mrf.mxu3  ;;  %v2481_v51 = vpop.f32.mrf.mxu1 }
 0x394   : > { %v2482_v28 = vadd.f32 %v2481_v51, %v2412_v43  ;;  %v4582_v43 = vld [vmem:[%s5168_s21 + $0x408] sm:$0xf0] }
 0x395   : > { %v2618_v25 = vadd.f32 %v2617_v53, %v2549_v59  ;;  %v4120_v59 = vor.u32 %v4542_v0, %v4119_v12  ;;  %v4279_v53 = vld [vmem:[%s5168_s21 + $0x3f8] sm:$0xf] }
 0x397   : > { %v3281_v29 = vadd.f32 %v2618_v25, %v469_v52  ;;  %v4280_v25 = vor.u32 %v4582_v43, %v4279_v53  ;;  %3047 = vmatpush.bf16.msra.mxu2 %v4120_v59  ;;  %v484_v43 = vld [vmem:[%s5177_s19 + $0x3a8] sm:$0xff] }
 0x399   : > { %3401 = vst [vmem:[%s5177_s19 + $0x330] sm:$0xff] %v3281_v29  ;;  %v479_v29 = vld [vmem:[%s5177_s19 + $0x380] sm:$0xff]  ;;  %3116 = vmatpush.bf16.msra.mxu3 %v4280_v25 }
 0x39a   : > { %v2550_v32 = vpop.f32.mrf.mxu2  ;;  %v2415_v56 = vpop.f32.mrf.mxu0 }
 0x39b   : > { %v2551_v57 = vadd.f32 %v2550_v32, %v2482_v28  ;;  %v2619_v30 = vpop.f32.mrf.mxu3  ;;  %v2484_v42 = vpop.f32.mrf.mxu1 }
 0x39c   : > { %v2485_v63 = vadd.f32 %v2484_v42, %v2415_v56  ;;  %v3799_v56 = vld [vmem:[%s5168_s21 + $0x38] sm:$0xf] }
 0x39d   : > { %v2620_v7 = vadd.f32 %v2619_v30, %v2551_v57  ;;  %2670 = vmatmul.bf16.gmra.mxu0 %v5680_v33 }
 0x39e   : > { %2739 = vmatmul.bf16.gmra.mxu1 %v5682_v34 }
 0x39f   : > { %v3286_v60 = vadd.f32 %v2620_v7, %v474_v62  ;;  %2808 = vmatmul.bf16.gmra.mxu2 %v5684_v35  ;;  %v4462_v62 = vld [vmem:[%s5168_s21 + $0x48] sm:$0xf0] }
 0x3a0   : > { %2877 = vmatmul.bf16.gmra.mxu3 %v5686_v36  ;;  %v3800_v7 = vor.u32 %v4462_v62, %v3799_v56 }
 0x3a1   : > { %3406 = vst [vmem:[%s5177_s19 + $0x358] sm:$0xff] %v3286_v60  ;;  %v3959_v60 = vld [vmem:[%s5168_s21 + $0x178] sm:$0xf] }
 0x3a2   : > { %v2553_v8 = vpop.f32.mrf.mxu2  ;;  %v2417_v51 = vpop.f32.mrf.mxu0  ;;  %2909 = vmatpush.bf16.msra.mxu0 %v3800_v7  ;;  %v4099_v7 = vld [vmem:[%s5168_s21 + $0x290] sm:$0xf] }
 0x3a3   : > { %v2554_v61 = vadd.f32 %v2553_v8, %v2485_v63  ;;  %v2622_v52 = vpop.f32.mrf.mxu3  ;;  %v2486_v28 = vpop.f32.mrf.mxu1  ;;  %v4502_v63 = vld [vmem:[%s5168_s21 + $0x188] sm:$0xf0] }
 0x3a4   : > { %v2487_v30 = vadd.f32 %v2486_v28, %v2417_v51  ;;  %v3960_v53 = vor.u32 %v4502_v63, %v3959_v60  ;;  %v4537_v60 = vld [vmem:[%s5168_s21 + $0x2a0] sm:$0xf0] }
 0x3a5   : > { %v2623_v32 = vadd.f32 %v2622_v52, %v2554_v61 }
 0x3a6   : > { %2978 = vmatpush.bf16.msra.mxu1 %v3960_v53 }
 0x3a7   : > { %v3291_v57 = vadd.f32 %v2623_v32, %v479_v29 }
 0x3a9   : > { %3411 = vst [vmem:[%s5177_s19 + $0x380] sm:$0xff] %v3291_v57  ;;  %v370_v57 = vld [vmem:[%s5177_s19 + $0x18] sm:$0xff] }
 0x3aa   : > { %v2555_v42 = vpop.f32.mrf.mxu2  ;;  %v2636_v8 = vpop.f32.mrf.mxu0 }
 0x3ab   : > { %v2556_v12 = vadd.f32 %v2555_v42, %v2487_v30  ;;  %v2624_v0 = vpop.f32.mrf.mxu3  ;;  %v2705_v59 = vpop.f32.mrf.mxu1 }
 0x3ac   : > { %v2706_v51 = vadd.f32 %v2705_v59, %v2636_v8  ;;  %v4577_v8 = vld [vmem:[%s5168_s21 + $0x3e0] sm:$0xf0] }
 0x3ad   : > { %v2625_v61 = vadd.f32 %v2624_v0, %v2556_v12  ;;  %2675 = vmatmul.bf16.gmra.mxu0 %v5707_v6  ;;  %v4100_v12 = vor.u32 %v4537_v60, %v4099_v7  ;;  %v4259_v0 = vld [vmem:[%s5168_s21 + $0x3d0] sm:$0xf]  ;;  %v4497_v7 = vld [vmem:[%s5168_s21 + $0x160] sm:$0xf0] }
 0x3ae   : > { %2744 = vmatmul.bf16.gmra.mxu1 %v5710_v10 }
 0x3af   : > { %v3296_v52 = vadd.f32 %v2625_v61, %v484_v43  ;;  %2813 = vmatmul.bf16.gmra.mxu2 %v5712_v11  ;;  %v4260_v61 = vor.u32 %v4577_v8, %v4259_v0  ;;  %v380_v8 = vld [vmem:[%s5177_s19 + $0x68] sm:$0xff] }
 0x3b0   : > { %2882 = vmatmul.bf16.gmra.mxu3 %v5714_v26  ;;  %3048 = vmatpush.bf16.msra.mxu2 %v4100_v12 }
 0x3b1   : > { %3416 = vst [vmem:[%s5177_s19 + $0x3a8] sm:$0xff] %v3296_v52  ;;  %v375_v52 = vld [vmem:[%s5177_s19 + $0x40] sm:$0xff]  ;;  %3117 = vmatpush.bf16.msra.mxu3 %v4260_v61 }
 0x3b2   : > { %v2774_v25 = vpop.f32.mrf.mxu2  ;;  %v2638_v32 = vpop.f32.mrf.mxu0 }
 0x3b3   : > { %v2775_v29 = vadd.f32 %v2774_v25, %v2706_v51  ;;  %v2843_v28 = vpop.f32.mrf.mxu3  ;;  %v2707_v30 = vpop.f32.mrf.mxu1 }
 0x3b4   : > { %v2708_v42 = vadd.f32 %v2707_v30, %v2638_v32  ;;  %v6539_v32 = vld [vmem:[#allocation20_spill] sm:$0xff]  ;;  %v4457_v30 = vld [vmem:[%s5168_s21 + $0x20] sm:$0xf0] }
 0x3b5   : > { %v2844_v56 = vadd.f32 %v2843_v28, %v2775_v29 }
 0x3b7   : > { %v3182_v62 = vadd.f32 %v2844_v56, %v370_v57  ;;  %v3779_v57 = vld [vmem:[%s5168_s21 + $0x10] sm:$0xf] }
 0x3b9   : > { %3302 = vst [vmem:[%s5177_s19 + $0x18] sm:$0xff] %v3182_v62  ;;  %v3780_v62 = vor.u32 %v4457_v30, %v3779_v57  ;;  %v385_v57 = vld [vmem:[%s5177_s19 + $0x90] sm:$0xff] }
 0x3ba   : > { %v2776_v63 = vpop.f32.mrf.mxu2  ;;  %v2641_v59 = vpop.f32.mrf.mxu0 }
 0x3bb   : > { %v2777_v53 = vadd.f32 %v2776_v63, %v2708_v42  ;;  %v2845_v43 = vpop.f32.mrf.mxu3  ;;  %v2710_v51 = vpop.f32.mrf.mxu1  ;;  %v3939_v42 = vld [vmem:[%s5168_s21 + $0x150] sm:$0xf]  ;;  %2910 = vmatpush.bf16.msra.mxu0 %v3780_v62  ;;  %v6541_v62 = vld [vmem:[#allocation22_spill] sm:$0xff] }
 0x3bc   : > { %v2711_v28 = vadd.f32 %v2710_v51, %v2641_v59  ;;  %v3940_v0 = vor.u32 %v4497_v7, %v3939_v42 }
 0x3bd   : > { %v2846_v25 = vadd.f32 %v2845_v43, %v2777_v53  ;;  %2680 = vmatmul.bf16.gmra.mxu0 %v5733_v5 }
 0x3be   : > { %2749 = vmatmul.bf16.gmra.mxu1 %v5736_v27 }
 0x3bf   : > { %v3187_v29 = vadd.f32 %v2846_v25, %v375_v52  ;;  %2818 = vmatmul.bf16.gmra.mxu2 %v6528_v41  ;;  %2979 = vmatpush.bf16.msra.mxu1 %v3940_v0 }
 0x3c0   : > { %2887 = vmatmul.bf16.gmra.mxu3 %v6539_v32 }
 0x3c1   : > { %3307 = vst [vmem:[%s5177_s19 + $0x40] sm:$0xff] %v3187_v29 }
 0x3c2   : > { %v2779_v56 = vpop.f32.mrf.mxu2  ;;  %v2643_v12 = vpop.f32.mrf.mxu0 }
 0x3c3   : > { %v2780_v60 = vadd.f32 %v2779_v56, %v2711_v28  ;;  %v2848_v63 = vpop.f32.mrf.mxu3  ;;  %v2712_v53 = vpop.f32.mrf.mxu1  ;;  %v6540_v56 = vld [vmem:[#allocation21_spill] sm:$0xff] }
 0x3c4   : > { %v2713_v61 = vadd.f32 %v2712_v53, %v2643_v12 }
 0x3c5   : > { %v2849_v43 = vadd.f32 %v2848_v63, %v2780_v60  ;;  %v6542_v60 = vld [vmem:[#allocation23_spill] sm:$0xff]  ;;  %v6543_v63 = vld [vmem:[#allocation24_spill] sm:$0xff] }
 0x3c7   : > { %v3192_v59 = vadd.f32 %v2849_v43, %v380_v8  ;;  %v390_v43 = vld [vmem:[%s5177_s19 + $0xb8] sm:$0xff] }
 0x3c9   : > { %3312 = vst [vmem:[%s5177_s19 + $0x68] sm:$0xff] %v3192_v59 }
 0x3ca   : > { %v2781_v52 = vpop.f32.mrf.mxu2  ;;  %v2646_v29 = vpop.f32.mrf.mxu0 }
 0x3cb   : > { %v2782_v51 = vadd.f32 %v2781_v52, %v2713_v61  ;;  %v2850_v25 = vpop.f32.mrf.mxu3  ;;  %v2715_v28 = vpop.f32.mrf.mxu1 }
 0x3cc   : > { %v2716_v7 = vadd.f32 %v2715_v28, %v2646_v29 }
 0x3cd   : > { %v2851_v30 = vadd.f32 %v2850_v25, %v2782_v51  ;;  %2685 = vmatmul.bf16.gmra.mxu0 %v6540_v56 }
 0x3ce   : > { %2754 = vmatmul.bf16.gmra.mxu1 %v6541_v62 }
 0x3cf   : > { %v3197_v42 = vadd.f32 %v2851_v30, %v385_v57  ;;  %2823 = vmatmul.bf16.gmra.mxu2 %v6542_v60  ;;  %v395_v30 = vld [vmem:[%s5177_s19 + $0xe0] sm:$0xff] }
 0x3d0   : > { %2892 = vmatmul.bf16.gmra.mxu3 %v6543_v63 }
 0x3d1   : > { %3317 = vst [vmem:[%s5177_s19 + $0x90] sm:$0xff] %v3197_v42 }
 0x3d2   : > { %v2784_v12 = vpop.f32.mrf.mxu2  ;;  %v2648_v53 = vpop.f32.mrf.mxu0 }
 0x3d3   : > { %v2785_v0 = vadd.f32 %v2784_v12, %v2716_v7  ;;  %v2853_v8 = vpop.f32.mrf.mxu3  ;;  %v2717_v59 = vpop.f32.mrf.mxu1 }
 0x3d4   : > { %v2718_v51 = vadd.f32 %v2717_v59, %v2648_v53 }
 0x3d5   : > { %v2854_v61 = vadd.f32 %v2853_v8, %v2785_v0 }
 0x3d7   : > { %v3202_v52 = vadd.f32 %v2854_v61, %v390_v43  ;;  %v400_v43 = vld [vmem:[%s5177_s19 + $0x108] sm:$0xff] }
 0x3d9   : > { %3322 = vst [vmem:[%s5177_s19 + $0xb8] sm:$0xff] %v3202_v52 }
 0x3da   : > { %v2786_v25 = vpop.f32.mrf.mxu2  ;;  %v2651_v28 = vpop.f32.mrf.mxu0 }
 0x3db   : > { %v2787_v29 = vadd.f32 %v2786_v25, %v2718_v51  ;;  %v2855_v57 = vpop.f32.mrf.mxu3  ;;  %v2720_v63 = vpop.f32.mrf.mxu1 }
 0x3dc   : > { %v2721_v7 = vadd.f32 %v2720_v63, %v2651_v28 }
 0x3dd   : > { %v2856_v60 = vadd.f32 %v2855_v57, %v2787_v29  ;;  %2690 = vmatmul.bf16.gmra.mxu0 %v5792_v9  ;;  %v405_v57 = vld [vmem:[%s5177_s19 + $0x130] sm:$0xff] }
 0x3de   : > { %2759 = vmatmul.bf16.gmra.mxu1 %v5796_v50 }
 0x3df   : > { %v3207_v42 = vadd.f32 %v2856_v60, %v395_v30  ;;  %2828 = vmatmul.bf16.gmra.mxu2 %v5798_v44 }
 0x3e0   : > { %2897 = vmatmul.bf16.gmra.mxu3 %v5801_v31 }
 0x3e1   : > { %3327 = vst [vmem:[%s5177_s19 + $0xe0] sm:$0xff] %v3207_v42 }
 0x3e2   : > { %v2789_v12 = vpop.f32.mrf.mxu2  ;;  %v2653_v53 = vpop.f32.mrf.mxu0 }
 0x3e3   : > { %v2790_v0 = vadd.f32 %v2789_v12, %v2721_v7  ;;  %v2858_v8 = vpop.f32.mrf.mxu3  ;;  %v2722_v59 = vpop.f32.mrf.mxu1 }
 0x3e4   : > { %v2723_v60 = vadd.f32 %v2722_v59, %v2653_v53 }
 0x3e5   : > { %v2859_v61 = vadd.f32 %v2858_v8, %v2790_v0 }
 0x3e7   : > { %v3212_v52 = vadd.f32 %v2859_v61, %v400_v43  ;;  %v410_v43 = vld [vmem:[%s5177_s19 + $0x158] sm:$0xff] }
 0x3e9   : > { %3332 = vst [vmem:[%s5177_s19 + $0x108] sm:$0xff] %v3212_v52 }
 0x3ea   : > { %v2791_v63 = vpop.f32.mrf.mxu2  ;;  %v2656_v29 = vpop.f32.mrf.mxu0 }
 0x3eb   : > { %v2792_v51 = vadd.f32 %v2791_v63, %v2723_v60  ;;  %v2860_v25 = vpop.f32.mrf.mxu3  ;;  %v2725_v28 = vpop.f32.mrf.mxu1 }
 0x3ec   : > { %v2726_v7 = vadd.f32 %v2725_v28, %v2656_v29 }
 0x3ed   : > { %v2861_v30 = vadd.f32 %v2860_v25, %v2792_v51  ;;  %2911 = vmatmul.bf16.vlgmr.msra.gmra.mxu0 %v5499_v49  ;;  %v415_v51 = vld [vmem:[%s5177_s19 + $0x180] sm:$0xff] }
 0x3ee   : > { %2980 = vmatmul.bf16.vlgmr.msra.gmra.mxu1 %v5504_v54 }
 0x3ef   : > { %v3217_v42 = vadd.f32 %v2861_v30, %v405_v57  ;;  %3049 = vmatmul.bf16.vlgmr.msra.gmra.mxu2 %v5506_v55 }
 0x3f0   : > { %3118 = vmatmul.bf16.vlgmr.msra.gmra.mxu3 %v5510_v58 }
 0x3f1   : > { %3337 = vst [vmem:[%s5177_s19 + $0x130] sm:$0xff] %v3217_v42 }
 0x3f2   : > { %v2794_v12 = vpop.f32.mrf.mxu2  ;;  %v2658_v53 = vpop.f32.mrf.mxu0 }
 0x3f3   : > { %v2795_v0 = vadd.f32 %v2794_v12, %v2726_v7  ;;  %v2863_v8 = vpop.f32.mrf.mxu3  ;;  %v2727_v59 = vpop.f32.mrf.mxu1  ;;  %v420_v12 = vld [vmem:[%s5177_s19 + $0x1a8] sm:$0xff] }
 0x3f4   : > { %v2728_v49 = vadd.f32 %v2727_v59, %v2658_v53 }
 0x3f5   : > { %v2864_v61 = vadd.f32 %v2863_v8, %v2795_v0 }
 0x3f7   : > { %v3222_v52 = vadd.f32 %v2864_v61, %v410_v43  ;;  %v425_v61 = vld [vmem:[%s5177_s19 + $0x1d0] sm:$0xff] }
 0x3f9   : > { %3342 = vst [vmem:[%s5177_s19 + $0x158] sm:$0xff] %v3222_v52 }
 0x3fa   : > { %v2796_v60 = vpop.f32.mrf.mxu2  ;;  %v2661_v55 = vpop.f32.mrf.mxu0 }
 0x3fb   : > { %v2797_v63 = vadd.f32 %v2796_v60, %v2728_v49  ;;  %v2865_v54 = vpop.f32.mrf.mxu3  ;;  %v2730_v58 = vpop.f32.mrf.mxu1 }
 0x3fc   : > { %v2731_v57 = vadd.f32 %v2730_v58, %v2661_v55  ;;  %v430_v58 = vld [vmem:[%s5177_s19 + $0x1f8] sm:$0xff] }
 0x3fd   : > { %v2866_v25 = vadd.f32 %v2865_v54, %v2797_v63  ;;  %2916 = vmatmul.bf16.gmra.mxu0 %v5528_v13 }
 0x3fe   : > { %2985 = vmatmul.bf16.gmra.mxu1 %v5530_v14 }
 0x3ff   : > { %v3227_v29 = vadd.f32 %v2866_v25, %v415_v51  ;;  %3054 = vmatmul.bf16.gmra.mxu2 %v5532_v15 }
 0x400   : > { %3123 = vmatmul.bf16.gmra.mxu3 %v5534_v16 }
 0x401   : > { %3347 = vst [vmem:[%s5177_s19 + $0x180] sm:$0xff] %v3227_v29 }
 0x402   : > { %v2799_v28 = vpop.f32.mrf.mxu2  ;;  %v2663_v7 = vpop.f32.mrf.mxu0 }
 0x403   : > { %v2800_v30 = vadd.f32 %v2799_v28, %v2731_v57  ;;  %v2868_v42 = vpop.f32.mrf.mxu3  ;;  %v2732_v0 = vpop.f32.mrf.mxu1 }
 0x404   : > { %v2733_v13 = vadd.f32 %v2732_v0, %v2663_v7 }
 0x405   : > { %v2869_v8 = vadd.f32 %v2868_v42, %v2800_v30  ;;  %v435_v42 = vld [vmem:[%s5177_s19 + $0x220] sm:$0xff] }
 0x407   : > { %v3232_v53 = vadd.f32 %v2869_v8, %v420_v12 }
 0x409   : > { %3352 = vst [vmem:[%s5177_s19 + $0x1a8] sm:$0xff] %v3232_v53 }
 0x40a   : > { %v2801_v43 = vpop.f32.mrf.mxu2  ;;  %v2666_v15 = vpop.f32.mrf.mxu0 }
 0x40b   : > { %v2802_v59 = vadd.f32 %v2801_v43, %v2733_v13  ;;  %v2870_v14 = vpop.f32.mrf.mxu3  ;;  %v2735_v16 = vpop.f32.mrf.mxu1 }
 0x40c   : > { %v2736_v60 = vadd.f32 %v2735_v16, %v2666_v15 }
 0x40d   : > { %v2871_v52 = vadd.f32 %v2870_v14, %v2802_v59  ;;  %2921 = vmatmul.bf16.gmra.mxu0 %v5556_v37  ;;  %v440_v59 = vld [vmem:[%s5177_s19 + $0x248] sm:$0xff] }
 0x40e   : > { %2990 = vmatmul.bf16.gmra.mxu1 %v5558_v38 }
 0x40f   : > { %v3237_v49 = vadd.f32 %v2871_v52, %v425_v61  ;;  %3059 = vmatmul.bf16.gmra.mxu2 %v5560_v39 }
 0x410   : > { %3128 = vmatmul.bf16.gmra.mxu3 %v5562_v40 }
 0x411   : > { %3357 = vst [vmem:[%s5177_s19 + $0x1d0] sm:$0xff] %v3237_v49  ;;  %v445_v49 = vld [vmem:[%s5177_s19 + $0x270] sm:$0xff] }
 0x412   : > { %v2804_v63 = vpop.f32.mrf.mxu2  ;;  %v2668_v51 = vpop.f32.mrf.mxu0 }
 0x413   : > { %v2805_v54 = vadd.f32 %v2804_v63, %v2736_v60  ;;  %v2873_v55 = vpop.f32.mrf.mxu3  ;;  %v2737_v25 = vpop.f32.mrf.mxu1 }
 0x414   : > { %v2738_v37 = vadd.f32 %v2737_v25, %v2668_v51 }
 0x415   : > { %v2874_v29 = vadd.f32 %v2873_v55, %v2805_v54 }
 0x417   : > { %v3242_v57 = vadd.f32 %v2874_v29, %v430_v58  ;;  %v450_v29 = vld [vmem:[%s5177_s19 + $0x298] sm:$0xff] }
 0x419   : > { %3362 = vst [vmem:[%s5177_s19 + $0x1f8] sm:$0xff] %v3242_v57 }
 0x41a   : > { %v2806_v28 = vpop.f32.mrf.mxu2  ;;  %v2671_v39 = vpop.f32.mrf.mxu0 }
 0x41b   : > { %v2807_v30 = vadd.f32 %v2806_v28, %v2738_v37  ;;  %v2875_v38 = vpop.f32.mrf.mxu3  ;;  %v2740_v40 = vpop.f32.mrf.mxu1 }
 0x41c   : > { %v2741_v0 = vadd.f32 %v2740_v40, %v2671_v39  ;;  %v455_v39 = vld [vmem:[%s5177_s19 + $0x2c0] sm:$0xff] }
 0x41d   : > { %v2876_v7 = vadd.f32 %v2875_v38, %v2807_v30  ;;  %2926 = vmatmul.bf16.gmra.mxu0 %v5584_v1 }
 0x41e   : > { %2995 = vmatmul.bf16.gmra.mxu1 %v5586_v2 }
 0x41f   : > { %v3247_v12 = vadd.f32 %v2876_v7, %v435_v42  ;;  %3064 = vmatmul.bf16.gmra.mxu2 %v5588_v3 }
 0x420   : > { %3133 = vmatmul.bf16.gmra.mxu3 %v5590_v4 }
 0x421   : > { %3367 = vst [vmem:[%s5177_s19 + $0x220] sm:$0xff] %v3247_v12 }
 0x422   : > { %v2809_v8 = vpop.f32.mrf.mxu2  ;;  %v2673_v43 = vpop.f32.mrf.mxu0 }
 0x423   : > { %v2810_v53 = vadd.f32 %v2809_v8, %v2741_v0  ;;  %v2878_v13 = vpop.f32.mrf.mxu3  ;;  %v2742_v14 = vpop.f32.mrf.mxu1 }
 0x424   : > { %v2743_v1 = vadd.f32 %v2742_v14, %v2673_v43 }
 0x425   : > { %v2879_v15 = vadd.f32 %v2878_v13, %v2810_v53  ;;  %v460_v13 = vld [vmem:[%s5177_s19 + $0x2e8] sm:$0xff] }
 0x427   : > { %v3252_v61 = vadd.f32 %v2879_v15, %v440_v59 }
 0x429   : > { %3372 = vst [vmem:[%s5177_s19 + $0x248] sm:$0xff] %v3252_v61 }
 0x42a   : > { %v2811_v16 = vpop.f32.mrf.mxu2  ;;  %v2676_v3 = vpop.f32.mrf.mxu0 }
 0x42b   : > { %v2812_v52 = vadd.f32 %v2811_v16, %v2743_v1  ;;  %v2880_v2 = vpop.f32.mrf.mxu3  ;;  %v2745_v4 = vpop.f32.mrf.mxu1  ;;  %v465_v1 = vld [vmem:[%s5177_s19 + $0x310] sm:$0xff] }
 0x42c   : > { %v2746_v54 = vadd.f32 %v2745_v4, %v2676_v3 }
 0x42d   : > { %v2881_v60 = vadd.f32 %v2880_v2, %v2812_v52  ;;  %2931 = vmatmul.bf16.gmra.mxu0 %v5604_v17 }
 0x42e   : > { %3000 = vmatmul.bf16.gmra.mxu1 %v5606_v18 }
 0x42f   : > { %v3257_v63 = vadd.f32 %v2881_v60, %v445_v49  ;;  %3069 = vmatmul.bf16.gmra.mxu2 %v5608_v19 }
 0x430   : > { %3138 = vmatmul.bf16.gmra.mxu3 %v5610_v20 }
 0x431   : > { %3377 = vst [vmem:[%s5177_s19 + $0x270] sm:$0xff] %v3257_v63  ;;  %v470_v63 = vld [vmem:[%s5177_s19 + $0x338] sm:$0xff] }
 0x432   : > { %v2814_v55 = vpop.f32.mrf.mxu2  ;;  %v2678_v25 = vpop.f32.mrf.mxu0 }
 0x433   : > { %v2815_v51 = vadd.f32 %v2814_v55, %v2746_v54  ;;  %v2883_v58 = vpop.f32.mrf.mxu3  ;;  %v2747_v57 = vpop.f32.mrf.mxu1 }
 0x434   : > { %v2748_v17 = vadd.f32 %v2747_v57, %v2678_v25 }
 0x435   : > { %v2884_v37 = vadd.f32 %v2883_v58, %v2815_v51 }
 0x437   : > { %v3262_v28 = vadd.f32 %v2884_v37, %v450_v29  ;;  %v475_v29 = vld [vmem:[%s5177_s19 + $0x360] sm:$0xff] }
 0x439   : > { %3382 = vst [vmem:[%s5177_s19 + $0x298] sm:$0xff] %v3262_v28 }
 0x43a   : > { %v2816_v30 = vpop.f32.mrf.mxu2  ;;  %v2681_v19 = vpop.f32.mrf.mxu0 }
 0x43b   : > { %v2817_v38 = vadd.f32 %v2816_v30, %v2748_v17  ;;  %v2885_v18 = vpop.f32.mrf.mxu3  ;;  %v2750_v20 = vpop.f32.mrf.mxu1 }
 0x43c   : > { %v2751_v7 = vadd.f32 %v2750_v20, %v2681_v19  ;;  %v480_v19 = vld [vmem:[%s5177_s19 + $0x388] sm:$0xff] }
 0x43d   : > { %v2886_v42 = vadd.f32 %v2885_v18, %v2817_v38  ;;  %2936 = vmatmul.bf16.gmra.mxu0 %v5632_v45 }
 0x43e   : > { %3005 = vmatmul.bf16.gmra.mxu1 %v5634_v46 }
 0x43f   : > { %v3267_v40 = vadd.f32 %v2886_v42, %v455_v39  ;;  %3074 = vmatmul.bf16.gmra.mxu2 %v5636_v47 }
 0x440   : > { %3143 = vmatmul.bf16.gmra.mxu3 %v5638_v48 }
 0x441   : > { %3387 = vst [vmem:[%s5177_s19 + $0x2c0] sm:$0xff] %v3267_v40 }
 0x442   : > { %v2819_v12 = vpop.f32.mrf.mxu2  ;;  %v2683_v53 = vpop.f32.mrf.mxu0 }
 0x443   : > { %v2820_v0 = vadd.f32 %v2819_v12, %v2751_v7  ;;  %v2888_v8 = vpop.f32.mrf.mxu3  ;;  %v2752_v43 = vpop.f32.mrf.mxu1  ;;  %v485_v12 = vld [vmem:[%s5177_s19 + $0x3b0] sm:$0xff] }
 0x444   : > { %v2753_v45 = vadd.f32 %v2752_v43, %v2683_v53 }
 0x445   : > { %v2889_v59 = vadd.f32 %v2888_v8, %v2820_v0 }
 0x447   : > { %v3272_v14 = vadd.f32 %v2889_v59, %v460_v13 }
 0x449   : > { %3392 = vst [vmem:[%s5177_s19 + $0x2e8] sm:$0xff] %v3272_v14 }
 0x44a   : > { %v2821_v15 = vpop.f32.mrf.mxu2  ;;  %v2686_v47 = vpop.f32.mrf.mxu0 }
 0x44b   : > { %v2822_v61 = vadd.f32 %v2821_v15, %v2753_v45  ;;  %v2890_v46 = vpop.f32.mrf.mxu3  ;;  %v2755_v48 = vpop.f32.mrf.mxu1  ;;  %v371_v45 = vld [vmem:[%s5177_s19 + $0x20] sm:$0xff] }
 0x44c   : > { %v2756_v2 = vadd.f32 %v2755_v48, %v2686_v47  ;;  %v376_v48 = vld [vmem:[%s5177_s19 + $0x48] sm:$0xff] }
 0x44d   : > { %v2891_v16 = vadd.f32 %v2890_v46, %v2822_v61  ;;  %2941 = vmatmul.bf16.gmra.mxu0 %v5660_v21 }
 0x44e   : > { %3010 = vmatmul.bf16.gmra.mxu1 %v5662_v22 }
 0x44f   : > { %v3277_v52 = vadd.f32 %v2891_v16, %v465_v1  ;;  %3079 = vmatmul.bf16.gmra.mxu2 %v5664_v23 }
 0x450   : > { %3148 = vmatmul.bf16.gmra.mxu3 %v5666_v24 }
 0x451   : > { %3397 = vst [vmem:[%s5177_s19 + $0x310] sm:$0xff] %v3277_v52 }
 0x452   : > { %v2824_v3 = vpop.f32.mrf.mxu2  ;;  %v2688_v60 = vpop.f32.mrf.mxu0 }
 0x453   : > { %v2825_v49 = vadd.f32 %v2824_v3, %v2756_v2  ;;  %v2893_v4 = vpop.f32.mrf.mxu3  ;;  %v2757_v54 = vpop.f32.mrf.mxu1 }
 0x454   : > { %v2758_v21 = vadd.f32 %v2757_v54, %v2688_v60 }
 0x455   : > { %v2894_v55 = vadd.f32 %v2893_v4, %v2825_v49 }
 0x457   : > { %v3282_v51 = vadd.f32 %v2894_v55, %v470_v63  ;;  %v381_v63 = vld [vmem:[%s5177_s19 + $0x70] sm:$0xff] }
 0x459   : > { %3402 = vst [vmem:[%s5177_s19 + $0x338] sm:$0xff] %v3282_v51 }
 0x45a   : > { %v2826_v58 = vpop.f32.mrf.mxu2  ;;  %v2691_v23 = vpop.f32.mrf.mxu0 }
 0x45b   : > { %v2827_v25 = vadd.f32 %v2826_v58, %v2758_v21  ;;  %v2895_v22 = vpop.f32.mrf.mxu3  ;;  %v2760_v24 = vpop.f32.mrf.mxu1 }
 0x45c   : > { %v2761_v28 = vadd.f32 %v2760_v24, %v2691_v23  ;;  %v6544_v24 = vld [vmem:[#allocation23_spill] sm:$0xff] }
 0x45d   : > { %v2896_v57 = vadd.f32 %v2895_v22, %v2827_v25  ;;  %2946 = vmatmul.bf16.gmra.mxu0 %v5680_v33  ;;  %v386_v25 = vld [vmem:[%s5177_s19 + $0x98] sm:$0xff] }
 0x45e   : > { %3015 = vmatmul.bf16.gmra.mxu1 %v5682_v34 }
 0x45f   : > { %v3287_v37 = vadd.f32 %v2896_v57, %v475_v29  ;;  %3084 = vmatmul.bf16.gmra.mxu2 %v5684_v35  ;;  %v6545_v57 = vld [vmem:[#allocation24_spill] sm:$0xff] }
 0x460   : > { %3153 = vmatmul.bf16.gmra.mxu3 %v5686_v36 }
 0x461   : > { %3407 = vst [vmem:[%s5177_s19 + $0x360] sm:$0xff] %v3287_v37 }
 0x462   : > { %v2829_v17 = vpop.f32.mrf.mxu2  ;;  %v2693_v18 = vpop.f32.mrf.mxu0 }
 0x463   : > { %v2830_v30 = vadd.f32 %v2829_v17, %v2761_v28  ;;  %v2898_v38 = vpop.f32.mrf.mxu3  ;;  %v2762_v39 = vpop.f32.mrf.mxu1 }
 0x464   : > { %v2763_v33 = vadd.f32 %v2762_v39, %v2693_v18 }
 0x465   : > { %v2899_v20 = vadd.f32 %v2898_v38, %v2830_v30  ;;  %v391_v38 = vld [vmem:[%s5177_s19 + $0xc0] sm:$0xff] }
 0x467   : > { %v3292_v42 = vadd.f32 %v2899_v20, %v480_v19 }
 0x469   : > { %3412 = vst [vmem:[%s5177_s19 + $0x388] sm:$0xff] %v3292_v42 }
 0x46a   : > { %v2831_v40 = vpop.f32.mrf.mxu2  ;;  %v2912_v35 = vpop.f32.mrf.mxu0 }
 0x46b   : > { %v2832_v7 = vadd.f32 %v2831_v40, %v2763_v33  ;;  %v2900_v34 = vpop.f32.mrf.mxu3  ;;  %v2981_v36 = vpop.f32.mrf.mxu1  ;;  %v396_v40 = vld [vmem:[%s5177_s19 + $0xe8] sm:$0xff] }
 0x46c   : > { %v2982_v53 = vadd.f32 %v2981_v36, %v2912_v35 }
 0x46d   : > { %v2901_v0 = vadd.f32 %v2900_v34, %v2832_v7  ;;  %2951 = vmatmul.bf16.gmra.mxu0 %v5707_v6 }
 0x46e   : > { %3020 = vmatmul.bf16.gmra.mxu1 %v5710_v10 }
 0x46f   : > { %v3297_v8 = vadd.f32 %v2901_v0, %v485_v12  ;;  %3089 = vmatmul.bf16.gmra.mxu2 %v5712_v11 }
 0x470   : > { %3158 = vmatmul.bf16.gmra.mxu3 %v5714_v26 }
 0x471   : > { %3417 = vst [vmem:[%s5177_s19 + $0x3b0] sm:$0xff] %v3297_v8 }
 0x472   : > { %v3050_v13 = vpop.f32.mrf.mxu2  ;;  %v2914_v14 = vpop.f32.mrf.mxu0 }
 0x473   : > { %v3051_v43 = vadd.f32 %v3050_v13, %v2982_v53  ;;  %v3119_v59 = vpop.f32.mrf.mxu3  ;;  %v2983_v15 = vpop.f32.mrf.mxu1  ;;  %v401_v13 = vld [vmem:[%s5177_s19 + $0x110] sm:$0xff] }
 0x474   : > { %v2984_v6 = vadd.f32 %v2983_v15, %v2914_v14 }
 0x475   : > { %v3120_v61 = vadd.f32 %v3119_v59, %v3051_v43 }
 0x477   : > { %v3183_v46 = vadd.f32 %v3120_v61, %v371_v45 }
 0x479   : > { %3303 = vst [vmem:[%s5177_s19 + $0x20] sm:$0xff] %v3183_v46 }
 0x47a   : > { %v3052_v47 = vpop.f32.mrf.mxu2  ;;  %v2917_v11 = vpop.f32.mrf.mxu0 }
 0x47b   : > { %v3053_v1 = vadd.f32 %v3052_v47, %v2984_v6  ;;  %v3121_v10 = vpop.f32.mrf.mxu3  ;;  %v2986_v26 = vpop.f32.mrf.mxu1 }
 0x47c   : > { %v2987_v2 = vadd.f32 %v2986_v26, %v2917_v11  ;;  %v411_v26 = vld [vmem:[%s5177_s19 + $0x160] sm:$0xff] }
 0x47d   : > { %v3122_v16 = vadd.f32 %v3121_v10, %v3053_v1  ;;  %2956 = vmatmul.bf16.gmra.mxu0 %v5733_v5 }
 0x47e   : > { %3025 = vmatmul.bf16.gmra.mxu1 %v5736_v27 }
 0x47f   : > { %v3188_v52 = vadd.f32 %v3122_v16, %v376_v48  ;;  %3094 = vmatmul.bf16.gmra.mxu2 %v6528_v41 }
 0x480   : > { %3163 = vmatmul.bf16.gmra.mxu3 %v6539_v32 }
 0x481   : > { %3308 = vst [vmem:[%s5177_s19 + $0x48] sm:$0xff] %v3188_v52 }
 0x482   : > { %v3055_v3 = vpop.f32.mrf.mxu2  ;;  %v2919_v60 = vpop.f32.mrf.mxu0 }
 0x483   : > { %v3056_v49 = vadd.f32 %v3055_v3, %v2987_v2  ;;  %v3124_v4 = vpop.f32.mrf.mxu3  ;;  %v2988_v54 = vpop.f32.mrf.mxu1 }
 0x484   : > { %v2989_v5 = vadd.f32 %v2988_v54, %v2919_v60  ;;  %v416_v54 = vld [vmem:[%s5177_s19 + $0x188] sm:$0xff] }
 0x485   : > { %v3125_v55 = vadd.f32 %v3124_v4, %v3056_v49 }
 0x487   : > { %v3193_v51 = vadd.f32 %v3125_v55, %v381_v63 }
 0x489   : > { %3313 = vst [vmem:[%s5177_s19 + $0x70] sm:$0xff] %v3193_v51 }
 0x48a   : > { %v3057_v21 = vpop.f32.mrf.mxu2  ;;  %v2922_v41 = vpop.f32.mrf.mxu0 }
 0x48b   : > { %v3058_v58 = vadd.f32 %v3057_v21, %v2989_v5  ;;  %v3126_v27 = vpop.f32.mrf.mxu3  ;;  %v2991_v32 = vpop.f32.mrf.mxu1 }
 0x48c   : > { %v2992_v29 = vadd.f32 %v2991_v32, %v2922_v41  ;;  %v421_v32 = vld [vmem:[%s5177_s19 + $0x1b0] sm:$0xff] }
 0x48d   : > { %v3127_v22 = vadd.f32 %v3126_v27, %v3058_v58  ;;  %2961 = vmatmul.bf16.gmra.mxu0 %v6540_v56 }
 0x48e   : > { %3030 = vmatmul.bf16.gmra.mxu1 %v6541_v62 }
 0x48f   : > { %v3198_v23 = vadd.f32 %v3127_v22, %v386_v25  ;;  %3099 = vmatmul.bf16.gmra.mxu2 %v6544_v24 }
 0x490   : > { %3168 = vmatmul.bf16.gmra.mxu3 %v6545_v57 }
 0x491   : > { %3318 = vst [vmem:[%s5177_s19 + $0x98] sm:$0xff] %v3198_v23 }
 0x492   : > { %v3060_v37 = vpop.f32.mrf.mxu2  ;;  %v2924_v30 = vpop.f32.mrf.mxu0 }
 0x493   : > { %v3061_v28 = vadd.f32 %v3060_v37, %v2992_v29  ;;  %v3129_v17 = vpop.f32.mrf.mxu3  ;;  %v2993_v18 = vpop.f32.mrf.mxu1 }
 0x494   : > { %v2994_v56 = vadd.f32 %v2993_v18, %v2924_v30  ;;  %v426_v30 = vld [vmem:[%s5177_s19 + $0x1d8] sm:$0xff] }
 0x495   : > { %v3130_v19 = vadd.f32 %v3129_v17, %v3061_v28 }
 0x497   : > { %v3203_v39 = vadd.f32 %v3130_v19, %v391_v38 }
 0x499   : > { %3323 = vst [vmem:[%s5177_s19 + $0xc0] sm:$0xff] %v3203_v39 }
 0x49a   : > { %v3062_v20 = vpop.f32.mrf.mxu2  ;;  %v2927_v33 = vpop.f32.mrf.mxu0 }
 0x49b   : > { %v3063_v42 = vadd.f32 %v3062_v20, %v2994_v56  ;;  %v3131_v62 = vpop.f32.mrf.mxu3  ;;  %v2996_v7 = vpop.f32.mrf.mxu1 }
 0x49c   : > { %v2997_v12 = vadd.f32 %v2996_v7, %v2927_v33  ;;  %v431_v33 = vld [vmem:[%s5177_s19 + $0x200] sm:$0xff] }
 0x49d   : > { %v3132_v34 = vadd.f32 %v3131_v62, %v3063_v42  ;;  %2966 = vmatmul.bf16.gmra.mxu0 %v5792_v9 }
 0x49e   : > { %3035 = vmatmul.bf16.gmra.mxu1 %v5796_v50 }
 0x49f   : > { %v3208_v35 = vadd.f32 %v3132_v34, %v396_v40  ;;  %3104 = vmatmul.bf16.gmra.mxu2 %v5798_v44 }
 0x4a0   : > { %3173 = vmatmul.bf16.gmra.mxu3 %v5801_v31  ;;  %v406_v31 = vld [vmem:[%s5177_s19 + $0x138] sm:$0xff] }
 0x4a1   : > { %3328 = vst [vmem:[%s5177_s19 + $0xe8] sm:$0xff] %v3208_v35 }
 0x4a2   : > { %v3065_v36 = vpop.f32.mrf.mxu2  ;;  %v2929_v53 = vpop.f32.mrf.mxu0 }
 0x4a3   : > { %v3066_v0 = vadd.f32 %v3065_v36, %v2997_v12  ;;  %v3134_v8 = vpop.f32.mrf.mxu3  ;;  %v2998_v43 = vpop.f32.mrf.mxu1 }
 0x4a4   : > { %v2999_v9 = vadd.f32 %v2998_v43, %v2929_v53  ;;  %v436_v53 = vld [vmem:[%s5177_s19 + $0x228] sm:$0xff] }
 0x4a5   : > { %v3135_v59 = vadd.f32 %v3134_v8, %v3066_v0 }
 0x4a7   : > { %v3213_v14 = vadd.f32 %v3135_v59, %v401_v13 }
 0x4a9   : > { %3333 = vst [vmem:[%s5177_s19 + $0x110] sm:$0xff] %v3213_v14 }
 0x4aa   : > { %v3067_v45 = vpop.f32.mrf.mxu2  ;;  %v2932_v44 = vpop.f32.mrf.mxu0 }
 0x4ab   : > { %v3068_v50 = vadd.f32 %v3067_v45, %v2999_v9  ;;  %v3136_v15 = vpop.f32.mrf.mxu3  ;;  %v3001_v61 = vpop.f32.mrf.mxu1 }
 0x4ac   : > { %v3002_v47 = vadd.f32 %v3001_v61, %v2932_v44  ;;  %v441_v44 = vld [vmem:[%s5177_s19 + $0x250] sm:$0xff] }
 0x4ad   : > { %v3137_v46 = vadd.f32 %v3136_v15, %v3068_v50 }
 0x4af   : > { %v3218_v6 = vadd.f32 %v3137_v46, %v406_v31 }
 0x4b1   : > { %3338 = vst [vmem:[%s5177_s19 + $0x138] sm:$0xff] %v3218_v6 }
 0x4b2   : > { %v3070_v1 = vpop.f32.mrf.mxu2  ;;  %v2934_v48 = vpop.f32.mrf.mxu0 }
 0x4b3   : > { %v3071_v10 = vadd.f32 %v3070_v1, %v3002_v47  ;;  %v3139_v11 = vpop.f32.mrf.mxu3  ;;  %v3003_v16 = vpop.f32.mrf.mxu1 }
 0x4b4   : > { %v3004_v3 = vadd.f32 %v3003_v16, %v2934_v48  ;;  %v446_v48 = vld [vmem:[%s5177_s19 + $0x278] sm:$0xff] }
 0x4b5   : > { %v3140_v52 = vadd.f32 %v3139_v11, %v3071_v10 }
 0x4b7   : > { %v3223_v2 = vadd.f32 %v3140_v52, %v411_v26 }
 0x4b9   : > { %3343 = vst [vmem:[%s5177_s19 + $0x160] sm:$0xff] %v3223_v2 }
 0x4ba   : > { %v3072_v49 = vpop.f32.mrf.mxu2  ;;  %v2937_v63 = vpop.f32.mrf.mxu0 }
 0x4bb   : > { %v3073_v4 = vadd.f32 %v3072_v49, %v3004_v3  ;;  %v3141_v60 = vpop.f32.mrf.mxu3  ;;  %v3006_v55 = vpop.f32.mrf.mxu1 }
 0x4bc   : > { %v3007_v21 = vadd.f32 %v3006_v55, %v2937_v63  ;;  %v451_v63 = vld [vmem:[%s5177_s19 + $0x2a0] sm:$0xff] }
 0x4bd   : > { %v3142_v51 = vadd.f32 %v3141_v60, %v3073_v4 }
 0x4bf   : > { %v3228_v5 = vadd.f32 %v3142_v51, %v416_v54 }
 0x4c1   : > { %3348 = vst [vmem:[%s5177_s19 + $0x188] sm:$0xff] %v3228_v5 }
 0x4c2   : > { %v3075_v58 = vpop.f32.mrf.mxu2  ;;  %v2939_v25 = vpop.f32.mrf.mxu0 }
 0x4c3   : > { %v3076_v27 = vadd.f32 %v3075_v58, %v3007_v21  ;;  %v3144_v41 = vpop.f32.mrf.mxu3  ;;  %v3008_v22 = vpop.f32.mrf.mxu1 }
 0x4c4   : > { %v3009_v24 = vadd.f32 %v3008_v22, %v2939_v25  ;;  %v456_v25 = vld [vmem:[%s5177_s19 + $0x2c8] sm:$0xff] }
 0x4c5   : > { %v3145_v23 = vadd.f32 %v3144_v41, %v3076_v27 }
 0x4c7   : > { %v3233_v29 = vadd.f32 %v3145_v23, %v421_v32 }
 0x4c9   : > { %3353 = vst [vmem:[%s5177_s19 + $0x1b0] sm:$0xff] %v3233_v29 }
 0x4ca   : > { %v3077_v57 = vpop.f32.mrf.mxu2  ;;  %v2942_v17 = vpop.f32.mrf.mxu0 }
 0x4cb   : > { %v3078_v37 = vadd.f32 %v3077_v57, %v3009_v24  ;;  %v3146_v28 = vpop.f32.mrf.mxu3  ;;  %v3011_v38 = vpop.f32.mrf.mxu1 }
 0x4cc   : > { %v3012_v39 = vadd.f32 %v3011_v38, %v2942_v17  ;;  %v461_v17 = vld [vmem:[%s5177_s19 + $0x2f0] sm:$0xff] }
 0x4cd   : > { %v3147_v18 = vadd.f32 %v3146_v28, %v3078_v37 }
 0x4cf   : > { %v3238_v19 = vadd.f32 %v3147_v18, %v426_v30 }
 0x4d1   : > { %3358 = vst [vmem:[%s5177_s19 + $0x1d8] sm:$0xff] %v3238_v19 }
 0x4d2   : > { %v3080_v56 = vpop.f32.mrf.mxu2  ;;  %v2944_v62 = vpop.f32.mrf.mxu0 }
 0x4d3   : > { %v3081_v20 = vadd.f32 %v3080_v56, %v3012_v39  ;;  %v3149_v42 = vpop.f32.mrf.mxu3  ;;  %v3013_v40 = vpop.f32.mrf.mxu1 }
 0x4d4   : > { %v3014_v35 = vadd.f32 %v3013_v40, %v2944_v62  ;;  %v466_v62 = vld [vmem:[%s5177_s19 + $0x318] sm:$0xff] }
 0x4d5   : > { %v3150_v7 = vadd.f32 %v3149_v42, %v3081_v20 }
 0x4d7   : > { %v3243_v34 = vadd.f32 %v3150_v7, %v431_v33 }
 0x4d9   : > { %3363 = vst [vmem:[%s5177_s19 + $0x200] sm:$0xff] %v3243_v34 }
 0x4da   : > { %v3082_v12 = vpop.f32.mrf.mxu2  ;;  %v2947_v8 = vpop.f32.mrf.mxu0 }
 0x4db   : > { %v3083_v36 = vadd.f32 %v3082_v12, %v3014_v35  ;;  %v3151_v0 = vpop.f32.mrf.mxu3  ;;  %v3016_v13 = vpop.f32.mrf.mxu1 }
 0x4dc   : > { %v3017_v14 = vadd.f32 %v3016_v13, %v2947_v8  ;;  %v471_v8 = vld [vmem:[%s5177_s19 + $0x340] sm:$0xff] }
 0x4dd   : > { %v3152_v43 = vadd.f32 %v3151_v0, %v3083_v36 }
 0x4df   : > { %v3248_v59 = vadd.f32 %v3152_v43, %v436_v53 }
 0x4e1   : > { %3368 = vst [vmem:[%s5177_s19 + $0x228] sm:$0xff] %v3248_v59 }
 0x4e2   : > { %v3085_v9 = vpop.f32.mrf.mxu2  ;;  %v2949_v15 = vpop.f32.mrf.mxu0 }
 0x4e3   : > { %v3086_v45 = vadd.f32 %v3085_v9, %v3017_v14  ;;  %v3154_v50 = vpop.f32.mrf.mxu3  ;;  %v3018_v31 = vpop.f32.mrf.mxu1 }
 0x4e4   : > { %v3019_v6 = vadd.f32 %v3018_v31, %v2949_v15 }
 0x4e5   : > { %v3155_v61 = vadd.f32 %v3154_v50, %v3086_v45  ;;  %v476_v50 = vld [vmem:[%s5177_s19 + $0x368] sm:$0xff] }
 0x4e7   : > { %v3253_v46 = vadd.f32 %v3155_v61, %v441_v44 }
 0x4e9   : > { %3373 = vst [vmem:[%s5177_s19 + $0x250] sm:$0xff] %v3253_v46 }
 0x4ea   : > { %v3087_v47 = vpop.f32.mrf.mxu2  ;;  %v2952_v11 = vpop.f32.mrf.mxu0 }
 0x4eb   : > { %v3088_v1 = vadd.f32 %v3087_v47, %v3019_v6  ;;  %v3156_v10 = vpop.f32.mrf.mxu3  ;;  %v3021_v26 = vpop.f32.mrf.mxu1 }
 0x4ec   : > { %v3022_v2 = vadd.f32 %v3021_v26, %v2952_v11 }
 0x4ed   : > { %v3157_v16 = vadd.f32 %v3156_v10, %v3088_v1  ;;  %v481_v10 = vld [vmem:[%s5177_s19 + $0x390] sm:$0xff] }
 0x4ef   : > { %v3258_v52 = vadd.f32 %v3157_v16, %v446_v48 }
 0x4f1   : > { %3378 = vst [vmem:[%s5177_s19 + $0x278] sm:$0xff] %v3258_v52 }
 0x4f2   : > { %v3090_v3 = vpop.f32.mrf.mxu2  ;;  %v2954_v60 = vpop.f32.mrf.mxu0 }
 0x4f3   : > { %v3091_v49 = vadd.f32 %v3090_v3, %v3022_v2  ;;  %v3159_v4 = vpop.f32.mrf.mxu3  ;;  %v3023_v54 = vpop.f32.mrf.mxu1 }
 0x4f4   : > { %v3024_v5 = vadd.f32 %v3023_v54, %v2954_v60 }
 0x4f5   : > { %v3160_v55 = vadd.f32 %v3159_v4, %v3091_v49  ;;  %v486_v49 = vld [vmem:[%s5177_s19 + $0x3b8] sm:$0xff] }
 0x4f7   : > { %v3263_v51 = vadd.f32 %v3160_v55, %v451_v63 }
 0x4f9   : > { %3383 = vst [vmem:[%s5177_s19 + $0x2a0] sm:$0xff] %v3263_v51 }
 0x4fa   : > { %v3092_v21 = vpop.f32.mrf.mxu2  ;;  %v2957_v41 = vpop.f32.mrf.mxu0 }
 0x4fb   : > { %v3093_v58 = vadd.f32 %v3092_v21, %v3024_v5  ;;  %v3161_v27 = vpop.f32.mrf.mxu3  ;;  %v3026_v32 = vpop.f32.mrf.mxu1 }
 0x4fc   : > { %v3027_v29 = vadd.f32 %v3026_v32, %v2957_v41 }
 0x4fd   : > { %v3162_v22 = vadd.f32 %v3161_v27, %v3093_v58 }
 0x4ff   : > { %v3268_v23 = vadd.f32 %v3162_v22, %v456_v25 }
 0x501   : > { %3388 = vst [vmem:[%s5177_s19 + $0x2c8] sm:$0xff] %v3268_v23 }
 0x502   : > { %v3095_v24 = vpop.f32.mrf.mxu2  ;;  %v2959_v28 = vpop.f32.mrf.mxu0 }
 0x503   : > { %v3096_v57 = vadd.f32 %v3095_v24, %v3027_v29  ;;  %v3164_v37 = vpop.f32.mrf.mxu3  ;;  %v3028_v30 = vpop.f32.mrf.mxu1 }
 0x504   : > { %v3029_v19 = vadd.f32 %v3028_v30, %v2959_v28 }
 0x505   : > { %v3165_v38 = vadd.f32 %v3164_v37, %v3096_v57 }
 0x507   : > { %v3273_v18 = vadd.f32 %v3165_v38, %v461_v17 }
 0x509   : > { %3393 = vst [vmem:[%s5177_s19 + $0x2f0] sm:$0xff] %v3273_v18 }
 0x50a   : > { %v3097_v39 = vpop.f32.mrf.mxu2  ;;  %v2962_v42 = vpop.f32.mrf.mxu0 }
 0x50b   : > { %v3098_v56 = vadd.f32 %v3097_v39, %v3029_v19  ;;  %v3166_v20 = vpop.f32.mrf.mxu3  ;;  %v3031_v33 = vpop.f32.mrf.mxu1 }
 0x50c   : > { %v3032_v34 = vadd.f32 %v3031_v33, %v2962_v42 }
 0x50d   : > { %v3167_v40 = vadd.f32 %v3166_v20, %v3098_v56 }
 0x50f   : > { %v3278_v7 = vadd.f32 %v3167_v40, %v466_v62 }
 0x511   : > { %3398 = vst [vmem:[%s5177_s19 + $0x318] sm:$0xff] %v3278_v7 }
 0x512   : > { %v3100_v35 = vpop.f32.mrf.mxu2  ;;  %v2964_v0 = vpop.f32.mrf.mxu0 }
 0x513   : > { %v3101_v12 = vadd.f32 %v3100_v35, %v3032_v34  ;;  %v3169_v36 = vpop.f32.mrf.mxu3  ;;  %v3033_v53 = vpop.f32.mrf.mxu1 }
 0x514   : > { %v3034_v59 = vadd.f32 %v3033_v53, %v2964_v0 }
 0x515   : > { %v3170_v13 = vadd.f32 %v3169_v36, %v3101_v12 }
 0x517   : > { %v3283_v43 = vadd.f32 %v3170_v13, %v471_v8 }
 0x519   : > { %3403 = vst [vmem:[%s5177_s19 + $0x340] sm:$0xff] %v3283_v43 }
 0x51a   : > { %v3102_v14 = vpop.f32.mrf.mxu2  ;;  %v2967_v15 = vpop.f32.mrf.mxu0 }
 0x51b   : > { %v3103_v9 = vadd.f32 %v3102_v14, %v3034_v59  ;;  %v3171_v45 = vpop.f32.mrf.mxu3  ;;  %v3036_v44 = vpop.f32.mrf.mxu1 }
 0x51c   : > { %v3037_v46 = vadd.f32 %v3036_v44, %v2967_v15 }
 0x51d   : > { %v3172_v31 = vadd.f32 %v3171_v45, %v3103_v9 }
 0x51f   : > { %v3288_v61 = vadd.f32 %v3172_v31, %v476_v50 }
 0x521   : > { %3408 = vst [vmem:[%s5177_s19 + $0x368] sm:$0xff] %v3288_v61 }
 0x522   : > { %v3105_v6 = vpop.f32.mrf.mxu2  ;;  %v2969_v48 = vpop.f32.mrf.mxu0 }
 0x523   : > { %v3106_v47 = vadd.f32 %v3105_v6, %v3037_v46  ;;  %v3174_v1 = vpop.f32.mrf.mxu3  ;;  %v3038_v26 = vpop.f32.mrf.mxu1 }
 0x524   : > { %v3039_v52 = vadd.f32 %v3038_v26, %v2969_v48 }
 0x525   : > { %v3175_v11 = vadd.f32 %v3174_v1, %v3106_v47 }
 0x527   : > { %v3293_v16 = vadd.f32 %v3175_v11, %v481_v10 }
 0x529   : > { %3413 = vst [vmem:[%s5177_s19 + $0x390] sm:$0xff] %v3293_v16 }
 0x52a   : > { %v3107_v2 = vpop.f32.mrf.mxu2 }
 0x52b   : > { %v3108_v3 = vadd.f32 %v3107_v2, %v3039_v52  ;;  %v3176_v4 = vpop.f32.mrf.mxu3 }
 0x52d   : > { %v3177_v60 = vadd.f32 %v3176_v4, %v3108_v3 }
 0x52f   : > { %v3298_v63 = vadd.f32 %v3177_v60, %v486_v49 }
 0x531   : > { %3418 = vst [vmem:[%s5177_s19 + $0x3b8] sm:$0xff] %v3298_v63 }
 0x532   : > { %4847 = shalt.err (!%p4844_p10)
}
 0x533   : > { %s4978_s21 = smov 640   ;;  %s4979_s20 = smov 40  }
 0x534   : > { %4624 = dma.vmem_to_hbm [thread:$0]  (%p5143_p12), %s3436_s23, 15360, %s3438_s27, %s3420_s4, %s4978_s21, %s4978_s21, %s4979_s20  }
 0x535 PF: > { %p4639_p11 = scmp.ge.s32.totalorder %s4970_s22, 2  ;;  %s3452_s6 = sand.u32 1, %s4918_s9  }
 0x536   : > { %s3453_s19 = scalar_lea.sflag [#allocation4], %s3452_s6 }
 0x537   : > { %p4634_p0 = pnand %p4639_p11, %p5148_p5 }
 0x539   : > { %p4635_p2 = pneg %p4634_p0 }
 0x53b   : > { %4913 = dma.done.wait (%p4635_p2), %s3453_s19, 15360  }
 0x53c   : > { %4915 = vsyncadd (%p4635_p2), %s3453_s19, 4294951936  ;;  %s21_s22 = sadd.s32 1, %s4970_s22   ;;  %s6549_s26 = sld [smem:[#allocation18_spill]] }
 0x53d   : > { %p6434_p6 = scmp.ge.s32.totalorder %s21_s22, 6   ;;  %s6550_s18 = sld [smem:[#allocation11_spill]] }
 0x53e   : > { %s6551_s25 = sld [smem:[#allocation17_spill]]  ;;  %s6557_s9 = smov %s4922_s10 }
 0x53f   : > { %s6552_s30 = sld [smem:[#allocation13_spill]]  ;;  %s6558_s10 = smov %s4926_s11 }
 0x540   : > { %s6553_s19 = sld [smem:[#allocation14_spill]]  ;;  %s6559_s11 = smov %s5095_s5 }
 0x541   : > { %s6554_s20 = sld [smem:[#allocation15_spill]]  ;;  %s6560_s12 = smov %s4934_s13 }
 0x542   : > { %s6555_s21 = sld [smem:[#allocation16_spill]]  ;;  %s6561_s13 = smov %s4938_s14 }
 0x543   : > { %s6562_s14 = smov %s6549_s26  ;;  %s6563_s15 = smov %s4946_s16 }
 0x544   : > { %s6564_s16 = smov %s6550_s18  ;;  %s6565_s17 = smov %s6551_s25 }
 0x545   : > { %s6566_s18 = smov %s6552_s30  ;;  %20 = sbr.rel (!%p6434_p6) target bundleno = 15 (0xf), region = 90 }
 0x54a   :  { %3459 = vsyncpa [#allocation3], 1 }
 0x54b   :  { %3461 = vsyncpa [#allocation3 + $0x1], 1 }
 0x54c   :  { %3462 = vsyncpa [#allocation6], 1 }
 0x54d   :  { %3464 = vsyncpa [#allocation6 + $0x1], 1 }
 0x54e   :  { %3465 = vsyncpa [#allocation4], 1 }
 0x54f   :  { %3467 = vsyncpa [#allocation4 + $0x1], 1 }

</bundles_post_ra>
